<compile_context>
chip_gen: v7x
topology: tpu7x:2x2x1
jax: 0.10.0
libtpu: 0.0.40
codegen_flags: <defaults>
</compile_context>

<pallas_src>
import functools
import math

import jax
import jax.numpy as jnp
from jax import lax
from jax.experimental import pallas as pl
from jax.experimental.pallas import tpu as pltpu


# -----------------------------------------------------------------------------
# In-kernel helpers
# -----------------------------------------------------------------------------
def _im2col_dot(x_ref, w_ref, h, w):
    """Single-matmul 3x3 conv (stride 1) on one padded tile.

    x_ref: (1, h+2, w+2, cin) bf16 zero-padded input tile.
    w_ref: (9*cin, ctile)     bf16 weights, flattened in (dy, dx, cin) order
                              (BN scale already folded in).
    Returns the (h*w, ctile) f32 accumulator.
    """
    cin = x_ref.shape[-1]
    # Hoist the 3 dx (column) shifts; dy shifts are free major-axis slices.
    cols = [x_ref[0, :, dx:dx + w, :] for dx in range(3)]          # (h+2, w, cin)
    taps = [cols[dx][dy:dy + h] for dy in range(3) for dx in range(3)]  # (h, w, cin)
    # Concatenate taps along the lane axis -> K = 9*cin, matching the
    # row-major flattening of the (3, 3, cin, cout) HWIO weights.
    lhs = jnp.concatenate(taps, axis=-1).reshape(h * w, 9 * cin)
    return jnp.dot(lhs, w_ref[...], preferred_element_type=jnp.float32)


def _store_output(o_ref, acc, h, w, out_padded):
    ctile = o_ref.shape[-1]
    y = acc.reshape(h, w, ctile).astype(o_ref.dtype)
    if out_padded:
        # Emit an already zero-padded tile so the next conv needs no host pad.
        o_ref[...] = jnp.zeros_like(o_ref)
        o_ref[0, 1:h + 1, 1:w + 1, :] = y
    else:
        o_ref[0] = y


# -----------------------------------------------------------------------------
# Pallas kernels
# -----------------------------------------------------------------------------
def _conv_bn_relu_kernel(x_ref, w_ref, b_ref, o_ref, *, h, w, out_padded):
    """conv3x3 (scale folded into weights) + BN shift + ReLU."""
    acc = _im2col_dot(x_ref, w_ref, h, w)
    acc = jnp.maximum(acc + b_ref[...], 0.0)        # (1, ctile) broadcasts
    _store_output(o_ref, acc, h, w, out_padded)


def _conv_bn_add_relu_kernel(x_ref, w_ref, b_ref, r_ref, o_ref, *,
                             h, w, out_padded, residual_padded):
    """conv3x3 + BN shift + residual add + ReLU (BasicBlock tail)."""
    ctile = o_ref.shape[-1]
    acc = _im2col_dot(x_ref, w_ref, h, w) + b_ref[...]
    if residual_padded:
        res = r_ref[0, 1:h + 1, 1:w + 1, :]         # interior of padded input
    else:
        res = r_ref[0]
    acc = acc + res.reshape(h * w, ctile).astype(jnp.float32)
    acc = jnp.maximum(acc, 0.0)
    _store_output(o_ref, acc, h, w, out_padded)


# -----------------------------------------------------------------------------
# Wrapper
# -----------------------------------------------------------------------------
def _cout_tile(cout):
    """Generation-aware Cout tile: 128 on v5e (128-wide MXU), else prefer 256."""
    prefer = (256, 128)
    try:
        kind = jax.devices()[0].device_kind.lower()
        if "v5" in kind:
            prefer = (128, 256)
    except Exception:
        pass
    for t in prefer:
        if cout % t == 0:
            return t
    return cout  # full-dim block (legal; perf hazard only)


def conv3x3_bn_act(x_padded, w, scale, shift, residual=None, *,
                   residual_padded=False, out_padded=False,
                   out_dtype=jnp.bfloat16):
    """Fused 3x3 conv (stride 1, pad 1, bias-free) + BN(eval) [+ residual] + ReLU.

    x_padded: (N, H+2, W+2, Cin) bf16, zero-padded NHWC input.
    w:        (3, 3, Cin, Cout)  HWIO weights (any float dtype).
    scale:    (Cout,) folded BN scale = gamma / sqrt(var + eps)  (folded into w).
    shift:    (Cout,) folded BN shift = beta - mean * scale.
    residual: optional NHWC tensor added before the final ReLU; if
              residual_padded it is (N, H+2, W+2, Cout) and the interior is used.
    out_padded: if True, output is (N, H+2, W+2, Cout) with a zero border.
    """
    n, hp, wp, cin = x_padded.shape
    h, wd = hp - 2, wp - 2
    cout = w.shape[-1]
    tc = _cout_tile(cout)

    # Fold BN scale into the weights host-side; flatten to (9*Cin, Cout) in
    # (dy, dx, cin) order to match the in-kernel im2col concat; cast to bf16.
    wb = (w.astype(jnp.float32) * scale.astype(jnp.float32).reshape(1, 1, 1, cout))
    wb = wb.reshape(9 * cin, cout).astype(jnp.bfloat16)
    b2 = shift.reshape(1, cout).astype(jnp.float32)

    in_specs = [
        # Activation tile: depends only on the (fast) batch axis.
        pl.BlockSpec((1, hp, wp, cin), lambda j, i: (i, 0, 0, 0)),
        # Weight / shift tiles: depend only on the (slow) Cout-tile axis, so
        # they stay resident across the batch sweep (weight-stationary).
        pl.BlockSpec((9 * cin, tc), lambda j, i: (0, j)),
        pl.BlockSpec((1, tc), lambda j, i: (0, j)),
    ]
    args = [x_padded, wb, b2]

    if residual is not None:
        if residual_padded:
            in_specs.append(pl.BlockSpec((1, hp, wp, tc), lambda j, i: (i, 0, 0, j)))
        else:
            in_specs.append(pl.BlockSpec((1, h, wd, tc), lambda j, i: (i, 0, 0, j)))
        args.append(residual)
        kernel = functools.partial(_conv_bn_add_relu_kernel, h=h, w=wd,
                                   out_padded=out_padded,
                                   residual_padded=residual_padded)
    else:
        kernel = functools.partial(_conv_bn_relu_kernel, h=h, w=wd,
                                   out_padded=out_padded)

    if out_padded:
        out_shape = jax.ShapeDtypeStruct((n, hp, wp, cout), out_dtype)
        out_spec = pl.BlockSpec((1, hp, wp, tc), lambda j, i: (i, 0, 0, j))
    else:
        out_shape = jax.ShapeDtypeStruct((n, h, wd, cout), out_dtype)
        out_spec = pl.BlockSpec((1, h, wd, tc), lambda j, i: (i, 0, 0, j))

    return pl.pallas_call(
        kernel,
        out_shape=out_shape,
        grid=(cout // tc, n),                 # Cout-tile outer, batch inner
        in_specs=in_specs,
        out_specs=out_spec,
        compiler_params=pltpu.CompilerParams(
            dimension_semantics=("parallel", "parallel"),
            vmem_limit_bytes=48 * 1024 * 1024,   # fits v7x's 64 MiB VMEM
        ),
    )(*args)


# -----------------------------------------------------------------------------
# BasicBlock forward (stride=1, downsample=None, eval-mode BN)
# -----------------------------------------------------------------------------
def _fold_bn(gamma, beta, mean, var, eps=1e-5):
    scale = gamma / jnp.sqrt(var + eps)
    return scale, beta - mean * scale


@jax.jit
def basic_block_forward(x_nchw, params):
    """out = relu(bn2(conv2(relu(bn1(conv1(x))))) + x)."""
    x_nhwc = jnp.transpose(x_nchw, (0, 2, 3, 1))                  # NCHW -> NHWC
    xp = jnp.pad(x_nhwc.astype(jnp.bfloat16),
                 ((0, 0), (1, 1), (1, 1), (0, 0)))                # padded bf16
    s1, b1 = _fold_bn(*params["bn1"])
    s2, b2 = _fold_bn(*params["bn2"])

    # conv1 + bn1 + relu; kernel emits the already zero-padded bf16 intermediate.
    out1p = conv3x3_bn_act(xp, params["conv1_w"], s1, b1,
                           out_padded=True, out_dtype=jnp.bfloat16)

    # conv2 + bn2 + residual + relu. The residual reuses the padded bf16 conv1
    # input (valid because inplanes == planes for the stride=1/no-downsample
    # BasicBlock configuration).
    out = conv3x3_bn_act(out1p, params["conv2_w"], s2, b2,
                         residual=xp, residual_padded=True,
                         out_dtype=x_nchw.dtype)
    return jnp.transpose(out, (0, 3, 1, 2))                       # back to NCHW


# -----------------------------------------------------------------------------
# Pure-JAX f32 reference for validation
# -----------------------------------------------------------------------------
def basic_block_ref(x_nchw, params, eps=1e-5):
    x = jnp.transpose(x_nchw, (0, 2, 3, 1))

    def conv(h, w):
        return lax.conv_general_dilated(
            h, w, window_strides=(1, 1), padding="SAME",
            dimension_numbers=("NHWC", "HWIO", "NHWC"))

    def bn(h, p):
        gamma, beta, mean, var = p
        return (h - mean) * gamma / jnp.sqrt(var + eps) + beta

    out = jnp.maximum(bn(conv(x, params["conv1_w"]), params["bn1"]), 0.0)
    out = bn(conv(out, params["conv2_w"]), params["bn2"])
    out = jnp.maximum(out + x, 0.0)
    return jnp.transpose(out, (0, 3, 1, 2))


# -----------------------------------------------------------------------------
if __name__ == "__main__":
    key = jax.random.PRNGKey(0)
    (kx, kw1, kw2,
     kg1, kb1, km1, kv1,
     kg2, kb2, km2, kv2) = jax.random.split(key, 11)

    # Small shapes consistent with BasicBlock defaults: inplanes = planes = 64.
    N, C, H, W = 2, 64, 16, 16
    bound = 1.0 / math.sqrt(9 * C)
    params = {
        "conv1_w": jax.random.uniform(kw1, (3, 3, C, C), jnp.float32, -bound, bound),
        "conv2_w": jax.random.uniform(kw2, (3, 3, C, C), jnp.float32, -bound, bound),
        "bn1": (jax.random.uniform(kg1, (C,), jnp.float32, 0.8, 1.2),
                0.1 * jax.random.normal(kb1, (C,), jnp.float32),
                0.1 * jax.random.normal(km1, (C,), jnp.float32),
                jax.random.uniform(kv1, (C,), jnp.float32, 0.8, 1.2)),
        "bn2": (jax.random.uniform(kg2, (C,), jnp.float32, 0.8, 1.2),
                0.1 * jax.random.normal(kb2, (C,), jnp.float32),
                0.1 * jax.random.normal(km2, (C,), jnp.float32),
                jax.random.uniform(kv2, (C,), jnp.float32, 0.8, 1.2)),
    }
    x = jax.random.normal(kx, (N, C, H, W), jnp.float32)

    out = jax.block_until_ready(basic_block_forward(x, params))
    assert out.shape == (N, C, H, W), out.shape

    ref = jax.block_until_ready(basic_block_ref(x, params))
    max_err = float(jnp.max(jnp.abs(out - ref)))
    # bf16 operands + bf16 intermediate / residual vs f32 reference -> loose tol.
    assert jnp.allclose(out, ref, atol=5e-2, rtol=5e-2), max_err

    print("KERNEL_OK")
</pallas_src>

<mosaic_0001>
module attributes {stable_mosaic.version = 11 : i64} {
  func.func @_conv_bn_add_relu_kernel(%arg0: i32, %arg1: i32, %arg2: memref<1x18x18x64xbf16, #tpu.memory_space<vmem>>, %arg3: memref<576x64xbf16, #tpu.memory_space<vmem>>, %arg4: memref<1x64xf32, #tpu.memory_space<vmem>>, %arg5: memref<1x18x18x64xbf16, #tpu.memory_space<vmem>>, %arg6: memref<1x16x16x64xf32, #tpu.memory_space<vmem>>) attributes {dimension_semantics = [#tpu.dimension_semantics<parallel>, #tpu.dimension_semantics<parallel>], iteration_bounds = array<i64: 1, 2>, scalar_prefetch = 0 : i64, scratch_operands = 0 : i64, tpu.core_type = #tpu.core_type<tc>, window_params = [{transform_indices = @transform_0, window_bounds = array<i64: 1, 18, 18, 64>}, {transform_indices = @transform_1, window_bounds = array<i64: 576, 64>}, {transform_indices = @transform_2, window_bounds = array<i64: 1, 64>}, {transform_indices = @transform_3, window_bounds = array<i64: 1, 18, 18, 64>}, {transform_indices = @transform_4, window_bounds = array<i64: 1, 16, 16, 64>}]} {
    %c0 = arith.constant 0 : index
    %c0_0 = arith.constant 0 : index
    %c0_1 = arith.constant 0 : index
    %c0_2 = arith.constant 0 : index
    %0 = vector.load %arg2[%c0, %c0_0, %c0_1, %c0_2] : memref<1x18x18x64xbf16, #tpu.memory_space<vmem>>, vector<1x18x16x64xbf16>
    %1 = vector.shape_cast %0 : vector<1x18x16x64xbf16> to vector<18x16x64xbf16>
    %c0_3 = arith.constant 0 : index
    %c0_4 = arith.constant 0 : index
    %c1 = arith.constant 1 : index
    %c0_5 = arith.constant 0 : index
    %2 = vector.load %arg2[%c0_3, %c0_4, %c1, %c0_5] : memref<1x18x18x64xbf16, #tpu.memory_space<vmem>>, vector<1x18x16x64xbf16>
    %3 = vector.shape_cast %2 : vector<1x18x16x64xbf16> to vector<18x16x64xbf16>
    %c0_6 = arith.constant 0 : index
    %c0_7 = arith.constant 0 : index
    %c2 = arith.constant 2 : index
    %c0_8 = arith.constant 0 : index
    %4 = vector.load %arg2[%c0_6, %c0_7, %c2, %c0_8] : memref<1x18x18x64xbf16, #tpu.memory_space<vmem>>, vector<1x18x16x64xbf16>
    %5 = vector.shape_cast %4 : vector<1x18x16x64xbf16> to vector<18x16x64xbf16>
    %6 = vector.extract_strided_slice %1 {offsets = [0, 0, 0], sizes = [16, 16, 64], strides = [1, 1, 1]} : vector<18x16x64xbf16> to vector<16x16x64xbf16>
    %7 = vector.extract_strided_slice %3 {offsets = [0, 0, 0], sizes = [16, 16, 64], strides = [1, 1, 1]} : vector<18x16x64xbf16> to vector<16x16x64xbf16>
    %8 = vector.extract_strided_slice %5 {offsets = [0, 0, 0], sizes = [16, 16, 64], strides = [1, 1, 1]} : vector<18x16x64xbf16> to vector<16x16x64xbf16>
    %9 = vector.extract_strided_slice %1 {offsets = [1, 0, 0], sizes = [16, 16, 64], strides = [1, 1, 1]} : vector<18x16x64xbf16> to vector<16x16x64xbf16>
    %10 = vector.extract_strided_slice %3 {offsets = [1, 0, 0], sizes = [16, 16, 64], strides = [1, 1, 1]} : vector<18x16x64xbf16> to vector<16x16x64xbf16>
    %11 = vector.extract_strided_slice %5 {offsets = [1, 0, 0], sizes = [16, 16, 64], strides = [1, 1, 1]} : vector<18x16x64xbf16> to vector<16x16x64xbf16>
    %12 = vector.extract_strided_slice %1 {offsets = [2, 0, 0], sizes = [16, 16, 64], strides = [1, 1, 1]} : vector<18x16x64xbf16> to vector<16x16x64xbf16>
    %13 = vector.extract_strided_slice %3 {offsets = [2, 0, 0], sizes = [16, 16, 64], strides = [1, 1, 1]} : vector<18x16x64xbf16> to vector<16x16x64xbf16>
    %14 = vector.extract_strided_slice %5 {offsets = [2, 0, 0], sizes = [16, 16, 64], strides = [1, 1, 1]} : vector<18x16x64xbf16> to vector<16x16x64xbf16>
    %15 = tpu.concatenate %6, %7, %8, %9, %10, %11, %12, %13, %14 in 2 : vector<16x16x64xbf16>, vector<16x16x64xbf16>, vector<16x16x64xbf16>, vector<16x16x64xbf16>, vector<16x16x64xbf16>, vector<16x16x64xbf16>, vector<16x16x64xbf16>, vector<16x16x64xbf16>, vector<16x16x64xbf16> -> vector<16x16x576xbf16>
    %16 = vector.shape_cast %15 : vector<16x16x576xbf16> to vector<256x576xbf16>
    %c0_9 = arith.constant 0 : index
    %c0_10 = arith.constant 0 : index
    %17 = vector.load %arg3[%c0_9, %c0_10] : memref<576x64xbf16, #tpu.memory_space<vmem>>, vector<576x64xbf16>
    %cst = arith.constant dense<0.000000e+00> : vector<256x64xf32>
    %18 = tpu.matmul %16, %17, %cst {dimension_numbers = #tpu.dot_dimension_numbers<[1], [0], [0], [1], [0, 0, 1, 1], [], []>} : vector<256x576xbf16>, vector<576x64xbf16>, vector<256x64xf32> -> vector<256x64xf32>
    %c0_11 = arith.constant 0 : index
    %c0_12 = arith.constant 0 : index
    %19 = vector.load %arg4[%c0_11, %c0_12] : memref<1x64xf32, #tpu.memory_space<vmem>>, vector<1x64xf32>
    %20 = vector.broadcast %19 : vector<1x64xf32> to vector<256x64xf32>
    %21 = arith.addf %18, %20 : vector<256x64xf32>
    %c0_13 = arith.constant 0 : index
    %c1_14 = arith.constant 1 : index
    %c1_15 = arith.constant 1 : index
    %c0_16 = arith.constant 0 : index
    %22 = vector.load %arg5[%c0_13, %c1_14, %c1_15, %c0_16] : memref<1x18x18x64xbf16, #tpu.memory_space<vmem>>, vector<1x16x16x64xbf16>
    %23 = vector.shape_cast %22 : vector<1x16x16x64xbf16> to vector<16x16x64xbf16>
    %24 = vector.shape_cast %23 : vector<16x16x64xbf16> to vector<256x64xbf16>
    %25 = arith.extf %24 : vector<256x64xbf16> to vector<256x64xf32>
    %26 = arith.addf %21, %25 : vector<256x64xf32>
    %cst_17 = arith.constant 0.000000e+00 : f32
    %27 = vector.broadcast %cst_17 : f32 to vector<256x64xf32>
    %28 = arith.maximumf %26, %27 : vector<256x64xf32>
    %29 = vector.shape_cast %28 : vector<256x64xf32> to vector<16x16x64xf32>
    %c0_18 = arith.constant 0 : index
    %c0_19 = arith.constant 0 : index
    %c0_20 = arith.constant 0 : index
    %c0_21 = arith.constant 0 : index
    %30 = vector.load %arg6[%c0_18, %c0_19, %c0_20, %c0_21] : memref<1x16x16x64xf32, #tpu.memory_space<vmem>>, vector<1x16x16x64xf32>
    %31 = vector.shape_cast %30 : vector<1x16x16x64xf32> to vector<16x16x64xf32>
    %32 = vector.shape_cast %29 : vector<16x16x64xf32> to vector<1x16x16x64xf32>
    tpu.vector_store %arg6[%c0_18, %c0_19, %c0_20, %c0_21], %32 {strides = array<i32>} : memref<1x16x16x64xf32, #tpu.memory_space<vmem>>, vector<1x16x16x64xf32>,
    return
  }
  func.func @transform_0(%arg0: i32, %arg1: i32) -> (i32, i32, i32, i32) {
    %c0_i32 = arith.constant 0 : i32
    %c0_i32_0 = arith.constant 0 : i32
    %c0_i32_1 = arith.constant 0 : i32
    %c0_i32_2 = arith.constant 0 : i32
    return %arg1, %c0_i32, %c0_i32_0, %c0_i32_1 : i32, i32, i32, i32
  }
  func.func @transform_1(%arg0: i32, %arg1: i32) -> (i32, i32) {
    %c0_i32 = arith.constant 0 : i32
    %c0_i32_0 = arith.constant 0 : i32
    return %c0_i32, %arg0 : i32, i32
  }
  func.func @transform_2(%arg0: i32, %arg1: i32) -> (i32, i32) {
    %c0_i32 = arith.constant 0 : i32
    %c0_i32_0 = arith.constant 0 : i32
    return %c0_i32, %arg0 : i32, i32
  }
  func.func @transform_3(%arg0: i32, %arg1: i32) -> (i32, i32, i32, i32) {
    %c0_i32 = arith.constant 0 : i32
    %c0_i32_0 = arith.constant 0 : i32
    %c0_i32_1 = arith.constant 0 : i32
    return %arg1, %c0_i32, %c0_i32_0, %arg0 : i32, i32, i32, i32
  }
  func.func @transform_4(%arg0: i32, %arg1: i32) -> (i32, i32, i32, i32) {
    %c0_i32 = arith.constant 0 : i32
    %c0_i32_0 = arith.constant 0 : i32
    %c0_i32_1 = arith.constant 0 : i32
    return %arg1, %c0_i32, %c0_i32_0, %arg0 : i32, i32, i32, i32
  }
}

module attributes {stable_mosaic.version = 11 : i64} {
  func.func @_conv_bn_relu_kernel(%arg0: i32, %arg1: i32, %arg2: memref<1x18x18x64xbf16, #tpu.memory_space<vmem>>, %arg3: memref<576x64xbf16, #tpu.memory_space<vmem>>, %arg4: memref<1x64xf32, #tpu.memory_space<vmem>>, %arg5: memref<1x18x18x64xbf16, #tpu.memory_space<vmem>>) attributes {dimension_semantics = [#tpu.dimension_semantics<parallel>, #tpu.dimension_semantics<parallel>], iteration_bounds = array<i64: 1, 2>, scalar_prefetch = 0 : i64, scratch_operands = 0 : i64, tpu.core_type = #tpu.core_type<tc>, window_params = [{transform_indices = @transform_0, window_bounds = array<i64: 1, 18, 18, 64>}, {transform_indices = @transform_1, window_bounds = array<i64: 576, 64>}, {transform_indices = @transform_2, window_bounds = array<i64: 1, 64>}, {transform_indices = @transform_3, window_bounds = array<i64: 1, 18, 18, 64>}]} {
    %c0 = arith.constant 0 : index
    %c0_0 = arith.constant 0 : index
    %c0_1 = arith.constant 0 : index
    %c0_2 = arith.constant 0 : index
    %0 = vector.load %arg2[%c0, %c0_0, %c0_1, %c0_2] : memref<1x18x18x64xbf16, #tpu.memory_space<vmem>>, vector<1x18x16x64xbf16>
    %1 = vector.shape_cast %0 : vector<1x18x16x64xbf16> to vector<18x16x64xbf16>
    %c0_3 = arith.constant 0 : index
    %c0_4 = arith.constant 0 : index
    %c1 = arith.constant 1 : index
    %c0_5 = arith.constant 0 : index
    %2 = vector.load %arg2[%c0_3, %c0_4, %c1, %c0_5] : memref<1x18x18x64xbf16, #tpu.memory_space<vmem>>, vector<1x18x16x64xbf16>
    %3 = vector.shape_cast %2 : vector<1x18x16x64xbf16> to vector<18x16x64xbf16>
    %c0_6 = arith.constant 0 : index
    %c0_7 = arith.constant 0 : index
    %c2 = arith.constant 2 : index
    %c0_8 = arith.constant 0 : index
    %4 = vector.load %arg2[%c0_6, %c0_7, %c2, %c0_8] : memref<1x18x18x64xbf16, #tpu.memory_space<vmem>>, vector<1x18x16x64xbf16>
    %5 = vector.shape_cast %4 : vector<1x18x16x64xbf16> to vector<18x16x64xbf16>
    %6 = vector.extract_strided_slice %1 {offsets = [0, 0, 0], sizes = [16, 16, 64], strides = [1, 1, 1]} : vector<18x16x64xbf16> to vector<16x16x64xbf16>
    %7 = vector.extract_strided_slice %3 {offsets = [0, 0, 0], sizes = [16, 16, 64], strides = [1, 1, 1]} : vector<18x16x64xbf16> to vector<16x16x64xbf16>
    %8 = vector.extract_strided_slice %5 {offsets = [0, 0, 0], sizes = [16, 16, 64], strides = [1, 1, 1]} : vector<18x16x64xbf16> to vector<16x16x64xbf16>
    %9 = vector.extract_strided_slice %1 {offsets = [1, 0, 0], sizes = [16, 16, 64], strides = [1, 1, 1]} : vector<18x16x64xbf16> to vector<16x16x64xbf16>
    %10 = vector.extract_strided_slice %3 {offsets = [1, 0, 0], sizes = [16, 16, 64], strides = [1, 1, 1]} : vector<18x16x64xbf16> to vector<16x16x64xbf16>
    %11 = vector.extract_strided_slice %5 {offsets = [1, 0, 0], sizes = [16, 16, 64], strides = [1, 1, 1]} : vector<18x16x64xbf16> to vector<16x16x64xbf16>
    %12 = vector.extract_strided_slice %1 {offsets = [2, 0, 0], sizes = [16, 16, 64], strides = [1, 1, 1]} : vector<18x16x64xbf16> to vector<16x16x64xbf16>
    %13 = vector.extract_strided_slice %3 {offsets = [2, 0, 0], sizes = [16, 16, 64], strides = [1, 1, 1]} : vector<18x16x64xbf16> to vector<16x16x64xbf16>
    %14 = vector.extract_strided_slice %5 {offsets = [2, 0, 0], sizes = [16, 16, 64], strides = [1, 1, 1]} : vector<18x16x64xbf16> to vector<16x16x64xbf16>
    %15 = tpu.concatenate %6, %7, %8, %9, %10, %11, %12, %13, %14 in 2 : vector<16x16x64xbf16>, vector<16x16x64xbf16>, vector<16x16x64xbf16>, vector<16x16x64xbf16>, vector<16x16x64xbf16>, vector<16x16x64xbf16>, vector<16x16x64xbf16>, vector<16x16x64xbf16>, vector<16x16x64xbf16> -> vector<16x16x576xbf16>
    %16 = vector.shape_cast %15 : vector<16x16x576xbf16> to vector<256x576xbf16>
    %c0_9 = arith.constant 0 : index
    %c0_10 = arith.constant 0 : index
    %17 = vector.load %arg3[%c0_9, %c0_10] : memref<576x64xbf16, #tpu.memory_space<vmem>>, vector<576x64xbf16>
    %cst = arith.constant dense<0.000000e+00> : vector<256x64xf32>
    %18 = tpu.matmul %16, %17, %cst {dimension_numbers = #tpu.dot_dimension_numbers<[1], [0], [0], [1], [0, 0, 1, 1], [], []>} : vector<256x576xbf16>, vector<576x64xbf16>, vector<256x64xf32> -> vector<256x64xf32>
    %c0_11 = arith.constant 0 : index
    %c0_12 = arith.constant 0 : index
    %19 = vector.load %arg4[%c0_11, %c0_12] : memref<1x64xf32, #tpu.memory_space<vmem>>, vector<1x64xf32>
    %20 = vector.broadcast %19 : vector<1x64xf32> to vector<256x64xf32>
    %21 = arith.addf %18, %20 : vector<256x64xf32>
    %cst_13 = arith.constant 0.000000e+00 : f32
    %22 = vector.broadcast %cst_13 : f32 to vector<256x64xf32>
    %23 = arith.maximumf %21, %22 : vector<256x64xf32>
    %24 = vector.shape_cast %23 : vector<256x64xf32> to vector<16x16x64xf32>
    %25 = arith.truncf %24 : vector<16x16x64xf32> to vector<16x16x64xbf16>
    %cst_14 = arith.constant 0.000000e+00 : bf16
    %26 = vector.broadcast %cst_14 : bf16 to vector<1x18x18x64xbf16>
    %c0_15 = arith.constant 0 : index
    %c0_16 = arith.constant 0 : index
    %c0_17 = arith.constant 0 : index
    %c0_18 = arith.constant 0 : index
    %27 = vector.load %arg5[%c0_15, %c0_16, %c0_17, %c0_18] : memref<1x18x18x64xbf16, #tpu.memory_space<vmem>>, vector<1x18x18x64xbf16>
    tpu.vector_store %arg5[%c0_15, %c0_16, %c0_17, %c0_18], %26 {strides = array<i32>} : memref<1x18x18x64xbf16, #tpu.memory_space<vmem>>, vector<1x18x18x64xbf16>,
    %c0_19 = arith.constant 0 : index
    %c1_20 = arith.constant 1 : index
    %c1_21 = arith.constant 1 : index
    %c0_22 = arith.constant 0 : index
    %28 = vector.load %arg5[%c0_19, %c1_20, %c1_21, %c0_22] : memref<1x18x18x64xbf16, #tpu.memory_space<vmem>>, vector<1x16x16x64xbf16>
    %29 = vector.shape_cast %28 : vector<1x16x16x64xbf16> to vector<16x16x64xbf16>
    %30 = vector.shape_cast %25 : vector<16x16x64xbf16> to vector<1x16x16x64xbf16>
    tpu.vector_store %arg5[%c0_19, %c1_20, %c1_21, %c0_22], %30 {strides = array<i32>} : memref<1x18x18x64xbf16, #tpu.memory_space<vmem>>, vector<1x16x16x64xbf16>,
    return
  }
  func.func @transform_0(%arg0: i32, %arg1: i32) -> (i32, i32, i32, i32) {
    %c0_i32 = arith.constant 0 : i32
    %c0_i32_0 = arith.constant 0 : i32
    %c0_i32_1 = arith.constant 0 : i32
    %c0_i32_2 = arith.constant 0 : i32
    return %arg1, %c0_i32, %c0_i32_0, %c0_i32_1 : i32, i32, i32, i32
  }
  func.func @transform_1(%arg0: i32, %arg1: i32) -> (i32, i32) {
    %c0_i32 = arith.constant 0 : i32
    %c0_i32_0 = arith.constant 0 : i32
    return %c0_i32, %arg0 : i32, i32
  }
  func.func @transform_2(%arg0: i32, %arg1: i32) -> (i32, i32) {
    %c0_i32 = arith.constant 0 : i32
    %c0_i32_0 = arith.constant 0 : i32
    return %c0_i32, %arg0 : i32, i32
  }
  func.func @transform_3(%arg0: i32, %arg1: i32) -> (i32, i32, i32, i32) {
    %c0_i32 = arith.constant 0 : i32
    %c0_i32_0 = arith.constant 0 : i32
    %c0_i32_1 = arith.constant 0 : i32
    return %arg1, %c0_i32, %c0_i32_0, %arg0 : i32, i32, i32, i32
  }
}

</mosaic_0001>

<bundles_post_ra>
// kernel: basic_block_forward.3
= control target key start
LH: loop header
LB: loop body
LE: loop exit
PB: predicated region body
PF: predicated region fallthrough
CT: control target
= control target key end

     0   :  { %9 = vsyncpa [#allocation3], 0  ;;  %s4886_s0 = inlined_call_operand.vmem [shape: bf16[2,18,18,64], index: 0, kind: input, shape index: {}]   ;;  %s4887_s1 = inlined_call_operand.vmem [shape: bf16[576,64], index: 1, kind: input, shape index: {}]   ;;  %s4888_s2 = inlined_call_operand.vmem [shape: f32[1,64], index: 2, kind: input, shape index: {}]   ;;  %s4889_s3 = inlined_call_operand.vmem [shape: bf16[2,18,18,64], index: 3, kind: input, shape index: {}]   ;;  %s4890_s4 = inlined_call_operand.hbm [shape: f32[2,16,16,64], index: 4, kind: output, shape index: {}]  }
   0x1   :  { %11 = vsyncpa [#allocation3 + $0x1], 0  ;;  %s3368_s15 = smov 0   ;;  %s3370_s16 = smov 0  }
   0x2   :  { %s3372_s17 = smov 0   ;;  %s3374_s18 = smov 0  }
   0x3   :  { %s3376_s19 = smov 0   ;;  %s3378_s20 = smov 0  }
   0x4 LB: > { %s2638_s21 = sadd.s32 4294967295, %s3337_s20   ;;  %s2639_s22 = sadd.s32 4294967294, %s3337_s20   ;;  %s3337_s20 = sphi %s3378_s20, %s17_s20   ;;  %s3333_s19 = sphi %s3376_s19, %s4948_s19   ;;  %s3329_s18 = sphi %s3374_s18, %s4947_s18   ;;  %s3325_s17 = sphi %s3372_s17, %s4946_s17   ;;  %s3321_s16 = sphi %s3370_s16, %s4945_s16   ;;  %s3317_s15 = sphi %s3368_s15, %s4944_s15  }
   0x5   : > { %s26_s23 = sadd.s32 1, %s3333_s19  ;;  %s144_s24 = sadd.s32 1, %s3325_s17 }
   0x6   : > { %p27_p0 = scmp.ge.s32.totalorder %s26_s23, 2  ;;  %p154_p1 = scmp.ne.s32.totalorder %s3325_s17, %s3321_s16 }
   0x7   : > { %p155_p2 = scmp.eq.s32.totalorder %s2638_s21, 1  ;;  %p160_p3 = scmp.ne.s32.totalorder %s3321_s16, %s3317_s15 }
   0x8   : > { %s4950_s23 = smov (%p27_p0, %s26_s23), 0  ;;  %p161_p5 = scmp.eq.s32.totalorder %s2639_s22, 1 }
   0x9   : > { %p3408_p4 = por %p155_p2, %p154_p1  ;;  %s139_s26 = ssub.s32 %s3333_s19, %s4950_s23 }
   0xa   : > { %p2644_p6 = scmp.ge.s32.totalorder %s3337_s20, 1  ;;  %p142_p7 = scmp.eq.s32.totalorder %s139_s26, 0 }
   0xb   : > { %p3415_p8 = por %p161_p5, %p160_p3  ;;  %p211_p9 = scmp.lt.s32.totalorder %s3337_s20, 3 }
   0xc   : > { %s3421_s28 = scalar_select %p142_p7, %s3325_s17, %s144_s24  }
   0xd   : > { %p212_p10 = pnand %p2644_p6, %p211_p9 }
   0xf   : > { %215 = sbr.rel (%p212_p10) target bundleno = 549 (0x225), region = 36 }
  0x16   : > { %p252_p11 = scmp.lt.s32.totalorder %s3329_s18, 1  ;;  %v3207_v0 = vld [vmem:[%s4887_s1 + $0x40] sm:$0xff]   ;;  %v3210_v2 = vld [vmem:[%s4887_s1 + $0x48] sm:$0xff]   ;;  %v3213_v4 = vld [vmem:[%s4887_s1 + $0x50] sm:$0xff]   ;;  %vm473_vm0 = vsmask.f32 7424 }
  0x17   : > { %3093 = vmatprep.subr.bf16.mxu1 %v3207_v0  ;;  %v3208_v1 = vld [vmem:[%s4887_s1] sm:$0xff]   ;;  %2809 = vmatprep.subr.bf16.mxu0 %v3207_v0  ;;  %v3211_v3 = vld [vmem:[%s4887_s1 + $0x8] sm:$0xff]   ;;  %v3214_v5 = vld [vmem:[%s4887_s1 + $0x10] sm:$0xff]   ;;  %s3339_s7 = smov 64   ;;  %vm746_vm1 = vcmask 1046528   ;;  %vm915_vm2 = vcmask 523264  }
  0x18   : > { %s3428_s5 = scalar_select %p252_p11, %s3329_s18, 1  ;;  %3101 = vmatpush3.bf16.msra.mxu1 %v3208_v1  ;;  %2810 = vmatpush3.bf16.msra.mxu0 %v3208_v1  ;;  %v3215_v16 = vld [vmem:[%s4887_s1 + $0x58] sm:$0xff]   ;;  %vm1959_vm3 = vsmask.f32 3328  ;;  %vm1960_vm4 = vsmask.f32 7440 }
  0x19   : > { %3094 = vmatprep.subr.bf16.mxu1 %v3210_v2  ;;  %2811 = vmatprep.subr.bf16.mxu0 %v3210_v2  ;;  %v3216_v1 = vld [vmem:[%s4887_s1 + $0x18] sm:$0xff]   ;;  %vm4235_vm5 = vmor %vm1959_vm3, %vm1960_vm4  ;;  %s249_s29 = sand.u32 1, %s3321_s16  }
  0x1a   : > { %s3109_s10 = smul.u32 216, %s3428_s5  ;;  %s4540_s30 = sshll.u32 %s249_s29, 8 }
  0x1b   : > { %s4568_s6 = scalar_lea.vmem [#allocation2], %s4540_s30 }
  0x1c   : > { %s3448_s24 = scalar_lea.vmem %s4886_s0, %s3109_s10  ;;  %3102 = vmatpush3.bf16.msra.mxu1 %v3211_v3  ;;  %2812 = vmatpush3.bf16.msra.mxu0 %v3211_v3  ;;  %s4199_s26 = scalar_lea.vmem %s4889_s3, %s3109_s10 }
  0x1d   : > { %v299_v6 = vld [vmem:[%s3448_s24 + $0x9c] sm:$0xf]  ;;  %v3455_v7 = vld [vmem:[%s3448_s24 + $0xa0] sm:$0xf]  ;;  %v275_v8 = vld [vmem:[%s3448_s24 + $0xc] sm:$0xf]  ;;  %3095 = vmatprep.subr.bf16.mxu1 %v3213_v4  ;;  %2813 = vmatprep.subr.bf16.mxu0 %v3213_v4 }
  0x1e   : > { %v3459_v9 = vcombine.low %v299_v6, %v3455_v7  ;;  %v3462_v10 = vld [vmem:[%s3448_s24 + $0x10] sm:$0xf]  ;;  %v3466_v12 = vld [vmem:[%s3448_s24 + $0x94] sm:$0xf]  ;;  %v273_v17 = vld [vmem:[%s3448_s24] sm:$0xf] }
  0x1f   : > { %v297_v11 = vld [vmem:[%s3448_s24 + $0x90] sm:$0xf]  ;;  %v3469_v13 = vcombine.low %v275_v8, %v3462_v10  ;;  %v3475_v15 = vld [vmem:[%s3448_s24 + $0x98] ss:$0 sps:$4 sm:$0x11]   ;;  %s2521_s11 = sshll.u32 %s4568_s6, 4  ;;  %s4830_s11 = int_to_ptr.vmem [resolvable:$true] %s2521_s11 }
  0x20   : > { %v3472_v14 = vcombine.low %v297_v11, %v3466_v12  ;;  %824 = vrot.lane.b32.xlu0 %v3459_v9, %s3339_s7  ;;  %v3484_v18 = vld [vmem:[%s3448_s24 + $0x4] sm:$0xf]  ;;  %v626_v21 = vshll.u32 %v3475_v15, 16  ;;  %v3495_v23 = vld [vmem:[%s3448_s24 + $0x8] ss:$0 sps:$4 sm:$0x11]   ;;  %3103 = vmatpush3.bf16.msra.mxu1 %v3214_v5 }
  0x21   : > { %800 = vrot.lane.b32.xlu1 %v3469_v13, %s3339_s7  ;;  %v3492_v22 = vcombine.low %v273_v17, %v3484_v18  ;;  %v301_v24 = vld [vmem:[%s3448_s24 + $0xa8] sm:$0xf]  ;;  %v3499_v25 = vld [vmem:[%s3448_s24 + $0xac] sm:$0xf]  ;;  %2814 = vmatpush3.bf16.msra.mxu0 %v3214_v5  ;;  %v277_v30 = vld [vmem:[%s3448_s24 + $0x18] sm:$0xf] }
  0x22   : > { %v619_v19 = vshrl.u32 %v3472_v14, 16  ;;  %v621_v20 = vshll.u32 %v3472_v14, 16  ;;  %v628_v27 = vrot.slane %v626_v21, 1  ;;  %3096 = vmatprep.subr.bf16.mxu1 %v3215_v16  ;;  %2815 = vmatprep.subr.bf16.mxu0 %v3215_v16  ;;  %v482_v31 = vshll.u32 %v3495_v23, 16  ;;  %v3511_v37 = vld [vmem:[%s3448_s24 + $0x1c] sm:$0xf] }
  0x23   : > { %v475_v28 = vshrl.u32 %v3492_v22, 16  ;;  %v477_v29 = vshll.u32 %v3492_v22, 16  ;;  %v3506_v32 = vld [vmem:[%s3448_s24 + $0xa4] ss:$0 sps:$4 sm:$0x11]   ;;  %v631_v33 = vshrl.u32 %v3459_v9, 16  ;;  %v3514_v39 = vcombine.low %v301_v24, %v3499_v25 }
  0x24   : > { %v623_v26 = vrot.slane %v621_v20, 1  ;;  %v633_v34 = vshll.u32 %v3459_v9, 16  ;;  %v484_v38 = vrot.slane %v482_v31, 1  ;;  %v638_v41 = vshll.u32 %v3506_v32, 16  ;;  %v303_v51 = vld [vmem:[%s3448_s24 + $0xb4] sm:$0xf]  ;;  %3104 = vmatpush3.bf16.msra.mxu1 %v3216_v1 }
  0x25   : > { %v479_v36 = vrot.slane %v477_v29, 1  ;;  %v3518_v42 = vld [vmem:[%s3448_s24 + $0x14] ss:$0 sps:$4 sm:$0x11]   ;;  %v487_v45 = vshrl.u32 %v3469_v13, 16  ;;  %v489_v46 = vshll.u32 %v3469_v13, 16  ;;  %v3528_v49 = vcombine.low %v277_v30, %v3511_v37  ;;  %2816 = vmatpush3.bf16.msra.mxu0 %v3216_v1 }
  0x26   : > { %v624_v35 = vor.u32 %v623_v26, %v619_v19  ;;  %v635_v40 = vrot.slane %v633_v34, 1  ;;  %v640_v48 = vrot.slane %v638_v41, 1  ;;  %v494_v50 = vshll.u32 %v3518_v42, 16  ;;  %v3533_v52 = vld [vmem:[%s3448_s24 + $0xb8] sm:$0xf]  ;;  %s3259_s21 = scalar_lea.vmem %s4830_s11, 4096 }
  0x27   : > { %v480_v44 = vor.u32 %v479_v36, %v475_v28  ;;  %v491_v54 = vrot.slane %v489_v46, 1  ;;  %v3537_v55 = vld [vmem:[%s3448_s24 + $0xb0] ss:$0 sps:$4 sm:$0x11]   ;;  %v645_v56 = vshll.u32 %v3514_v39, 16  ;;  %v643_v58 = vshrl.u32 %v3514_v39, 16  ;;  %p3260_p12 = scmp.ne.s32.totalorder %s4830_s11, %s3259_s21 }
  0x28   : > { %v3521_v43 = vsel %vm473_vm0, %v624_v35, %v628_v27  ;;  %v636_v47 = vor.u32 %v635_v40, %v631_v33  ;;  %v496_v57 = vrot.slane %v494_v50, 1  ;;  %v501_v59 = vshll.u32 %v3528_v49, 16  ;;  %v3548_v0 = vld [vmem:[%s3448_s24 + $0x20] ss:$0 sps:$4 sm:$0x11]  }
  0x29   : > { %4898 = vst [vmem:[#allocation5_spill] sm:$0xff] %v3521_v43  ;;  %690 = vrot.lane.b32.xlu0 %v3521_v43, %s3339_s7  ;;  %v485_v53 = vsel %vm473_vm0, %v480_v44, %v484_v38  ;;  %v492_v61 = vor.u32 %v491_v54, %v487_v45  ;;  %v647_v62 = vrot.slane %v645_v56, 1  ;;  %v650_v63 = vshll.u32 %v3537_v55, 16  ;;  %v279_v3 = vld [vmem:[%s3448_s24 + $0x24] sm:$0xf]  ;;  %p3261_p13 = pnand %p3260_p12, %p3408_p4 }
  0x2a   : > { %666 = vrot.lane.b32.xlu1 %v485_v53, %s3339_s7  ;;  %v3544_v60 = vsel %vm473_vm0, %v636_v47, %v640_v48  ;;  %v3556_v2 = vcombine.low %v303_v51, %v3533_v52  ;;  %v3562_v5 = vld [vmem:[%s3448_s24 + $0x28] sm:$0xf]  ;;  %v499_v6 = vshrl.u32 %v3528_v49, 16  ;;  %v503_v8 = vrot.slane %v501_v59, 1  ;;  %v281_v24 = vld [vmem:[%s3448_s24 + $0x30] sm:$0xf] }
  0x2b   : > { %4899 = vst [vmem:[#allocation6_spill] sm:$0xff] %v3544_v60  ;;  %v652_v4 = vrot.slane %v650_v63, 1  ;;  %v506_v11 = vshll.u32 %v3548_v0, 16  ;;  %v3567_v16 = vsel %vm473_vm0, %v492_v61, %v496_v57  ;;  %v648_v17 = vor.u32 %v647_v62, %v643_v58  ;;  %v3570_v19 = vld [vmem:[%s3448_s24 + $0xbc] ss:$0 sps:$4 sm:$0x11]   ;;  %p3262_p0 = pneg %p3261_p13 }
  0x2c   : > { %v657_v20 = vshll.u32 %v3556_v2, 16  ;;  %v3576_v21 = vcombine.low %v279_v3, %v3562_v5  ;;  %v504_v26 = vor.u32 %v503_v8, %v499_v6  ;;  %v655_v28 = vshrl.u32 %v3556_v2, 16  ;;  %v3583_v29 = vld [vmem:[%s3448_s24 + $0x34] sm:$0xf]  ;;  %v305_v36 = vld [vmem:[%s3448_s24 + $0xc0] sm:$0xf] }
  0x2d   : > { %826 = vrot.lane.b32.xlu0 %v3514_v39, %s3339_s7  ;;  %v508_v27 = vrot.slane %v506_v11, 1  ;;  %v3586_v30 = vsel %vm473_vm0, %v648_v17, %v652_v4  ;;  %v662_v33 = vshll.u32 %v3570_v19, 16  ;;  %v3590_v34 = vld [vmem:[%s3448_s24 + $0x2c] ss:$0 sps:$4 sm:$0x11]   ;;  %v3605_v41 = vcombine.low %v281_v24, %v3583_v29  ;;  %v3219_v4 = vld [vmem:[%s4887_s1 + $0x20] sm:$0xff]  }
  0x2e   : > { %692 = vrot.lane.b32.xlu1 %v3544_v60, %s3339_s7  ;;  %4900 = vst [vmem:[#allocation7_spill] sm:$0xff] %v3586_v30  ;;  %v659_v31 = vrot.slane %v657_v20, 1  ;;  %v513_v35 = vshll.u32 %v3576_v21, 16  ;;  %v3597_v38 = vld [vmem:[%s3448_s24 + $0xc4] sm:$0xf]  ;;  %v511_v44 = vshrl.u32 %v3576_v21, 16 }
  0x2f   : > { %v3602_v40 = vsel %vm473_vm0, %v504_v26, %v508_v27  ;;  %v328_v45 = vld [vmem:[%s3448_s24 + $0xc] sm:$0xe]  ;;  %v664_v47 = vrot.slane %v662_v33, 1  ;;  %v518_v50 = vshll.u32 %v3590_v34, 16  ;;  %v3613_v51 = vcombine.low %v305_v36, %v3597_v38  ;;  %v283_v53 = vld [vmem:[%s3448_s24 + $0x3c] sm:$0xf] }
  0x30   : > { %v660_v46 = vor.u32 %v659_v31, %v655_v28  ;;  %v515_v48 = vrot.slane %v513_v35, 1  ;;  %v2681_v54 = vcombine.low %v328_v45, %v3462_v10  ;;  %v3618_v56 = vld [vmem:[%s3448_s24 + $0x40] sm:$0xf]  ;;  %v3621_v57 = vld [vmem:[%s3448_s24 + $0x38] ss:$0 sps:$4 sm:$0x11]  }
  0x31   : > { %802 = vrot.lane.b32.xlu0 %v3528_v49, %s3339_s7  ;;  %v525_v58 = vshll.u32 %v3605_v41, 16  ;;  %v520_v62 = vrot.slane %v518_v50, 1  ;;  %v329_v63 = vld [vmem:[%s3448_s24 + $0x18] sm:$0xe]  ;;  %v3218_v10 = vld [vmem:[%s4887_s1 + $0x60] sm:$0xff]   ;;  %v751_v1 = vrot.slane %v3518_v42, 1  ;;  %v3637_v3 = vcombine.low %v283_v53, %v3618_v56 }
  0x32   : > { %668 = vrot.lane.b32.xlu1 %v3567_v16, %s3339_s7  ;;  %v3627_v59 = vsel %vm473_vm0, %v660_v46, %v664_v47  ;;  %v516_v61 = vor.u32 %v515_v48, %v511_v44  ;;  %v750_v6 = vrot.slane %v2681_v54, 1  ;;  %v523_v8 = vshrl.u32 %v3605_v41, 16  ;;  %3097 = vmatprep.subr.bf16.mxu1 %v3218_v10  ;;  %v285_v20 = vld [vmem:[%s3448_s24 + $0x48] sm:$0xf]  ;;  %v3649_v24 = vld [vmem:[%s3448_s24 + $0x4c] sm:$0xf] }
  0x33   : > { %4901 = vst [vmem:[#allocation8_spill] sm:$0xff] %v3627_v59  ;;  %v527_v11 = vrot.slane %v525_v58, 1  ;;  %v530_v17 = vshll.u32 %v3621_v57, 16  ;;  %2817 = vmatprep.subr.bf16.mxu0 %v3218_v10  ;;  %v2682_v42 = vcombine.low %v329_v63, %v3511_v37  ;;  %3105 = vmatpush3.bf16.msra.mxu1 %v3219_v4  ;;  %v3655_v27 = vld [vmem:[%s3448_s24 + $0x44] ss:$0 sps:$4 sm:$0x11]   ;;  %v3678_v50 = vcombine.low %v285_v20, %v3649_v24 }
  0x34   : > { %v3652_v26 = vsel %vm473_vm0, %v516_v61, %v520_v62  ;;  %v537_v28 = vshll.u32 %v3637_v3, 16  ;;  %2818 = vmatpush3.bf16.msra.mxu0 %v3219_v4  ;;  %v3220_v31 = vld [vmem:[%s4887_s1 + $0x68] sm:$0xff]   ;;  %v330_v37 = vld [vmem:[%s3448_s24 + $0x24] sm:$0xe]  ;;  %v3668_v35 = vsel %vm746_vm1, %v750_v6, %v751_v1  ;;  %v754_v45 = vrot.slane %v3548_v0, 1  ;;  %v3223_v63 = vld [vmem:[%s4887_s1 + $0x70] sm:$0xff]  }
  0x35   : > { %828 = vrot.lane.b32.xlu0 %v3556_v2, %s3339_s7  ;;  %v3221_v33 = vld [vmem:[%s4887_s1 + $0x28] sm:$0xff]   ;;  %v528_v36 = vor.u32 %v527_v11, %v523_v8  ;;  %v532_v44 = vrot.slane %v530_v17, 1  ;;  %v287_v46 = vld [vmem:[%s3448_s24 + $0x54] sm:$0xf]  ;;  %v3673_v47 = vld [vmem:[%s3448_s24 + $0x58] sm:$0xf]  ;;  %3098 = vmatprep.subr.bf16.mxu1 %v3220_v31  ;;  %v2683_v61 = vcombine.low %v330_v37, %v3562_v5 }
  0x36   : > { %694 = vrot.lane.b32.xlu1 %v3586_v30, %s3339_s7  ;;  %2819 = vmatprep.subr.bf16.mxu0 %v3220_v31  ;;  %v753_v48 = vrot.slane %v2682_v42, 1  ;;  %v3681_v53 = vld [vmem:[%s3448_s24 + $0x50] ss:$0 sps:$4 sm:$0x11]   ;;  %v535_v54 = vshrl.u32 %v3637_v3, 16  ;;  %v539_v58 = vrot.slane %v537_v28, 1  ;;  %v3700_v4 = vcombine.low %v287_v46, %v3673_v47 }
  0x37   : > { %3106 = vmatpush3.bf16.msra.mxu1 %v3221_v33  ;;  %v542_v0 = vshll.u32 %v3655_v27, 16  ;;  %v331_v62 = vld [vmem:[%s3448_s24 + $0x30] sm:$0xe]  ;;  %v3693_v10 = vsel %vm473_vm0, %v528_v36, %v532_v44  ;;  %v549_v1 = vshll.u32 %v3678_v50, 16  ;;  %v757_v5 = vrot.slane %v3590_v34, 1  ;;  %v3229_v30 = vld [vmem:[%s4887_s1 + $0xc0] sm:$0xff]  }
  0x38   : > { %2820 = vmatpush3.bf16.msra.mxu0 %v3221_v33  ;;  %3099 = vmatprep.subr.bf16.mxu1 %v3223_v63  ;;  %v554_v6 = vshll.u32 %v3681_v53, 16  ;;  %v2684_v8 = vcombine.low %v331_v62, %v3583_v29  ;;  %v3705_v11 = vld [vmem:[%s3448_s24 + $0x5c] ss:$0 sps:$4 sm:$0x11]   ;;  %v3708_v17 = vsel %vm746_vm1, %v753_v48, %v754_v45  ;;  %v540_v42 = vor.u32 %v539_v58, %v535_v54  ;;  %v289_v31 = vld [vmem:[%s3448_s24 + $0x60] sm:$0xf] }
  0x39   : > { %804 = vrot.lane.b32.xlu0 %v3576_v21, %s3339_s7  ;;  %2821 = vmatprep.subr.bf16.mxu0 %v3223_v63  ;;  %v544_v20 = vrot.slane %v542_v0, 1  ;;  %v756_v28 = vrot.slane %v2683_v61, 1  ;;  %v547_v34 = vshrl.u32 %v3678_v50, 16  ;;  %v3715_v37 = vld [vmem:[%s3448_s24 + $0x64] sm:$0xf]  ;;  %v561_v29 = vshll.u32 %v3700_v4, 16 }
  0x3a   : > { %670 = vrot.lane.b32.xlu1 %v3602_v40, %s3339_s7  ;;  %v551_v33 = vrot.slane %v549_v1, 1  ;;  %v760_v36 = vrot.slane %v3621_v57, 1  ;;  %v556_v44 = vrot.slane %v554_v6, 1  ;;  %v759_v45 = vrot.slane %v2684_v8, 1  ;;  %v3224_v54 = vld [vmem:[%s4887_s1 + $0x30] sm:$0xff]  }
  0x3b   : > { %v559_v46 = vshrl.u32 %v3700_v4, 16  ;;  %v566_v48 = vshll.u32 %v3705_v11, 16  ;;  %v3727_v58 = vsel %vm473_vm0, %v540_v42, %v544_v20  ;;  %v3730_v0 = vcombine.low %v289_v31, %v3715_v37  ;;  %v3733_v57 = vld [vmem:[%s3448_s24 + $0x68] ss:$0 sps:$4 sm:$0x11]   ;;  %3107 = vmatpush3.bf16.msra.mxu1 %v3224_v54  ;;  %v3225_v42 = vld [vmem:[%s4887_s1 + $0x78] sm:$0xff]  }
  0x3c   : > { %v563_v61 = vrot.slane %v561_v29, 1  ;;  %v332_v62 = vld [vmem:[%s3448_s24 + $0x3c] sm:$0xe]  ;;  %v763_v63 = vrot.slane %v3655_v27, 1  ;;  %v3740_v1 = vsel %vm746_vm1, %v756_v28, %v757_v5  ;;  %v552_v6 = vor.u32 %v551_v33, %v547_v34  ;;  %2822 = vmatpush3.bf16.msra.mxu0 %v3224_v54  ;;  %3100 = vmatprep.subr.bf16.mxu1 %v3225_v42  ;;  %v291_v5 = vld [vmem:[%s3448_s24 + $0x6c] sm:$0xf] }
  0x3d   : > { %830 = vrot.lane.b32.xlu0 %v3613_v51, %s3339_s7  ;;  %v571_v8 = vshrl.u32 %v3730_v0, 16  ;;  %v568_v20 = vrot.slane %v566_v48, 1  ;;  %v573_v27 = vshll.u32 %v3730_v0, 16  ;;  %2823 = vmatprep.subr.bf16.mxu0 %v3225_v42  ;;  %v3753_v28 = vld [vmem:[%s3448_s24 + $0x70] sm:$0xf]  ;;  %v2685_v31 = vcombine.low %v332_v62, %v3618_v56  ;;  %v3226_v48 = vld [vmem:[%s4887_s1 + $0x38] sm:$0xff]  }
  0x3e   : > { %696 = vrot.lane.b32.xlu1 %v3627_v59, %s3339_s7  ;;  %v3756_v34 = vsel %vm473_vm0, %v552_v6, %v556_v44  ;;  %v578_v29 = vshll.u32 %v3733_v57, 16  ;;  %v333_v33 = vld [vmem:[%s3448_s24 + $0x48] sm:$0xe]  ;;  %v339_v54 = vld [vmem:[%s3448_s24 + $0x90] sm:$0xe]  ;;  %v784_v44 = vrot.slane %v3475_v15, 1  ;;  %v3773_v6 = vsel %vm746_vm1, %v759_v45, %v760_v36 }
  0x3f   : > { %v3768_v42 = vld [vmem:[%s3448_s24 + $0x74] ss:$0 sps:$4 sm:$0x11]   ;;  %v2692_v59 = vcombine.low %v339_v54, %v3466_v12  ;;  %v564_v56 = vor.u32 %v563_v61, %v559_v46  ;;  %v575_v62 = vrot.slane %v573_v27, 1  ;;  %3108 = vmatpush3.bf16.msra.mxu1 %v3226_v48  ;;  %v327_v60 = vld [vmem:[%s3448_s24] sm:$0xe]  ;;  %v3784_v46 = vcombine.low %v291_v5, %v3753_v28 }
  0x40   : > { %2824 = vmatpush3.bf16.msra.mxu0 %v3226_v48  ;;  %v2680_v15 = vcombine.low %v327_v60, %v3484_v18  ;;  %v748_v36 = vrot.slane %v3495_v23, 1  ;;  %v762_v45 = vrot.slane %v2685_v31, 1  ;;  %v580_v61 = vrot.slane %v578_v29, 1  ;;  %2921 = vmatprep.subr.bf16.mxu1 %v3229_v30  ;;  %v293_v48 = vld [vmem:[%s3448_s24 + $0x78] sm:$0xf]  ;;  %v3800_v60 = vld [vmem:[%s4887_s1 + $0x100] sm:$0xff]  }
  0x41   : > { %806 = vrot.lane.b32.xlu0 %v3605_v41, %s3339_s7  ;;  %v783_v12 = vrot.slane %v2692_v59, 1  ;;  %v2686_v27 = vcombine.low %v333_v33, %v3649_v24  ;;  %v3791_v54 = vld [vmem:[%s3448_s24 + $0x7c] sm:$0xf]  ;;  %v334_v59 = vld [vmem:[%s3448_s24 + $0x54] sm:$0xe]  ;;  %v3803_v30 = vsel %vm473_vm0, %v564_v56, %v568_v20  ;;  %v585_v5 = vshll.u32 %v3784_v46, 16  ;;  %3053 = vmatprep.subr.bf16.mxu0 %v3800_v60 }
  0x42   : > { %672 = vrot.lane.b32.xlu1 %v3652_v26, %s3339_s7  ;;  %v747_v23 = vrot.slane %v2680_v15, 1  ;;  %4902 = vst [vmem:[#allocation9_spill] sm:$0xff] %v3803_v30  ;;  %v590_v24 = vshll.u32 %v3768_v42, 16  ;;  %v576_v31 = vor.u32 %v575_v62, %v571_v8  ;;  %v340_v33 = vld [vmem:[%s3448_s24 + $0x9c] sm:$0xe]  ;;  %v766_v20 = vrot.slane %v3681_v53, 1 }
  0x43   : > { %v3795_v18 = vsel %vm746_vm1, %v783_v12, %v784_v44  ;;  %v3815_v44 = vsel %vm746_vm1, %v762_v45, %v763_v63  ;;  %v2693_v56 = vcombine.low %v340_v33, %v3455_v7  ;;  %v787_v12 = vrot.slane %v3506_v32, 1  ;;  %v3824_v15 = vld [vmem:[%s3448_s24 + $0x80] ss:$0 sps:$4 sm:$0x11]   ;;  %v295_v45 = vld [vmem:[%s3448_s24 + $0x84] sm:$0xf] }
  0x44   : > { %v3810_v29 = vsel %vm746_vm1, %v747_v23, %v748_v36  ;;  %v765_v8 = vrot.slane %v2686_v27, 1  ;;  %v583_v62 = vshrl.u32 %v3784_v46, 16  ;;  %v3827_v36 = vcombine.low %v293_v48, %v3791_v54  ;;  %v3832_v7 = vld [vmem:[%s3448_s24 + $0x88] sm:$0xf] }
  0x45   : > { %853 = vrot.lane.b32.xlu0 %v3668_v35, %s3339_s7  ;;  %v587_v63 = vrot.slane %v585_v5, 1  ;;  %v2687_v53 = vcombine.low %v334_v59, %v3673_v47  ;;  %v786_v23 = vrot.slane %v2693_v56, 1  ;;  %v3837_v32 = vsel %vm473_vm0, %v576_v31, %v580_v61  ;;  %v341_v48 = vld [vmem:[%s3448_s24 + $0xa8] sm:$0xe]  ;;  %v335_v61 = vld [vmem:[%s3448_s24 + $0x60] sm:$0xe] }
  0x46   : > { %808 = vrot.lane.b32.xlu1 %v3637_v3, %s3339_s7  ;;  %v592_v27 = vrot.slane %v590_v24, 1  ;;  %v769_v33 = vrot.slane %v3705_v11, 1  ;;  %v597_v43 = vshll.u32 %v3827_v36, 16  ;;  %v2694_v59 = vcombine.low %v341_v48, %v3499_v25 }
  0x47   : > { %v3843_v47 = vsel %vm746_vm1, %v786_v23, %v787_v12  ;;  %v790_v5 = vrot.slane %v3537_v55, 1  ;;  %v3851_v24 = vsel %vm746_vm1, %v765_v8, %v766_v20  ;;  %v588_v11 = vor.u32 %v587_v63, %v583_v62  ;;  %v342_v23 = vld [vmem:[%s3448_s24 + $0xb4] sm:$0xe] }
  0x48   : > { %v768_v31 = vrot.slane %v2687_v53, 1  ;;  %v789_v56 = vrot.slane %v2694_v59, 1  ;;  %v3856_v12 = vcombine.low %v295_v45, %v3832_v7  ;;  %v595_v25 = vshrl.u32 %v3827_v36, 16 }
  0x49   : > { %674 = vrot.lane.b32.xlu0 %v3693_v10, %s3339_s7  ;;  %v602_v55 = vshll.u32 %v3824_v15, 16  ;;  %v599_v48 = vrot.slane %v597_v43, 1  ;;  %v2695_v8 = vcombine.low %v342_v23, %v3533_v52  ;;  %v793_v62 = vrot.slane %v3570_v19, 1 }
  0x4a   : > { %855 = vrot.lane.b32.xlu1 %v3708_v17, %s3339_s7  ;;  %v3863_v20 = vsel %vm746_vm1, %v789_v56, %v790_v5  ;;  %v3870_v63 = vsel %vm473_vm0, %v588_v11, %v592_v27  ;;  %v2688_v53 = vcombine.low %v335_v61, %v3715_v37  ;;  %v609_v43 = vshll.u32 %v3856_v12, 16  ;;  %v336_v27 = vld [vmem:[%s3448_s24 + $0x6c] sm:$0xe] }
  0x4b   : > { %v792_v45 = vrot.slane %v2695_v8, 1  ;;  %v604_v59 = vrot.slane %v602_v55, 1  ;;  %v3877_v52 = vsel %vm746_vm1, %v768_v31, %v769_v33  ;;  %v600_v19 = vor.u32 %v599_v48, %v595_v25  ;;  %v337_v33 = vld [vmem:[%s3448_s24 + $0x78] sm:$0xe] }
  0x4c   : > { %v772_v37 = vrot.slane %v3733_v57, 1  ;;  %v771_v61 = vrot.slane %v2688_v53, 1  ;;  %v607_v11 = vshrl.u32 %v3856_v12, 16  ;;  %v611_v56 = vrot.slane %v609_v43, 1  ;;  %v338_v57 = vld [vmem:[%s3448_s24 + $0x84] sm:$0xe] }
  0x4d   : > { %810 = vrot.lane.b32.xlu0 %v3678_v50, %s3339_s7  ;;  %v3880_v5 = vsel %vm746_vm1, %v792_v45, %v793_v62  ;;  %v3891_v31 = vsel %vm473_vm0, %v600_v19, %v604_v59  ;;  %v2689_v25 = vcombine.low %v336_v27, %v3753_v28  ;;  %v2690_v62 = vcombine.low %v337_v33, %v3791_v54  ;;  %v307_v45 = vld [vmem:[%s3448_s24 + $0xcc] sm:$0xf]  ;;  %v3909_v59 = vld [vmem:[%s3448_s24 + $0xd0] sm:$0xf] }
  0x4e   : > { %676 = vrot.lane.b32.xlu1 %v3727_v58, %s3339_s7  ;;  %v3898_v55 = vsel %vm746_vm1, %v771_v61, %v772_v37  ;;  %v612_v48 = vor.u32 %v611_v56, %v607_v11  ;;  %v775_v43 = vrot.slane %v3768_v42, 1  ;;  %v2691_v28 = vcombine.low %v338_v57, %v3832_v7  ;;  %v3249_v11 = vld [vmem:[%s3448_s24 + $0xc8] ss:$0 sps:$4 sm:$0x11]  }
  0x4f   : > { %v774_v53 = vrot.slane %v2689_v25, 1  ;;  %v777_v37 = vrot.slane %v2690_v62, 1  ;;  %v778_v54 = vrot.slane %v3824_v15, 1  ;;  %v838_v42 = vshll.u32 %v3613_v51, 16  ;;  %v343_v62 = vld [vmem:[%s3448_s24 + $0xc0] sm:$0xe] }
  0x50   : > { %v780_v27 = vrot.slane %v2691_v28, 1  ;;  %v3923_v56 = vcombine.low %v307_v45, %v3909_v59  ;;  %v3937_v57 = vld [vmem:[%s3448_s24 + $0xd4] ss:$0 sps:$4 sm:$0x11]  }
  0x51   : > { %857 = vrot.lane.b32.xlu0 %v3740_v1, %s3339_s7  ;;  %v3919_v7 = vsel %vm746_vm1, %v774_v53, %v775_v43  ;;  %v3928_v15 = vsel %vm746_vm1, %v777_v37, %v778_v54  ;;  %v840_v33 = vrot.slane %v838_v42, 1  ;;  %v901_v45 = vshll.u32 %v3937_v57, 16 }
  0x52   : > { %812 = vrot.lane.b32.xlu1 %v3700_v4, %s3339_s7  ;;  %v894_v43 = vshrl.u32 %v3923_v56, 16  ;;  %v2698_v37 = vcombine.low %v343_v62, %v3597_v38  ;;  %v3231_v62 = vld [vmem:[%s4887_s1 + $0x80] sm:$0xff]  }
  0x55   : > { %678 = vrot.lane.b32.xlu0 %v3756_v34, %s3339_s7 }
  0x56   : > { %859 = vrot.lane.b32.xlu1 %v3773_v6, %s3339_s7 }
  0x59   : > { %814 = vrot.lane.b32.xlu0 %v3730_v0, %s3339_s7 }
  0x5a   : > { %680 = vrot.lane.b32.xlu1 %v3803_v30, %s3339_s7  ;;  %v3212_v30 = vld [vmem:[%s3448_s24 + $0x8c] ss:$0 sps:$4 sm:$0x11]  }
  0x5b   : > { %v614_v23 = vshll.u32 %v3212_v30, 16  ;;  %v781_v61 = vrot.slane %v3212_v30, 1  ;;  %v843_v30 = vshll.u32 %v3249_v11, 16 }
  0x5d   : > { %861 = vrot.lane.b32.xlu0 %v3815_v44, %s3339_s7  ;;  %v616_v8 = vrot.slane %v614_v23, 1  ;;  %v836_v23 = vshrl.u32 %v3613_v51, 16  ;;  %v3934_v25 = vsel %vm746_vm1, %v780_v27, %v781_v61  ;;  %v845_v53 = vrot.slane %v843_v30, 1 }
  0x5e   : > { %816 = vrot.lane.b32.xlu1 %v3784_v46, %s3339_s7  ;;  %v903_v27 = vrot.slane %v901_v45, 1  ;;  %v850_v61 = vrot.slane %v2698_v37, 1 }
  0x5f   : > { %v3912_v19 = vsel %vm473_vm0, %v612_v48, %v616_v8  ;;  %v896_v48 = vshll.u32 %v3923_v56, 16  ;;  %v841_v8 = vor.u32 %v840_v33, %v836_v23  ;;  %v851_v23 = vrot.slane %v3249_v11, 1 }
  0x61   : > { %682 = vrot.lane.b32.xlu0 %v3837_v32, %s3339_s7  ;;  %v898_v28 = vrot.slane %v896_v48, 1  ;;  %v3953_v54 = vsel %vm473_vm0, %v841_v8, %v845_v53  ;;  %v3963_v38 = vsel %vm746_vm1, %v850_v61, %v851_v23 }
  0x62   : > { %863 = vrot.lane.b32.xlu1 %v3851_v24, %s3339_s7 }
  0x63   : > { %v899_v42 = vor.u32 %v898_v28, %v894_v43  ;;  %v3232_v43 = vld [vmem:[%s4887_s1 + $0xc8] sm:$0xff]  }
  0x65   : > { %818 = vrot.lane.b32.xlu0 %v3827_v36, %s3339_s7  ;;  %v904_v33 = vsel %vm473_vm0, %v899_v42, %v903_v27  ;;  %v3234_v42 = vld [vmem:[%s4887_s1 + $0x88] sm:$0xff]  }
  0x66   : > { %684 = vrot.lane.b32.xlu1 %v3870_v63, %s3339_s7 }
  0x69   : > { %865 = vrot.lane.b32.xlu0 %v3877_v52, %s3339_s7 }
  0x6a   : > { %820 = vrot.lane.b32.xlu1 %v3856_v12, %s3339_s7 }
  0x6d   : > { %686 = vrot.lane.b32.xlu0 %v3891_v31, %s3339_s7 }
  0x6e   : > { %867 = vrot.lane.b32.xlu1 %v3898_v55, %s3339_s7 }
  0x71   : > { %822 = vrot.lane.b32.xlu0 %v3472_v14, %s3339_s7 }
  0x72   : > { %688 = vrot.lane.b32.xlu1 %v3912_v19, %s3339_s7 }
  0x75   : > { %869 = vrot.lane.b32.xlu0 %v3919_v7, %s3339_s7 }
  0x76   : > { %871 = vrot.lane.b32.xlu1 %v3928_v15, %s3339_s7 }
  0x79   : > { %873 = vrot.lane.b32.xlu0 %v3934_v25, %s3339_s7 }
  0x7a   : > { %875 = vrot.lane.b32.xlu1 %v3795_v18, %s3339_s7 }
  0x7d   : > { %877 = vrot.lane.b32.xlu0 %v3843_v47, %s3339_s7 }
  0x7e   : > { %879 = vrot.lane.b32.xlu1 %v3863_v20, %s3339_s7 }
  0x81   : > { %905 = vrot.lane.b32.xlu0 %v3953_v54, %s3339_s7 }
  0x82   : > { %881 = vrot.lane.b32.xlu1 %v3880_v5, %s3339_s7 }
  0x85   : > { %907 = vrot.lane.b32.xlu0 %v904_v33, %s3339_s7  ;;  %v3237_v33 = vld [vmem:[%s4887_s1 + $0x90] sm:$0xff]  }
  0x86   : > { %883 = vrot.lane.b32.xlu1 %v3963_v38, %s3339_s7  ;;  %s2808_s7 = sshll.u32 %s3329_s18, 12  ;;  %s4840_s18 = scalar_lea.sflag [#allocation3], %s249_s29 }
  0x87   : > { %s4828_s14 = scalar_lea.hbm %s4890_s4, %s2808_s7 }
  0x92   : > { %v825_v30 = vpop.permute.xlu0 %824 }
  0x93   : > { %v801_v48 = vpop.permute.xlu1 %800  ;;  %v1014_v11 = vsel %vm915_vm2, %v3795_v18, %v825_v30  ;;  %v3255_v30 = vld [vmem:[%s4887_s1 + $0x110] sm:$0xff]  }
  0x94   : > { %1555 = vmatprep.mubr.bf16.mxu1 %v1014_v11  ;;  %v966_v8 = vsel %vm915_vm2, %v3810_v29, %v801_v48  ;;  %v3250_v29 = vld [vmem:[%s4887_s1 + $0x108] sm:$0xff]   ;;  %v3238_v48 = vld [vmem:[%s4887_s1 + $0xd8] sm:$0xff]  }
  0x95   : > { %1459 = vmatprep.mubr.bf16.mxu0 %v966_v8  ;;  %v3256_v8 = vld [vmem:[%s4887_s1 + $0x118] sm:$0xff]  }
  0x9b   : > { %v691_v53 = vpop.permute.xlu0 %690 }
  0x9c   : > { %v3980_v28 = vsel %vm915_vm2, %v3472_v14, %v691_v53  ;;  %v667_v45 = vpop.permute.xlu1 %666  ;;  %v3236_v14 = vld [vmem:[%s4887_s1 + $0xd0] sm:$0xff]   ;;  %v3239_v53 = vld [vmem:[%s4887_s1 + $0x98] sm:$0xff]  }
  0x9d   : > { %1556 = vmatmul.mubr.bf16.vlgmr.msra.gmra.mrb[0].mxu1 %v3980_v28  ;;  %v917_v37 = vsel %vm915_vm2, %v3492_v22, %v667_v45 }
  0x9e   : > { %2922 = vmatpush3.bf16.msra.mxu1 %v3231_v62  ;;  %1460 = vmatmul.mubr.bf16.vlgmr.msra.gmra.mrb[0].mxu0 %v917_v37  ;;  %v3242_v37 = vld [vmem:[%s4887_s1 + $0xa0] sm:$0xff]  }
  0x9f   : > { %v827_v27 = vpop.permute.xlu0 %826  ;;  %2923 = vmatprep.subr.bf16.mxu1 %v3232_v43  ;;  %3054 = vmatpush3.bf16.msra.mxu0 %v3800_v60  ;;  %v3241_v43 = vld [vmem:[%s4887_s1 + $0xe0] sm:$0xff]  }
  0xa0   : > { %v1018_v61 = vsel %vm915_vm2, %v3843_v47, %v827_v27  ;;  %v693_v23 = vpop.permute.xlu1 %692  ;;  %3055 = vmatprep.subr.bf16.mxu0 %v3250_v29  ;;  %v3243_v27 = vld [vmem:[%s4887_s1 + $0xe8] sm:$0xff]  }
  0xa1   : > { %1563 = vmatprep.mubr.bf16.mxu1 %v1018_v61  ;;  %v3999_v22 = vsel %vm915_vm2, %v3459_v9, %v693_v23  ;;  %v3244_v23 = vld [vmem:[%s4887_s1 + $0xa8] sm:$0xff]  }
  0xa2   : > { %2924 = vmatpush3.bf16.msra.mxu1 %v3234_v42 }
  0xa3   : > { %v803_v60 = vpop.permute.xlu0 %802  ;;  %2925 = vmatprep.subr.bf16.mxu1 %v3236_v14  ;;  %3056 = vmatpush3.bf16.msra.mxu0 %v3250_v29 }
  0xa4   : > { %v970_v11 = vsel %vm915_vm2, %v3668_v35, %v803_v60  ;;  %v669_v9 = vpop.permute.xlu1 %668  ;;  %3057 = vmatprep.subr.bf16.mxu0 %v3255_v30 }
  0xa5   : > { %1467 = vmatprep.mubr.bf16.mxu0 %v970_v11  ;;  %1564 = vmatmul.mubr.bf16.gmra.mrb[4].mxu1 %v3999_v22  ;;  %v920_v62 = vsel %vm915_vm2, %v3469_v13, %v669_v9  ;;  %v3247_v11 = vld [vmem:[%s4887_s1 + $0xb0] sm:$0xff]  }
  0xa6   : > { %2926 = vmatpush3.bf16.msra.mxu1 %v3237_v33  ;;  %1468 = vmatmul.mubr.bf16.gmra.mrb[4].mxu0 %v920_v62 }
  0xa7   : > { %v829_v35 = vpop.permute.xlu0 %828  ;;  %2927 = vmatprep.subr.bf16.mxu1 %v3238_v48  ;;  %3058 = vmatpush3.bf16.msra.mxu0 %v3255_v30  ;;  %v3246_v30 = vld [vmem:[%s4887_s1 + $0xf0] sm:$0xff]  }
  0xa8   : > { %v1022_v45 = vsel %vm915_vm2, %v3863_v20, %v829_v35  ;;  %v695_v29 = vpop.permute.xlu1 %694  ;;  %3059 = vmatprep.subr.bf16.mxu0 %v3256_v8  ;;  %v3251_v35 = vld [vmem:[%s4887_s1 + $0xb8] sm:$0xff]  }
  0xa9   : > { %1571 = vmatprep.mubr.bf16.mxu1 %v1022_v45  ;;  %v4028_v13 = vsel %vm915_vm2, %v3514_v39, %v695_v29 }
  0xaa   : > { %2928 = vmatpush3.bf16.msra.mxu1 %v3239_v53 }
  0xab   : > { %v805_v42 = vpop.permute.xlu0 %804  ;;  %2929 = vmatprep.subr.bf16.mxu1 %v3241_v43  ;;  %3060 = vmatpush3.bf16.msra.mxu0 %v3256_v8  ;;  %v3248_v8 = vld [vmem:[%s4887_s1 + $0xf8] sm:$0xff]  }
  0xac   : > { %v974_v14 = vsel %vm915_vm2, %v3708_v17, %v805_v42  ;;  %v671_v61 = vpop.permute.xlu1 %670 }
  0xad   : > { %1475 = vmatprep.mubr.bf16.mxu0 %v974_v14  ;;  %1572 = vmatmul.mubr.bf16.gmra.mrb[8].mxu1 %v4028_v13  ;;  %v923_v39 = vsel %vm915_vm2, %v3528_v49, %v671_v61 }
  0xae   : > { %2930 = vmatpush3.bf16.msra.mxu1 %v3242_v37  ;;  %1476 = vmatmul.mubr.bf16.gmra.mrb[8].mxu0 %v923_v39 }
  0xaf   : > { %v831_v33 = vpop.permute.xlu0 %830  ;;  %2931 = vmatprep.subr.bf16.mxu1 %v3243_v27 }
  0xb0   : > { %v1026_v60 = vsel %vm915_vm2, %v3880_v5, %v831_v33  ;;  %v697_v48 = vpop.permute.xlu1 %696 }
  0xb1   : > { %1579 = vmatprep.mubr.bf16.mxu1 %v1026_v60  ;;  %v4051_v49 = vsel %vm915_vm2, %v3556_v2, %v697_v48 }
  0xb2   : > { %2932 = vmatpush3.bf16.msra.mxu1 %v3244_v23 }
  0xb3   : > { %v807_v9 = vpop.permute.xlu0 %806  ;;  %2933 = vmatprep.subr.bf16.mxu1 %v3246_v30 }
  0xb4   : > { %v978_v62 = vsel %vm915_vm2, %v3740_v1, %v807_v9  ;;  %v673_v53 = vpop.permute.xlu1 %672 }
  0xb5   : > { %1483 = vmatprep.mubr.bf16.mxu0 %v978_v62  ;;  %1580 = vmatmul.mubr.bf16.gmra.mrb[12].mxu1 %v4051_v49  ;;  %v926_v2 = vsel %vm915_vm2, %v3576_v21, %v673_v53 }
  0xb6   : > { %2934 = vmatpush3.bf16.msra.mxu1 %v3247_v11  ;;  %1620 = vmatprep.mubr.bf16.mxu1 %v923_v39 }
  0xb7   : > { %1484 = vmatmul.mubr.bf16.gmra.mrb[12].mxu0 %v926_v2  ;;  %2935 = vmatprep.subr.bf16.mxu1 %v3248_v8  ;;  %v854_v43 = vpop.permute.xlu0 %853 }
  0xb8   : > { %v809_v45 = vpop.permute.xlu1 %808  ;;  %v1030_v29 = vsel %vm915_vm2, %v3567_v16, %v854_v43 }
  0xb9   : > { %v982_v37 = vsel %vm915_vm2, %v3773_v6, %v809_v45 }
  0xba   : > { %2936 = vmatpush3.bf16.msra.mxu1 %v3251_v35  ;;  %1491 = vmatprep.mubr.bf16.mxu0 %v982_v37 }
  0xbb   : > { %v675_v42 = vpop.permute.xlu0 %674 }
  0xbc   : > { %v929_v21 = vsel %vm915_vm2, %v3605_v41, %v675_v42  ;;  %v856_v27 = vpop.permute.xlu1 %855 }
  0xbd   : > { %1621 = vmatmul.mubr.bf16.vlgmr.msra.gmra.mrb[16].mxu1 %v1030_v29  ;;  %v1034_v16 = vsel %vm915_vm2, %v3602_v40, %v856_v27 }
  0xbe   : > { %1628 = vmatprep.mubr.bf16.mxu1 %v926_v2 }
  0xbf   : > { %1492 = vmatmul.mubr.bf16.gmra.mrb[16].mxu0 %v929_v21  ;;  %v811_v14 = vpop.permute.xlu0 %810 }
  0xc0   : > { %v986_v61 = vsel %vm915_vm2, %v3815_v44, %v811_v14  ;;  %v677_v39 = vpop.permute.xlu1 %676 }
  0xc1   : > { %1499 = vmatprep.mubr.bf16.mxu0 %v986_v61  ;;  %v932_v33 = vsel %vm915_vm2, %v3637_v3, %v677_v39  ;;  %v4903_v61 = vld [vmem:[#allocation9_spill] sm:$0xff] }
  0xc3   : > { %v858_v23 = vpop.permute.xlu0 %857 }
  0xc4   : > { %v813_v30 = vpop.permute.xlu1 %812  ;;  %v1038_v11 = vsel %vm915_vm2, %v3652_v26, %v858_v23 }
  0xc5   : > { %1629 = vmatmul.mubr.bf16.gmra.mrb[20].mxu1 %v1034_v16  ;;  %v990_v41 = vsel %vm915_vm2, %v3851_v24, %v813_v30 }
  0xc6   : > { %1636 = vmatprep.mubr.bf16.mxu1 %v929_v21 }
  0xc7   : > { %1500 = vmatmul.mubr.bf16.gmra.mrb[20].mxu0 %v932_v33  ;;  %v679_v60 = vpop.permute.xlu0 %678 }
  0xc8   : > { %1507 = vmatprep.mubr.bf16.mxu0 %v990_v41  ;;  %v860_v48 = vpop.permute.xlu1 %859  ;;  %v935_v40 = vsel %vm915_vm2, %v3678_v50, %v679_v60 }
  0xc9   : > { %v1042_v53 = vsel %vm915_vm2, %v3693_v10, %v860_v48 }
  0xcb   : > { %v815_v9 = vpop.permute.xlu0 %814 }
  0xcc   : > { %v994_v3 = vsel %vm915_vm2, %v3877_v52, %v815_v9  ;;  %v681_v8 = vpop.permute.xlu1 %680 }
  0xcd   : > { %1637 = vmatmul.mubr.bf16.gmra.mrb[24].mxu1 %v1038_v11  ;;  %v938_v26 = vsel %vm915_vm2, %v3700_v4, %v681_v8 }
  0xce   : > { %1644 = vmatprep.mubr.bf16.mxu1 %v932_v33 }
  0xcf   : > { %1508 = vmatmul.mubr.bf16.gmra.mrb[24].mxu0 %v935_v40  ;;  %v862_v62 = vpop.permute.xlu0 %861 }
  0xd0   : > { %1515 = vmatprep.mubr.bf16.mxu0 %v994_v3  ;;  %v817_v2 = vpop.permute.xlu1 %816  ;;  %v1046_v45 = vsel %vm915_vm2, %v3727_v58, %v862_v62 }
  0xd1   : > { %v998_v50 = vsel %vm915_vm2, %v3898_v55, %v817_v2 }
  0xd3   : > { %v683_v35 = vpop.permute.xlu0 %682 }
  0xd4   : > { %v864_v43 = vpop.permute.xlu1 %863  ;;  %v941_v10 = vsel %vm915_vm2, %v3730_v0, %v683_v35 }
  0xd5   : > { %1645 = vmatmul.mubr.bf16.gmra.mrb[28].mxu1 %v1042_v53  ;;  %v1050_v21 = vsel %vm915_vm2, %v3756_v34, %v864_v43 }
  0xd6   : > { %1652 = vmatprep.mubr.bf16.mxu1 %v935_v40 }
  0xd7   : > { %1516 = vmatmul.mubr.bf16.gmra.mrb[28].mxu0 %v938_v26  ;;  %v819_v29 = vpop.permute.xlu0 %818 }
  0xd8   : > { %1523 = vmatprep.mubr.bf16.mxu0 %v998_v50  ;;  %v1002_v4 = vsel %vm915_vm2, %v3919_v7, %v819_v29  ;;  %v685_v37 = vpop.permute.xlu1 %684 }
  0xd9   : > { %v944_v58 = vsel %vm915_vm2, %v3784_v46, %v685_v37 }
  0xdb   : > { %v866_v42 = vpop.permute.xlu0 %865 }
  0xdc   : > { %v821_v27 = vpop.permute.xlu1 %820  ;;  %v1054_v39 = vsel %vm915_vm2, %v4903_v61, %v866_v42 }
  0xdd   : > { %1653 = vmatmul.mubr.bf16.gmra.mrb[32].mxu1 %v1046_v45  ;;  %v1006_v0 = vsel %vm915_vm2, %v3928_v15, %v821_v27 }
  0xde   : > { %1660 = vmatprep.mubr.bf16.mxu1 %v938_v26 }
  0xdf   : > { %1524 = vmatmul.mubr.bf16.gmra.mrb[32].mxu0 %v941_v10  ;;  %v687_v14 = vpop.permute.xlu0 %686 }
  0xe0   : > { %1531 = vmatprep.mubr.bf16.mxu0 %v1002_v4  ;;  %v868_v23 = vpop.permute.xlu1 %867  ;;  %v947_v34 = vsel %vm915_vm2, %v3827_v36, %v687_v14 }
  0xe1   : > { %v1058_v30 = vsel %vm915_vm2, %v3837_v32, %v868_v23 }
  0xe3   : > { %v823_v16 = vpop.permute.xlu0 %822 }
  0xe4   : > { %v1010_v46 = vsel %vm915_vm2, %v3934_v25, %v823_v16  ;;  %v689_v33 = vpop.permute.xlu1 %688 }
  0xe5   : > { %1661 = vmatmul.mubr.bf16.gmra.mrb[36].mxu1 %v1050_v21  ;;  %v950_v41 = vsel %vm915_vm2, %v3856_v12, %v689_v33  ;;  %v4904_v12 = vld [vmem:[#allocation5_spill] sm:$0xff] }
  0xe6   : > { %1668 = vmatprep.mubr.bf16.mxu1 %v941_v10 }
  0xe7   : > { %1532 = vmatmul.mubr.bf16.gmra.mrb[36].mxu0 %v944_v58  ;;  %v870_v60 = vpop.permute.xlu0 %869 }
  0xe8   : > { %1539 = vmatprep.mubr.bf16.mxu0 %v1006_v0  ;;  %v1062_v36 = vsel %vm915_vm2, %v3870_v63, %v870_v60  ;;  %v872_v48 = vpop.permute.xlu1 %871  ;;  %v4905_v63 = vld [vmem:[#allocation6_spill] sm:$0xff] }
  0xe9   : > { %v1066_v32 = vsel %vm915_vm2, %v3891_v31, %v872_v48  ;;  %v2758_v48 = vld [vmem:[%s4199_s26 + $0x18] sm:$0xf] }
  0xed   : > { %1669 = vmatmul.mubr.bf16.gmra.mrb[40].mxu1 %v1054_v39 }
  0xee   : > { %1676 = vmatprep.mubr.bf16.mxu1 %v944_v58 }
  0xef   : > { %1540 = vmatmul.mubr.bf16.gmra.mrb[40].mxu0 %v947_v34 }
  0xf0   : > { %1547 = vmatprep.mubr.bf16.mxu0 %v1010_v46 }
  0xf5   : > { %1677 = vmatmul.mubr.bf16.gmra.mrb[44].mxu1 %v1058_v30 }
  0xf6   : > { %1684 = vmatprep.mubr.bf16.mxu1 %v947_v34 }
  0xf7   : > { %1548 = vmatmul.mubr.bf16.gmra.mrb[44].mxu0 %v950_v41 }
  0xf8   : > { %3061 = vmatprep.mubr.msk.bf16.mxu0 %vm915_vm2, %v3708_v17  ;;  %v874_v17 = vpop.permute.xlu0 %873 }
  0xfd   : > { %1685 = vmatmul.mubr.bf16.gmra.mrb[48].mxu1 %v1062_v36 }
  0xfe   : > { %1692 = vmatprep.mubr.bf16.mxu1 %v950_v41 }
  0xff   : > { %3062 = vmatmul.mubr.msk.bf16.vlgmr.msra.gmra.mrb[48].mxu0 %vm915_vm2, %v3740_v1  ;;  %v1070_v1 = vsel %vm915_vm2, %v3912_v19, %v874_v17  ;;  %v4906_v19 = vld [vmem:[#allocation7_spill] sm:$0xff] }
 0x100   : > { %3065 = vmatprep.mubr.msk.bf16.mxu0 %vm915_vm2, %v3773_v6  ;;  %v876_v6 = vpop.permute.xlu1 %875 }
 0x104   : > { %v880_v31 = vpop.permute.xlu1 %879 }
 0x105   : > { %1693 = vmatmul.mubr.bf16.gmra.mrb[52].mxu1 %v1066_v32 }
 0x106   : > { %1700 = vmatprep.mubr.bf16.mxu1 %v3980_v28 }
 0x107   : > { %3066 = vmatmul.mubr.msk.bf16.gmra.mrb[52].mxu0 %vm915_vm2, %v3815_v44  ;;  %v1074_v44 = vsel %vm915_vm2, %v4904_v12, %v876_v6 }
 0x108   : > { %3069 = vmatprep.mubr.msk.bf16.mxu0 %vm915_vm2, %v3851_v24  ;;  %v878_v24 = vpop.permute.xlu0 %877  ;;  %v882_v28 = vpop.permute.xlu1 %881 }
 0x10d   : > { %1701 = vmatmul.mubr.bf16.gmra.mrb[56].mxu1 %v1070_v1 }
 0x10e   : > { %1708 = vmatprep.mubr.bf16.mxu1 %v3999_v22  ;;  %v344_v22 = vld [vmem:[%s3448_s24 + $0xcc] sm:$0xe]  ;;  %s3340_s24 = smov [#allocation2]  }
 0x10f   : > { %3070 = vmatmul.mubr.msk.bf16.gmra.mrb[56].mxu0 %vm915_vm2, %v3877_v52  ;;  %v1078_v52 = vsel %vm915_vm2, %v4905_v63, %v878_v24  ;;  %v2701_v11 = vcombine.low %v344_v22, %v3909_v59  ;;  %v1987_v24 = vshrl.u32 %v2758_v48, 16  ;;  %v1990_v63 = vshll.u32 %v2758_v48, 16  ;;  %s3263_s22 = sshll.u32 %s3340_s24, 4  ;;  %s3264_s22 = int_to_ptr.vmem [resolvable:$false] %s3263_s22 }
 0x110   : > { %3073 = vmatprep.mubr.msk.bf16.mxu0 %vm915_vm2, %v3898_v55  ;;  %v906_v55 = vpop.permute.xlu0 %905  ;;  %p3266_p1 = scmp.lt.s32.totalorder %s4830_s11, %s3264_s22 }
 0x115   : > { %1709 = vmatmul.mubr.bf16.gmra.mrb[60].mxu1 %v1074_v44 }
 0x116   : > { %1716 = vmatprep.mubr.bf16.mxu1 %v4028_v13  ;;  %v4907_v13 = vld [vmem:[#allocation8_spill] sm:$0xff] }
 0x117   : > { %3074 = vmatmul.mubr.msk.bf16.gmra.mrb[60].mxu0 %vm915_vm2, %v3919_v7  ;;  %v1082_v7 = vsel %vm915_vm2, %v4906_v19, %v880_v31 }
 0x118   : > { %3077 = vmatprep.mubr.msk.bf16.mxu0 %vm915_vm2, %v3928_v15  ;;  %v1093_v15 = vsel %vm915_vm2, %v3613_v51, %v906_v55  ;;  %v884_v51 = vpop.permute.xlu1 %883 }
 0x119   : > { %v1090_v9 = vsel %vm915_vm2, %v3953_v54, %v884_v51  ;;  %v2756_v51 = vld [vmem:[%s4199_s26 + $0x10] sm:$0xf] }
 0x11d   : > { %1717 = vmatmul.mubr.bf16.gmra.mrb[64].mxu1 %v1078_v52  ;;  %v2755_v52 = vld [vmem:[%s4199_s26 + $0xc] sm:$0xf] }
 0x11e   : > { %1724 = vmatprep.mubr.bf16.mxu1 %v4051_v49  ;;  %v1966_v22 = vshll.u32 %v2755_v52, 16 }
 0x11f   : > { %3078 = vmatmul.mubr.msk.bf16.gmra.mrb[64].mxu0 %vm915_vm2, %v3934_v25  ;;  %v908_v25 = vpop.permute.xlu0 %907 }
 0x120   : > { %3081 = vmatprep.mubr.msk.bf16.mxu0 %vm915_vm2, %v3795_v18  ;;  %v1086_v18 = vsel %vm915_vm2, %v4907_v13, %v882_v28  ;;  %v1096_v49 = vsel %vm915_vm2, %v3923_v56, %v908_v25  ;;  %v1963_v25 = vshrl.u32 %v2755_v52, 16  ;;  %v1989_v13 = vrot.slane %v1987_v24, 4 }
 0x125   : > { %1725 = vmatmul.mubr.bf16.gmra.mrb[68].mxu1 %v1082_v7  ;;  %v2759_v7 = vld [vmem:[%s4199_s26 + $0x1c] sm:$0xf] }
 0x126   : > { %1732 = vmatprep.mubr.bf16.mxu1 %v1093_v15 }
 0x127   : > { %3082 = vmatmul.mubr.msk.bf16.gmra.mrb[68].mxu0 %vm915_vm2, %v3843_v47  ;;  %v912_v47 = vrot.slane %v2701_v11, 1 }
 0x128   : > { %3085 = vmatprep.mubr.msk.bf16.mxu0 %vm915_vm2, %v3863_v20  ;;  %v913_v20 = vrot.slane %v3937_v57, 1 }
 0x12a   : > { %v914_v40 = vsel %vm746_vm1, %v912_v47, %v913_v20  ;;  %v4218_v47 = vld [vmem:[%s4888_s2] ss:$0 sm:$0xff] }
 0x12d   : > { %1733 = vmatmul.mubr.bf16.gmra.mrb[72].mxu1 %v1086_v18  ;;  %v1992_v18 = vrot.slane %v1990_v63, 5 }
 0x12e   : > { %1740 = vmatprep.mubr.bf16.mxu1 %v1096_v49  ;;  %v1996_v49 = vshll.u32 %v2759_v7, 16 }
 0x12f   : > { %3086 = vmatmul.mubr.msk.bf16.gmra.mrb[72].mxu0 %vm915_vm2, %v3880_v5 }
 0x130   : > { %3089 = vmatprep.mubr.msk.bf16.mxu0 %vm915_vm2, %v3963_v38 }
 0x135   : > { %1741 = vmatmul.mubr.bf16.gmra.mrb[76].mxu1 %v1090_v9  ;;  %v2000_v9 = vshrl.u32 %v2759_v7, 16 }
 0x137   : > { %3090 = vmatmul.mubr.msk.bf16.gmra.mrb[76].mxu0 %vm915_vm2, %v914_v40 }
 0x170   : > { %v2897_v59 = vpop.f32.mrb[0].mxu1 }
 0x171   : > { %v2898_v56 = vpop.f32.mrb[1].mxu1  ;;  %v2825_v3 = vpop.f32.mrb[0].mxu0 }
 0x172   : > { %v4174_v8 = vadd.f32 %v2898_v56, %v2897_v59  ;;  %v2900_v5 = vpop.f32.mrb[2].mxu1  ;;  %v2826_v62 = vpop.f32.mrb[1].mxu0 }
 0x173   : > { %v2901_v53 = vpop.f32.mrb[3].mxu1  ;;  %v2827_v38 = vadd.f32 %v2826_v62, %v2825_v3  ;;  %v2828_v2 = vpop.f32.mrb[2].mxu0  ;;  %v1968_v62 = vrot.slane %v1966_v22, 5  ;;  %v2761_v22 = vld [vmem:[%s4199_s26 + $0x24] sm:$0xf] }
 0x174   : > { %v4176_v26 = vadd.f32 %v2901_v53, %v2900_v5  ;;  %v2829_v57 = vpop.f32.mrb[3].mxu0  ;;  %v1965_v5 = vrot.slane %v1963_v25, 4 }
 0x175   : > { %v4178_v50 = vadd.f32 %v2829_v57, %v2828_v2  ;;  %v1462_v40 = vadd.f32 %v2827_v38, %v4218_v47  ;;  %v1993_v57 = vor.u32 %v1992_v18, %v1989_v13 }
 0x178   : > { %v2903_v54 = vpop.f32.mrb[4].mxu1 }
 0x179   : > { %v2904_v35 = vpop.f32.mrb[5].mxu1  ;;  %v2831_v43 = vpop.f32.mrb[4].mxu0 }
 0x17a   : > { %v4180_v45 = vadd.f32 %v2904_v35, %v2903_v54  ;;  %v2906_v29 = vpop.f32.mrb[6].mxu1  ;;  %v2832_v10 = vpop.f32.mrb[5].mxu0  ;;  %v1998_v54 = vrot.slane %v1996_v49, 5  ;;  %v1972_v35 = vshll.u32 %v2756_v51, 16 }
 0x17b   : > { %v2907_v4 = vpop.f32.mrb[7].mxu1  ;;  %v4182_v37 = vadd.f32 %v2832_v10, %v2831_v43  ;;  %v2834_v42 = vpop.f32.mrb[6].mxu0  ;;  %v1976_v43 = vshrl.u32 %v2756_v51, 16 }
 0x17c   : > { %v4184_v21 = vadd.f32 %v2907_v4, %v2906_v29  ;;  %v2835_v27 = vpop.f32.mrb[7].mxu0  ;;  %v1465_v29 = vadd.f32 %v4178_v50, %v4218_v47  ;;  %v4232_v50 = vrot.slane %v1972_v35, 5 }
 0x17d   : > { %v4186_v58 = vadd.f32 %v2835_v27, %v2834_v42  ;;  %v1470_v63 = vadd.f32 %v4182_v37, %v4218_v47 }
 0x17f   : > { %v1473_v37 = vadd.f32 %v4186_v58, %v4218_v47 }
 0x180   : > { %v2909_v0 = vpop.f32.mrb[8].mxu1 }
 0x181   : > { %v2910_v14 = vpop.f32.mrb[9].mxu1  ;;  %v2837_v61 = vpop.f32.mrb[8].mxu0 }
 0x182   : > { %v4188_v39 = vadd.f32 %v2910_v14, %v2909_v0  ;;  %v2912_v16 = vpop.f32.mrb[10].mxu1  ;;  %v2838_v23 = vpop.f32.mrb[9].mxu0  ;;  %v2002_v0 = vrot.slane %v2000_v9, 4 }
 0x183   : > { %v2913_v34 = vpop.f32.mrb[11].mxu1  ;;  %v4190_v46 = vadd.f32 %v2838_v23, %v2837_v61  ;;  %v2840_v33 = vpop.f32.mrb[10].mxu0  ;;  %v1969_v61 = vor.u32 %v1968_v62, %v1965_v5  ;;  %v2764_v23 = vld [vmem:[%s4199_s26 + $0x30] sm:$0xf] }
 0x184   : > { %4908 = vst [vmem:[#allocation9_spill] sm:$0xff] %v4188_v39  ;;  %v4192_v30 = vadd.f32 %v2913_v34, %v2912_v16  ;;  %v2841_v41 = vpop.f32.mrb[11].mxu0  ;;  %v1994_v34 = vrot.slane %v1993_v57, 4  ;;  %v2038_v24 = vshll.u32 %v2764_v23, 16  ;;  %v2783_v39 = vld [vmem:[%s4199_s26 + $0x7c] sm:$0xf] }
 0x185   : > { %v4201_v60 = vadd.f32 %v2841_v41, %v2840_v33  ;;  %v2760_v33 = vld [vmem:[%s4199_s26 + $0x20] sm:$0x1]  ;;  %v1978_v41 = vrot.slane %v1976_v43, 4  ;;  %v2762_v43 = vld [vmem:[%s4199_s26 + $0x28] sm:$0xf] }
 0x186   : > { %4909 = vst [vmem:[#allocation5_spill] sm:$0xff] %v4192_v30  ;;  %v2006_v25 = vshll.u32 %v2760_v33, 16  ;;  %v1999_v49 = vsel %vm4235_vm5, %v1994_v34, %v1998_v54  ;;  %v2040_v62 = vrot.slane %v2038_v24, 5  ;;  %v2770_v34 = vld [vmem:[%s4199_s26 + $0x48] sm:$0xf] }
 0x188   : > { %v2915_v36 = vpop.f32.mrb[12].mxu1  ;;  %v2008_v58 = vrot.slane %v2006_v25, 5 }
 0x189   : > { %v2916_v32 = vpop.f32.mrb[13].mxu1 }
 0x18a   : > { %v2843_v17 = vpop.f32.mrb[12].mxu0  ;;  %v4204_v1 = vadd.f32 %v2916_v32, %v2915_v36  ;;  %v2918_v6 = vpop.f32.mrb[14].mxu1  ;;  %v2757_v32 = vld [vmem:[%s4199_s26 + $0x14] sm:$0x1] }
 0x18b   : > { %v2844_v12 = vpop.f32.mrb[13].mxu0  ;;  %v2919_v44 = vpop.f32.mrb[15].mxu1  ;;  %v1982_v51 = vshll.u32 %v2757_v32, 16 }
 0x18c   : > { %4910 = vst [vmem:[#allocation6_spill] sm:$0xff] %v4204_v1  ;;  %v4207_v31 = vadd.f32 %v2844_v12, %v2843_v17  ;;  %v2846_v55 = vpop.f32.mrb[14].mxu0  ;;  %v4209_v19 = vadd.f32 %v2919_v44, %v2918_v6  ;;  %v2765_v17 = vld [vmem:[%s4199_s26 + $0x34] sm:$0xf]  ;;  %v2003_v12 = vor.u32 %v2002_v0, %v1998_v54  ;;  %v2035_v44 = vshrl.u32 %v2764_v23, 16 }
 0x18d   : > { %v2847_v15 = vpop.f32.mrb[15].mxu0  ;;  %v2048_v35 = vshrl.u32 %v2765_v17, 16  ;;  %v4260_v0 = vunpack.c.l.bf16 %v1999_v49 }
 0x18e   : > { %4911 = vst [vmem:[#allocation7_spill] sm:$0xff] %v4209_v19  ;;  %v4212_v28 = vadd.f32 %v2847_v15, %v2846_v55  ;;  %v4243_v15 = vrot.slane %v1969_v61, 4  ;;  %v2037_v5 = vrot.slane %v2035_v44, 4 }
 0x190   : > { %v2937_v11 = vpop.f32.mrb[16].mxu1  ;;  %v1975_v61 = vsel %vm4235_vm5, %v4243_v15, %v4232_v50 }
 0x191   : > { %v2938_v20 = vpop.f32.mrb[17].mxu1 }
 0x192   : > { %v2849_v59 = vpop.f32.mrb[16].mxu0  ;;  %v2939_v56 = vadd.f32 %v2938_v20, %v2937_v11  ;;  %v2940_v3 = vpop.f32.mrb[18].mxu1  ;;  %v1979_v11 = vor.u32 %v1978_v41, %v4232_v50  ;;  %v2044_v20 = vshll.u32 %v2765_v17, 16  ;;  %v2041_v41 = vor.u32 %v2040_v62, %v2037_v5  ;;  %v2763_v62 = vld [vmem:[%s4199_s26 + $0x2c] sm:$0x1] }
 0x193   : > { %v2850_v53 = vpop.f32.mrb[17].mxu0  ;;  %v2941_v2 = vpop.f32.mrb[19].mxu1  ;;  %v2020_v17 = vshll.u32 %v2762_v43, 16 }
 0x194   : > { %v4223_v10 = vadd.f32 %v2850_v53, %v2849_v59  ;;  %v2852_v4 = vpop.f32.mrb[18].mxu0  ;;  %v2942_v38 = vadd.f32 %v2941_v2, %v2940_v3  ;;  %v4225_v42 = vadd.f32 %v2939_v56, %v1462_v40  ;;  %v2011_v53 = vshrl.u32 %v2761_v22, 16 }
 0x195   : > { %v2853_v27 = vpop.f32.mrb[19].mxu0  ;;  %v2014_v2 = vshll.u32 %v2761_v22, 16  ;;  %v4266_v23 = vrot.slane %v2044_v20, 5  ;;  %v2083_v22 = vshrl.u32 %v2770_v34, 16  ;;  %v2771_v20 = vld [vmem:[%s4199_s26 + $0x4c] sm:$0xf] }
 0x196   : > { %v4227_v14 = vadd.f32 %v2853_v27, %v2852_v4  ;;  %v4229_v16 = vadd.f32 %v2942_v38, %v1465_v29  ;;  %v2004_v29 = vrot.slane %v2003_v12, 4  ;;  %v1980_v4 = vrot.slane %v1979_v11, 4 }
 0x197   : > { %v1984_v38 = vrot.slane %v1982_v51, 5  ;;  %v2016_v32 = vrot.slane %v2014_v2, 5 }
 0x198   : > { %v2943_v36 = vpop.f32.mrb[20].mxu1  ;;  %v2009_v15 = vsel %vm4235_vm5, %v2004_v29, %v2008_v58  ;;  %v2085_v29 = vrot.slane %v2083_v22, 4 }
 0x199   : > { %v2944_v6 = vpop.f32.mrb[21].mxu1  ;;  %v1985_v25 = vsel %vm4235_vm5, %v1980_v4, %v1984_v38  ;;  %v2092_v4 = vshll.u32 %v2771_v20, 16  ;;  %v2096_v38 = vshrl.u32 %v2771_v20, 16 }
 0x19a   : > { %v2855_v52 = vpop.f32.mrb[20].mxu0  ;;  %v2945_v55 = vadd.f32 %v2944_v6, %v2943_v36  ;;  %v2946_v7 = vpop.f32.mrb[22].mxu1  ;;  %v2013_v36 = vrot.slane %v2011_v53, 4  ;;  %v1478_v6 = vadd.f32 %v4190_v46, %v4218_v47  ;;  %v1481_v46 = vadd.f32 %v4201_v60, %v4218_v47 }
 0x19b   : > { %v2856_v13 = vpop.f32.mrb[21].mxu0  ;;  %v2947_v18 = vpop.f32.mrb[23].mxu1 }
 0x19c   : > { %v4251_v9 = vadd.f32 %v2856_v13, %v2855_v52  ;;  %v2858_v40 = vpop.f32.mrb[22].mxu0  ;;  %v2948_v59 = vadd.f32 %v2947_v18, %v2946_v7  ;;  %v4253_v56 = vadd.f32 %v2945_v55, %v1470_v63  ;;  %v2024_v63 = vshrl.u32 %v2762_v43, 16  ;;  %v2766_v52 = vld [vmem:[%s4199_s26 + $0x38] sm:$0x1]  ;;  %v2767_v43 = vld [vmem:[%s4199_s26 + $0x3c] sm:$0xf] }
 0x19d   : > { %v2859_v3 = vpop.f32.mrb[23].mxu0  ;;  %v2050_v55 = vrot.slane %v2048_v35, 4  ;;  %v2086_v13 = vshll.u32 %v2770_v34, 16  ;;  %v2054_v5 = vshll.u32 %v2766_v52, 16  ;;  %v4292_v34 = vunpack.c.l.bf16 %v1975_v61 }
 0x19e   : > { %v4255_v57 = vadd.f32 %v2859_v3, %v2858_v40  ;;  %v4257_v54 = vadd.f32 %v2948_v59, %v1473_v37  ;;  %v2042_v40 = vrot.slane %v2041_v41, 4  ;;  %v2017_v59 = vor.u32 %v2016_v32, %v2013_v36 }
 0x19f   : > { %v4283_v3 = vrot.slane %v2020_v17, 5  ;;  %v2051_v2 = vor.u32 %v2050_v55, %v4266_v23  ;;  %v2026_v35 = vrot.slane %v2024_v63, 4  ;;  %v2088_v58 = vrot.slane %v2086_v13, 5 }
 0x1a0   : > { %v2949_v27 = vpop.f32.mrb[24].mxu1  ;;  %v4296_v41 = vunpack.c.l.bf16 %v1985_v25  ;;  %v2030_v36 = vshll.u32 %v2763_v62, 16  ;;  %v2047_v17 = vsel %vm4235_vm5, %v2042_v40, %v4266_v23  ;;  %v4305_v55 = vrot.slane %v2017_v59, 4  ;;  %v2772_v59 = vld [vmem:[%s4199_s26 + $0x50] sm:$0x1] }
 0x1a1   : > { %v2950_v33 = vpop.f32.mrb[25].mxu1  ;;  %v2027_v23 = vor.u32 %v2026_v35, %v4283_v3  ;;  %v2089_v22 = vor.u32 %v2088_v58, %v2085_v29  ;;  %v4311_v13 = vrot.slane %v2092_v4, 5  ;;  %v2769_v4 = vld [vmem:[%s4199_s26 + $0x44] sm:$0x1]  ;;  %v1505_v30 = vadd.f32 %v4255_v57, %v4218_v47 }
 0x1a2   : > { %v2861_v12 = vpop.f32.mrb[24].mxu0  ;;  %v2951_v44 = vadd.f32 %v2950_v33, %v2949_v27  ;;  %v2952_v24 = vpop.f32.mrb[26].mxu1  ;;  %v4294_v33 = vunpack.c.l.bf16 %v2009_v15 }
 0x1a3   : > { %v2862_v7 = vpop.f32.mrb[25].mxu0  ;;  %v2953_v50 = vpop.f32.mrb[27].mxu1 }
 0x1a4   : > { %v4278_v18 = vadd.f32 %v2862_v7, %v2861_v12  ;;  %v2864_v49 = vpop.f32.mrb[26].mxu0  ;;  %v2954_v11 = vadd.f32 %v2953_v50, %v2952_v24  ;;  %v4280_v51 = vadd.f32 %v2951_v44, %v1478_v6  ;;  %v4301_v6 = vrot.slane %v2054_v5, 5  ;;  %v2768_v50 = vld [vmem:[%s4199_s26 + $0x40] sm:$0xf] }
 0x1a5   : > { %v2865_v37 = vpop.f32.mrb[27].mxu0  ;;  %v2059_v12 = vshrl.u32 %v2767_v43, 16  ;;  %v2062_v44 = vshll.u32 %v2767_v43, 16  ;;  %v1486_v24 = vadd.f32 %v4207_v31, %v4218_v47  ;;  %v4307_v7 = vrot.slane %v2051_v2, 4 }
 0x1a6   : > { %4914 = vst [vmem:[#allocation8_spill] sm:$0xff] %v4280_v51  ;;  %v4286_v53 = vadd.f32 %v2865_v37, %v2864_v49  ;;  %v4289_v60 = vadd.f32 %v2954_v11, %v1481_v46  ;;  %v2098_v46 = vrot.slane %v2096_v38, 4  ;;  %v2776_v49 = vld [vmem:[%s4199_s26 + $0x60] sm:$0xf]  ;;  %v1489_v31 = vadd.f32 %v4212_v28, %v4218_v47 }
 0x1a7   : > { %v2061_v62 = vrot.slane %v2059_v12, 4  ;;  %v2064_v2 = vrot.slane %v2062_v44, 5  ;;  %v2068_v35 = vshll.u32 %v2768_v50, 16  ;;  %v2072_v43 = vshrl.u32 %v2768_v50, 16 }
 0x1a8   : > { %4915 = vst [vmem:[#allocation10_spill] sm:$0xff] %v4289_v60  ;;  %v2955_v27 = vpop.f32.mrb[28].mxu1  ;;  %v2131_v38 = vshrl.u32 %v2776_v49, 16  ;;  %v2134_v28 = vshll.u32 %v2776_v49, 16  ;;  %v2023_v12 = vsel %vm4235_vm5, %v4305_v55, %v4283_v3  ;;  %v2057_v44 = vsel %vm4235_vm5, %v4307_v7, %v4301_v6 }
 0x1a9   : > { %v2956_v32 = vpop.f32.mrb[29].mxu1  ;;  %v4337_v50 = vrot.slane %v2089_v22, 4  ;;  %v2078_v49 = vshll.u32 %v2769_v4, 16  ;;  %v4362_v19 = vunpack.c.l.bf16 %v2023_v12 }
 0x1aa   : > { %v2867_v61 = vpop.f32.mrb[28].mxu0  ;;  %v2957_v63 = vadd.f32 %v2956_v32, %v2955_v27  ;;  %v2958_v52 = vpop.f32.mrb[30].mxu1  ;;  %v4326_v27 = vunpack.c.l.bf16 %v2047_v17  ;;  %v2032_v32 = vrot.slane %v2030_v36, 5  ;;  %v2773_v17 = vld [vmem:[%s4199_s26 + $0x54] sm:$0xf] }
 0x1ab   : > { %v2868_v15 = vpop.f32.mrb[29].mxu0  ;;  %v2959_v25 = vpop.f32.mrb[31].mxu1  ;;  %4919 = vst [vmem:[#allocation14_spill] sm:$0xff] %v4362_v19 }
 0x1ac   : > { %v4316_v11 = vadd.f32 %v2868_v15, %v2867_v61  ;;  %v2870_v20 = vpop.f32.mrb[30].mxu0  ;;  %v2960_v37 = vadd.f32 %v2959_v25, %v2958_v52  ;;  %v4318_v40 = vadd.f32 %v2957_v63, %v1486_v24  ;;  %4917 = vst [vmem:[#allocation12_spill] sm:$0xff] %v4326_v27  ;;  %v2099_v24 = vor.u32 %v2098_v46, %v4311_v13 }
 0x1ad   : > { %v2871_v5 = vpop.f32.mrb[31].mxu0  ;;  %v2102_v61 = vshll.u32 %v2772_v59, 16  ;;  %v2028_v52 = vrot.slane %v2027_v23, 4  ;;  %v2065_v15 = vor.u32 %v2064_v2, %v2061_v62  ;;  %v4340_v25 = vrot.slane %v2068_v35, 5 }
 0x1ae   : > { %v4321_v29 = vadd.f32 %v2871_v5, %v2870_v20  ;;  %v4323_v58 = vadd.f32 %v2960_v37, %v1489_v31  ;;  %v2074_v46 = vrot.slane %v2072_v43, 4  ;;  %v1494_v31 = vadd.f32 %v4223_v10, %v4218_v47  ;;  %v2777_v37 = vld [vmem:[%s4199_s26 + $0x64] sm:$0xf] }
 0x1af   : > { %v2133_v59 = vrot.slane %v2131_v38, 4  ;;  %v2136_v5 = vrot.slane %v2134_v28, 5  ;;  %v4345_v23 = vrot.slane %v2099_v24, 4  ;;  %v4347_v22 = vrot.slane %v2102_v61, 5 }
 0x1b0   : > { %4916 = vst [vmem:[#allocation11_spill] sm:$0xff] %v4323_v58  ;;  %v2961_v63 = vpop.f32.mrb[32].mxu1  ;;  %v2107_v62 = vshrl.u32 %v2773_v17, 16  ;;  %v2110_v2 = vshll.u32 %v2773_v17, 16  ;;  %v1497_v35 = vadd.f32 %v4227_v14, %v4218_v47  ;;  %v2033_v28 = vsel %vm4235_vm5, %v2028_v52, %v2032_v32 }
 0x1b1   : > { %v2962_v36 = vpop.f32.mrb[33].mxu1  ;;  %v4357_v24 = vrot.slane %v2065_v15, 4  ;;  %v2075_v61 = vor.u32 %v2074_v46, %v4340_v25  ;;  %v4369_v15 = vunpack.c.l.bf16 %v2033_v28  ;;  %v2779_v46 = vld [vmem:[%s4199_s26 + $0x6c] sm:$0xf] }
 0x1b2   : > { %v2873_v20 = vpop.f32.mrb[32].mxu0  ;;  %v2963_v3 = vadd.f32 %v2962_v36, %v2961_v63  ;;  %v2964_v55 = vpop.f32.mrb[34].mxu1  ;;  %v2140_v36 = vshll.u32 %v2777_v37, 16  ;;  %v2112_v32 = vrot.slane %v2110_v2, 5 }
 0x1b3   : > { %v2874_v6 = vpop.f32.mrb[33].mxu0  ;;  %v2965_v7 = vpop.f32.mrb[35].mxu1  ;;  %4922 = vst [vmem:[#allocation17_spill] sm:$0xff] %v4369_v15 }
 0x1b4   : > { %v4351_v43 = vadd.f32 %v2874_v6, %v2873_v20  ;;  %v2876_v10 = vpop.f32.mrb[34].mxu0  ;;  %v2966_v4 = vadd.f32 %v2965_v7, %v2964_v55  ;;  %v4353_v63 = vadd.f32 %v2963_v3, %v1494_v31  ;;  %v2137_v20 = vor.u32 %v2136_v5, %v2133_v59  ;;  %v2774_v55 = vld [vmem:[%s4199_s26 + $0x58] sm:$0xf] }
 0x1b5   : > { %v2877_v38 = vpop.f32.mrb[35].mxu0  ;;  %v4367_v31 = vunpack.c.l.bf16 %v2057_v44  ;;  %v2144_v3 = vshrl.u32 %v2777_v37, 16  ;;  %v2109_v6 = vrot.slane %v2107_v62, 4  ;;  %v4379_v59 = vrot.slane %v2078_v49, 5  ;;  %v2782_v44 = vld [vmem:[%s4199_s26 + $0x78] sm:$0xf] }
 0x1b6   : > { %4918 = vst [vmem:[#allocation13_spill] sm:$0xff] %v4353_v63  ;;  %v4360_v17 = vadd.f32 %v2877_v38, %v2876_v10  ;;  %v4364_v14 = vadd.f32 %v2966_v4, %v1497_v35  ;;  %v4386_v7 = vrot.slane %v2075_v61, 4  ;;  %v4388_v62 = vrot.slane %v2140_v36, 5  ;;  %v2778_v35 = vld [vmem:[%s4199_s26 + $0x68] sm:$0x1] }
 0x1b7   : > { %4921 = vst [vmem:[#allocation16_spill] sm:$0xff] %v4367_v31  ;;  %v2116_v2 = vshll.u32 %v2774_v55, 16  ;;  %v1502_v10 = vadd.f32 %v4251_v9, %v4218_v47  ;;  %v4393_v28 = vrot.slane %v2137_v20, 4  ;;  %v2120_v12 = vshrl.u32 %v2774_v55, 16  ;;  %v2775_v20 = vld [vmem:[%s4199_s26 + $0x5c] sm:$0x1] }
 0x1b8   : > { %4920 = vst [vmem:[#allocation15_spill] sm:$0xff] %v4364_v14  ;;  %v2967_v52 = vpop.f32.mrb[36].mxu1  ;;  %v2113_v61 = vor.u32 %v2112_v32, %v2109_v6  ;;  %v2146_v14 = vrot.slane %v2144_v3, 4  ;;  %v2179_v36 = vshrl.u32 %v2782_v44, 16  ;;  %v2182_v63 = vshll.u32 %v2782_v44, 16 }
 0x1b9   : > { %v2968_v37 = vpop.f32.mrb[37].mxu1  ;;  %v2081_v3 = vsel %vm4235_vm5, %v4386_v7, %v4379_v59  ;;  %v2150_v6 = vshll.u32 %v2778_v35, 16  ;;  %v2155_v32 = vshrl.u32 %v2779_v46, 16  ;;  %v2158_v44 = vshll.u32 %v2779_v46, 16 }
 0x1ba   : > { %v2879_v4 = vpop.f32.mrb[36].mxu0  ;;  %v2969_v38 = vadd.f32 %v2968_v37, %v2967_v52  ;;  %v2970_v49 = vpop.f32.mrb[38].mxu1  ;;  %v2143_v59 = vsel %vm4235_vm5, %v4393_v28, %v4388_v62  ;;  %v2147_v7 = vor.u32 %v2146_v14, %v4388_v62  ;;  %v2181_v46 = vrot.slane %v2179_v36, 4 }
 0x1bb   : > { %v2880_v1 = vpop.f32.mrb[37].mxu0  ;;  %v2971_v5 = vpop.f32.mrb[39].mxu1  ;;  %v2184_v35 = vrot.slane %v2182_v63, 5 }
 0x1bc   : > { %v4398_v9 = vadd.f32 %v2880_v1, %v2879_v4  ;;  %v2882_v52 = vpop.f32.mrb[38].mxu0  ;;  %v2972_v37 = vadd.f32 %v2971_v5, %v2970_v49  ;;  %v4400_v15 = vadd.f32 %v2969_v38, %v1502_v10  ;;  %v2118_v1 = vrot.slane %v2116_v2, 5  ;;  %v2780_v5 = vld [vmem:[%s4199_s26 + $0x70] sm:$0xf] }
 0x1bd   : > { %v2883_v55 = vpop.f32.mrb[39].mxu0  ;;  %v2122_v4 = vrot.slane %v2120_v12, 4  ;;  %v2114_v10 = vrot.slane %v2113_v61, 4  ;;  %v2126_v38 = vshll.u32 %v2775_v20, 16  ;;  %v2188_v49 = vshll.u32 %v2783_v39, 16 }
 0x1be   : > { %4923 = vst [vmem:[#allocation18_spill] sm:$0xff] %v4400_v15  ;;  %v4408_v31 = vadd.f32 %v2883_v55, %v2882_v52  ;;  %v4410_v57 = vadd.f32 %v2972_v37, %v1505_v30  ;;  %v2192_v15 = vshrl.u32 %v2783_v39, 16  ;;  %v2157_v30 = vrot.slane %v2155_v32, 4 }
 0x1bf   : > { %v2160_v37 = vrot.slane %v2158_v44, 5  ;;  %v2164_v2 = vshll.u32 %v2780_v5, 16  ;;  %v2168_v12 = vshrl.u32 %v2780_v5, 16  ;;  %v1510_v61 = vadd.f32 %v4278_v18, %v4218_v47 }
 0x1c0   : > { %4924 = vst [vmem:[#allocation19_spill] sm:$0xff] %v4410_v57  ;;  %v2973_v60 = vpop.f32.mrb[40].mxu1  ;;  %v4420_v57 = vrot.slane %v2150_v6, 5  ;;  %v2123_v19 = vor.u32 %v2122_v4, %v2118_v1  ;;  %v2119_v63 = vsel %vm4235_vm5, %v2114_v10, %v2118_v1  ;;  %v4424_v14 = vrot.slane %v2126_v38, 5  ;;  %v2784_v4 = vld [vmem:[%s4199_s26 + $0x80] sm:$0x1] }
 0x1c1   : > { %v2974_v52 = vpop.f32.mrb[41].mxu1  ;;  %v4426_v62 = vrot.slane %v2188_v49, 5  ;;  %v2194_v36 = vrot.slane %v2192_v15, 4  ;;  %v1513_v18 = vadd.f32 %v4286_v53, %v4218_v47  ;;  %v2161_v27 = vor.u32 %v2160_v37, %v2157_v30  ;;  %v2781_v53 = vld [vmem:[%s4199_s26 + $0x74] sm:$0x1] }
 0x1c2   : > { %v2885_v20 = vpop.f32.mrb[40].mxu0  ;;  %v2975_v39 = vadd.f32 %v2974_v52, %v2973_v60  ;;  %v2976_v55 = vpop.f32.mrb[42].mxu1  ;;  %v2185_v52 = vor.u32 %v2184_v35, %v2181_v46  ;;  %v2166_v1 = vrot.slane %v2164_v2, 5  ;;  %v2170_v10 = vrot.slane %v2168_v12, 4 }
 0x1c3   : > { %v2886_v28 = vpop.f32.mrb[41].mxu0  ;;  %v2977_v58 = vpop.f32.mrb[43].mxu1  ;;  %v2148_v15 = vrot.slane %v2147_v7, 4  ;;  %v2124_v51 = vrot.slane %v2123_v19, 4  ;;  %v4926_v46 = vsel %vm4235_vm5, %v4345_v23, %v4347_v22  ;;  %v2195_v7 = vor.u32 %v2194_v36, %v4426_v62  ;;  %v2788_v23 = vld [vmem:[%s4199_s26 + $0x90] sm:$0xf] }
 0x1c4   : > { %v4430_v32 = vadd.f32 %v2886_v28, %v2885_v20  ;;  %v2888_v60 = vpop.f32.mrb[42].mxu0  ;;  %v2978_v6 = vadd.f32 %v2977_v58, %v2976_v55  ;;  %v4432_v44 = vadd.f32 %v2975_v39, %v1510_v61  ;;  %v4925_v58 = vsel %vm4235_vm5, %v4337_v50, %v4311_v13 }
 0x1c5   : > { %v2889_v5 = vpop.f32.mrb[43].mxu0  ;;  %v4445_v61 = vunpack.c.l.bf16 %v4925_v58  ;;  %v4452_v35 = vunpack.c.l.bf16 %v4926_v46  ;;  %v2198_v30 = vshll.u32 %v2784_v4, 16  ;;  %v4927_v19 = vsel %vm4235_vm5, %v4357_v24, %v4340_v25 }
 0x1c6   : > { %v4435_v38 = vadd.f32 %v2889_v5, %v2888_v60  ;;  %v4437_v49 = vadd.f32 %v2978_v6, %v1513_v18  ;;  %v4460_v2 = vunpack.c.l.bf16 %v4927_v19  ;;  %v4462_v13 = vunpack.c.l.bf16 %v2081_v3 }
 0x1c7   : > { %v4464_v50 = vunpack.c.l.bf16 %v2143_v59  ;;  %v4466_v12 = vunpack.c.l.bf16 %v2119_v63  ;;  %v2186_v20 = vrot.slane %v2185_v52, 4  ;;  %v2162_v39 = vrot.slane %v2161_v27, 4  ;;  %v2789_v63 = vld [vmem:[%s4199_s26 + $0x94] sm:$0xf] }
 0x1c8   : > { %v2979_v37 = vpop.f32.mrb[44].mxu1  ;;  %v2171_v55 = vor.u32 %v2170_v10, %v2166_v1  ;;  %v2174_v28 = vshll.u32 %v2781_v53, 16  ;;  %v1518_v36 = vadd.f32 %v4316_v11, %v4218_v47  ;;  %v2153_v3 = vsel %vm4235_vm5, %v2148_v15, %v4420_v57 }
 0x1c9   : > { %v2980_v22 = vpop.f32.mrb[45].mxu1  ;;  %v2129_v59 = vsel %vm4235_vm5, %v2124_v51, %v4424_v14  ;;  %v4478_v27 = vrot.slane %v2195_v7, 4  ;;  %v4480_v4 = vrot.slane %v2198_v30, 5  ;;  %v2227_v5 = vshrl.u32 %v2788_v23, 16 }
 0x1ca   : > { %v2891_v18 = vpop.f32.mrb[44].mxu0  ;;  %v2981_v25 = vadd.f32 %v2980_v22, %v2979_v37  ;;  %v2982_v24 = vpop.f32.mrb[46].mxu1  ;;  %v2230_v11 = vshll.u32 %v2788_v23, 16  ;;  %v1521_v52 = vadd.f32 %v4321_v29, %v4218_v47  ;;  %v2191_v14 = vsel %vm4235_vm5, %v2186_v20, %v4426_v62  ;;  %v2785_v23 = vld [vmem:[%s4199_s26 + $0x84] sm:$0xf] }
 0x1cb   : > { %v2892_v60 = vpop.f32.mrb[45].mxu0  ;;  %v2983_v6 = vpop.f32.mrb[47].mxu1  ;;  %v2167_v58 = vsel %vm4235_vm5, %v2162_v39, %v2166_v1  ;;  %v4493_v46 = vrot.slane %v2171_v55, 4  ;;  %v4495_v7 = vrot.slane %v2174_v28, 5  ;;  %v4501_v37 = vunpack.c.l.bf16 %v2153_v3 }
 0x1cc   : > { %v4484_v10 = vadd.f32 %v2892_v60, %v2891_v18  ;;  %v2894_v57 = vpop.f32.mrb[46].mxu0  ;;  %v2984_v15 = vadd.f32 %v2983_v6, %v2982_v24  ;;  %v4486_v53 = vadd.f32 %v2981_v25, %v1518_v36  ;;  %v2236_v19 = vshll.u32 %v2789_v63, 16  ;;  %v4524_v18 = vld [vmem:[%s4199_s26 + $0x88] sm:$0xf] }
 0x1cd   : > { %v2895_v51 = vpop.f32.mrb[47].mxu0  ;;  %v4506_v22 = vadd.f32 %v4174_v8, %v4218_v47  ;;  %v4508_v62 = vunpack.c.l.bf16 %v2129_v59  ;;  %v2229_v1 = vrot.slane %v2227_v5, 4  ;;  %v2232_v20 = vrot.slane %v2230_v11, 5 }
 0x1ce   : > { %v4497_v29 = vadd.f32 %v2895_v51, %v2894_v57  ;;  %v4499_v30 = vadd.f32 %v2984_v15, %v1521_v52  ;;  %v4512_v39 = vadd.f32 %v4176_v26, %v4218_v47  ;;  %v4515_v28 = vunpack.c.l.bf16 %v2191_v14 }
 0x1cf   : > { %v4517_v36 = vunpack.c.l.bf16 %v2167_v58  ;;  %v2201_v8 = vsel %vm4235_vm5, %v4478_v27, %v4480_v4  ;;  %v4528_v25 = vadd.f32 %v4180_v45, %v4218_v47  ;;  %v2177_v24 = vsel %vm4235_vm5, %v4493_v46, %v4495_v7 }
 0x1d0   : > { %v2985_v55 = vpop.f32.mrb[48].mxu1  ;;  %v2240_v3 = vshrl.u32 %v2789_v63, 16  ;;  %v2203_v59 = vshrl.u32 %v2785_v23, 16  ;;  %v1526_v60 = vadd.f32 %v4351_v43, %v4218_v47  ;;  %v4536_v4 = vrot.slane %v2236_v19, 5  ;;  %v2790_v19 = vld [vmem:[%s4199_s26 + $0x98] sm:$0x1] }
 0x1d1   : > { %v2986_v26 = vpop.f32.mrb[49].mxu1  ;;  %v2206_v11 = vshll.u32 %v2785_v23, 16  ;;  %v2233_v15 = vor.u32 %v2232_v20, %v2229_v1  ;;  %v2212_v63 = vshll.u32 %v4524_v18, 16  ;;  %v2216_v51 = vshrl.u32 %v4524_v18, 16 }
 0x1d2   : > { %v2987_v6 = vadd.f32 %v2986_v26, %v2985_v55  ;;  %v3063_v5 = vpop.f32.mrb[48].mxu0  ;;  %v2988_v27 = vpop.f32.mrb[50].mxu1  ;;  %v1529_v43 = vadd.f32 %v4360_v17, %v4218_v47  ;;  %v2205_v1 = vrot.slane %v2203_v59, 4  ;;  %v4553_v20 = vrot.slane %v2240_v3, 4 }
 0x1d3   : > { %v1792_v45 = vadd.f32 %v3063_v5, %v4253_v56  ;;  %v1783_v52 = vpop.f32.mrb[49].mxu0  ;;  %v2989_v57 = vpop.f32.mrb[51].mxu1 }
 0x1d4   : > { %v1784_v14 = vadd.f32 %v1783_v52, %v4225_v42  ;;  %v2990_v58 = vadd.f32 %v2989_v57, %v2988_v27  ;;  %v3064_v46 = vpop.f32.mrb[50].mxu0  ;;  %v4548_v7 = vadd.f32 %v2987_v6, %v1526_v60  ;;  %v2208_v42 = vrot.slane %v2206_v11, 5 }
 0x1d5   : > { %v2412_v23 = vadd.f32 %v4260_v0, %v1792_v45  ;;  %v1795_v56 = vadd.f32 %v3064_v46, %v4257_v54  ;;  %v1786_v55 = vpop.f32.mrb[51].mxu0  ;;  %v2234_v6 = vrot.slane %v2233_v15, 4  ;;  %v2246_v0 = vshll.u32 %v2790_v19, 16  ;;  %v2787_v45 = vld [vmem:[%s4199_s26 + $0x8c] sm:$0x1] }
 0x1d6   : > { %v2410_v18 = vadd.f32 %v4292_v34, %v1784_v14  ;;  %v1787_v17 = vadd.f32 %v1786_v55, %v4229_v16  ;;  %v4557_v26 = vadd.f32 %v2990_v58, %v1529_v43  ;;  %v4562_v54 = vadd.f32 %v4184_v21, %v4218_v47  ;;  %v2794_v58 = vld [vmem:[%s4199_s26 + $0xa8] sm:$0xf]  ;;  %v4928_v55 = vld [vmem:[#allocation8_spill] sm:$0xff] }
 0x1d7   : > { %v2444_v5 = vmax.f32 %v2412_v23, 0.0  ;;  %v2413_v60 = vadd.f32 %v4294_v33, %v1795_v56  ;;  %v4565_v34 = vunpack.c.l.bf16 %v2201_v8  ;;  %v4572_v11 = vunpack.c.l.bf16 %v2177_v24 }
 0x1d8   : > { %v2442_v59 = vmax.f32 %v2410_v18, 0.0  ;;  %v2411_v3 = vadd.f32 %v4296_v41, %v1787_v17  ;;  %v2991_v27 = vpop.f32.mrb[52].mxu1  ;;  %v4574_v21 = vrot.slane %v2212_v63, 5  ;;  %v2243_v41 = vor.u32 %v4553_v20, %v4536_v4 }
 0x1d9   : > { %2476 = vst.msk [vmem:[%s4568_s6 + $0x10] sm:$0xff] %vm915_vm2, %v2444_v5  ;;  %v2445_v16 = vmax.f32 %v2413_v60, 0.0  ;;  %v2992_v33 = vpop.f32.mrb[53].mxu1  ;;  %v1534_v8 = vadd.f32 %v4398_v9, %v4218_v47  ;;  %v2209_v14 = vor.u32 %v2208_v42, %v2205_v1  ;;  %v2239_v19 = vsel %vm4235_vm5, %v2234_v6, %v4536_v4  ;;  %v4930_v5 = vld [vmem:[#allocation11_spill] sm:$0xff] }
 0x1da   : > { %2474 = vst.msk [vmem:[%s4568_s6] sm:$0xff] %vm915_vm2, %v2442_v59  ;;  %v2443_v52 = vmax.f32 %v2411_v3, 0.0  ;;  %v2993_v57 = vadd.f32 %v2992_v33, %v2991_v27  ;;  %v3067_v15 = vpop.f32.mrb[52].mxu0  ;;  %v2994_v43 = vpop.f32.mrb[54].mxu1  ;;  %v4590_v9 = vrot.slane %v2246_v0, 5  ;;  %v2218_v23 = vrot.slane %v2216_v51, 4 }
 0x1db   : > { %2477 = vst.msk [vmem:[%s4568_s6 + $0x18] sm:$0xff] %vm915_vm2, %v2445_v16  ;;  %v1808_v24 = vadd.f32 %v3067_v15, %v4318_v40  ;;  %v1799_v63 = vpop.f32.mrb[53].mxu0  ;;  %v2995_v46 = vpop.f32.mrb[55].mxu1  ;;  %v1537_v56 = vadd.f32 %v4408_v31, %v4218_v47  ;;  %v4929_v40 = vld [vmem:[#allocation12_spill] sm:$0xff]  ;;  %v2222_v4 = vshll.u32 %v2787_v45, 16  ;;  %v2275_v6 = vshrl.u32 %v2794_v58, 16 }
 0x1dc   : > { %2475 = vst.msk [vmem:[%s4568_s6 + $0x8] sm:$0xff] %vm915_vm2, %v2443_v52  ;;  %v1800_v1 = vadd.f32 %v1799_v63, %v4928_v55  ;;  %v2996_v20 = vadd.f32 %v2995_v46, %v2994_v43  ;;  %v3068_v18 = vpop.f32.mrb[54].mxu0  ;;  %v4597_v17 = vadd.f32 %v2993_v57, %v1534_v8  ;;  %v4931_v51 = vld [vmem:[#allocation14_spill] sm:$0xff]  ;;  %v4605_v16 = vrot.slane %v2209_v14, 4  ;;  %v4933_v52 = vld [vmem:[#allocation16_spill] sm:$0xff]  ;;  %v4934_v43 = vld [vmem:[#allocation9_spill] sm:$0xff] }
 0x1dd   : > { %v2416_v42 = vadd.f32 %v4929_v40, %v1808_v24  ;;  %v1811_v60 = vadd.f32 %v3068_v18, %v4930_v5  ;;  %v1802_v59 = vpop.f32.mrb[55].mxu0  ;;  %v4932_v3 = vld [vmem:[#allocation10_spill] sm:$0xff]  ;;  %v2219_v57 = vor.u32 %v2218_v23, %v4574_v21  ;;  %v2278_v15 = vshll.u32 %v2794_v58, 16  ;;  %v4935_v63 = vld [vmem:[#allocation17_spill] sm:$0xff] }
 0x1de   : > { %v2414_v0 = vadd.f32 %v4931_v51, %v1800_v1  ;;  %v1803_v31 = vadd.f32 %v1802_v59, %v4932_v3  ;;  %v4603_v27 = vadd.f32 %v2996_v20, %v1537_v56  ;;  %v4611_v45 = vadd.f32 %v4934_v43, %v4218_v47  ;;  %v4936_v14 = vld [vmem:[#allocation5_spill] sm:$0xff]  ;;  %v2791_v51 = vld [vmem:[%s4199_s26 + $0x9c] sm:$0xf] }
 0x1df   : > { %v2448_v33 = vmax.f32 %v2416_v42, 0.0  ;;  %v2417_v8 = vadd.f32 %v4933_v52, %v1811_v60  ;;  %v4614_v56 = vunpack.c.l.bf16 %v2239_v19  ;;  %v4618_v1 = vadd.f32 %v4936_v14, %v4218_v47  ;;  %v4939_v14 = vld [vmem:[#allocation19_spill] sm:$0xff] }
 0x1e0   : > { %v2446_v24 = vmax.f32 %v2414_v0, 0.0  ;;  %v2415_v46 = vadd.f32 %v4935_v63, %v1803_v31  ;;  %v2997_v55 = vpop.f32.mrb[56].mxu1  ;;  %v4622_v20 = vrot.slane %v2243_v41, 4  ;;  %v4624_v18 = vrot.slane %v2222_v4, 5  ;;  %v4937_v0 = vld [vmem:[#allocation18_spill] sm:$0xff] }
 0x1e1   : > { %2480 = vst.msk [vmem:[%s4568_s6 + $0x30] sm:$0xff] %vm915_vm2, %v2448_v33  ;;  %v2449_v23 = vmax.f32 %v2417_v8, 0.0  ;;  %v2998_v58 = vpop.f32.mrb[57].mxu1  ;;  %v1542_v40 = vadd.f32 %v4430_v32, %v4218_v47  ;;  %v2277_v59 = vrot.slane %v2275_v6, 4  ;;  %v4638_v4 = vrot.slane %v2219_v57, 4  ;;  %v4938_v8 = vld [vmem:[#allocation13_spill] sm:$0xff] }
 0x1e2   : > { %2478 = vst.msk [vmem:[%s4568_s6 + $0x20] sm:$0xff] %vm915_vm2, %v2446_v24  ;;  %v2447_v19 = vmax.f32 %v2415_v46, 0.0  ;;  %v2999_v42 = vadd.f32 %v2998_v58, %v2997_v55  ;;  %v3071_v5 = vpop.f32.mrb[56].mxu0  ;;  %v3000_v60 = vpop.f32.mrb[58].mxu1  ;;  %v2795_v33 = vld [vmem:[%s4199_s26 + $0xac] sm:$0xf]  ;;  %v1545_v6 = vadd.f32 %v4435_v38, %v4218_v47 }
 0x1e3   : > { %2481 = vst.msk [vmem:[%s4568_s6 + $0x38] sm:$0xff] %vm915_vm2, %v2449_v23  ;;  %v1824_v41 = vadd.f32 %v3071_v5, %v4937_v0  ;;  %v1815_v3 = vpop.f32.mrb[57].mxu0  ;;  %v3001_v31 = vpop.f32.mrb[59].mxu1  ;;  %v2280_v52 = vrot.slane %v2278_v15, 5  ;;  %v2251_v58 = vshrl.u32 %v2791_v51, 16  ;;  %v2254_v15 = vshll.u32 %v2791_v51, 16 }
 0x1e4   : > { %2479 = vst.msk [vmem:[%s4568_s6 + $0x28] sm:$0xff] %vm915_vm2, %v2447_v19  ;;  %v1816_v43 = vadd.f32 %v1815_v3, %v4938_v8  ;;  %v3002_v24 = vadd.f32 %v3001_v31, %v3000_v60  ;;  %v3072_v63 = vpop.f32.mrb[58].mxu0  ;;  %v4646_v46 = vadd.f32 %v2999_v42, %v1542_v40  ;;  %v4940_v0 = vld [vmem:[#allocation15_spill] sm:$0xff]  ;;  %v2284_v19 = vshll.u32 %v2795_v33, 16  ;;  %v2792_v3 = vld [vmem:[%s4199_s26 + $0xa0] sm:$0xf] }
 0x1e5   : > { %v2420_v55 = vadd.f32 %v4445_v61, %v1824_v41  ;;  %v1827_v23 = vadd.f32 %v3072_v63, %v4939_v14  ;;  %v1818_v57 = vpop.f32.mrb[59].mxu0  ;;  %v2281_v42 = vor.u32 %v2280_v52, %v2277_v59  ;;  %v2288_v61 = vshrl.u32 %v2795_v33, 16 }
 0x1e6   : > { %v2418_v5 = vadd.f32 %v4460_v2, %v1816_v43  ;;  %v1819_v38 = vadd.f32 %v1818_v57, %v4940_v0  ;;  %v4652_v32 = vadd.f32 %v3002_v24, %v1545_v6  ;;  %v2249_v2 = vsel %vm4235_vm5, %v4622_v20, %v4590_v9 }
 0x1e7   : > { %v2452_v60 = vmax.f32 %v2420_v55, 0.0  ;;  %v2421_v40 = vadd.f32 %v4452_v35, %v1827_v23  ;;  %v2225_v51 = vsel %vm4235_vm5, %v4638_v4, %v4624_v18  ;;  %v2253_v33 = vrot.slane %v2251_v58, 4  ;;  %v2796_v55 = vld [vmem:[%s4199_s26 + $0xb0] sm:$0x1] }
 0x1e8   : > { %v2450_v41 = vmax.f32 %v2418_v5, 0.0  ;;  %v2419_v31 = vadd.f32 %v4462_v13, %v1819_v38  ;;  %v3003_v8 = vpop.f32.mrb[60].mxu1  ;;  %v2256_v52 = vrot.slane %v2254_v15, 5  ;;  %v2260_v13 = vshll.u32 %v2792_v3, 16 }
 0x1e9   : > { %2484 = vst.msk [vmem:[%s4568_s6 + $0x50] sm:$0xff] %vm915_vm2, %v2452_v60  ;;  %v2453_v35 = vmax.f32 %v2421_v40, 0.0  ;;  %v3004_v59 = vpop.f32.mrb[61].mxu1  ;;  %v1550_v6 = vadd.f32 %v4484_v10, %v4218_v47  ;;  %v2286_v63 = vrot.slane %v2284_v19, 5  ;;  %v2282_v23 = vrot.slane %v2281_v42, 4 }
 0x1ea   : > { %2482 = vst.msk [vmem:[%s4568_s6 + $0x40] sm:$0xff] %vm915_vm2, %v2450_v41  ;;  %v2451_v9 = vmax.f32 %v2419_v31, 0.0  ;;  %v3005_v20 = vadd.f32 %v3004_v59, %v3003_v8  ;;  %v3075_v43 = vpop.f32.mrb[60].mxu0  ;;  %v3006_v24 = vpop.f32.mrb[62].mxu1  ;;  %v2264_v57 = vshrl.u32 %v2792_v3, 16  ;;  %v2290_v58 = vrot.slane %v2288_v61, 4 }
 0x1eb   : > { %2485 = vst.msk [vmem:[%s4568_s6 + $0x58] sm:$0xff] %vm915_vm2, %v2453_v35  ;;  %v1840_v18 = vadd.f32 %v3075_v43, %v4486_v53  ;;  %v1831_v4 = vpop.f32.mrb[61].mxu0  ;;  %v3007_v14 = vpop.f32.mrb[63].mxu1  ;;  %v1553_v10 = vadd.f32 %v4497_v29, %v4218_v47  ;;  %v2257_v40 = vor.u32 %v2256_v52, %v2253_v33  ;;  %v4684_v3 = vrot.slane %v2260_v13, 5  ;;  %v2793_v31 = vld [vmem:[%s4199_s26 + $0xa4] sm:$0x1] }
 0x1ec   : > { %2483 = vst.msk [vmem:[%s4568_s6 + $0x48] sm:$0xff] %vm915_vm2, %v2451_v9  ;;  %v1832_v15 = vadd.f32 %v1831_v4, %v4432_v44  ;;  %v3008_v5 = vadd.f32 %v3007_v14, %v3006_v24  ;;  %v3076_v0 = vpop.f32.mrb[62].mxu0  ;;  %v4680_v38 = vadd.f32 %v3005_v20, %v1550_v6  ;;  %v2294_v44 = vshll.u32 %v2796_v55, 16  ;;  %v2800_v9 = vld [vmem:[%s4199_s26 + $0xc0] sm:$0xf] }
 0x1ed   : > { %v2424_v19 = vadd.f32 %v4464_v50, %v1840_v18  ;;  %v1843_v53 = vadd.f32 %v3076_v0, %v4499_v30  ;;  %v1834_v60 = vpop.f32.mrb[63].mxu0  ;;  %v2291_v50 = vor.u32 %v2290_v58, %v2286_v63  ;;  %v2266_v30 = vrot.slane %v2264_v57, 4 }
 0x1ee   : > { %v2422_v47 = vadd.f32 %v4466_v12, %v1832_v15  ;;  %v1835_v29 = vadd.f32 %v1834_v60, %v4437_v49  ;;  %v4688_v42 = vadd.f32 %v3008_v5, %v1553_v10  ;;  %v4941_v49 = vsel %vm4235_vm5, %v4605_v16, %v4574_v21  ;;  %v2797_v15 = vld [vmem:[%s4199_s26 + $0xb4] sm:$0xf]  ;;  %v2801_v60 = vld [vmem:[%s4199_s26 + $0xc4] sm:$0xf] }
 0x1ef   : > { %v2456_v61 = vmax.f32 %v2424_v19, 0.0  ;;  %v2425_v41 = vadd.f32 %v4501_v37, %v1843_v53  ;;  %v4698_v12 = vunpack.c.l.bf16 %v4941_v49  ;;  %v2287_v33 = vsel %vm4235_vm5, %v2282_v23, %v2286_v63 }
 0x1f0   : > { %v2454_v8 = vmax.f32 %v2422_v47, 0.0  ;;  %v2423_v35 = vadd.f32 %v4508_v62, %v1835_v29  ;;  %v3009_v59 = vpop.f32.mrb[64].mxu1  ;;  %v4704_v13 = vunpack.c.l.bf16 %v2249_v2  ;;  %v4706_v6 = vunpack.c.l.bf16 %v2225_v51 }
 0x1f1   : > { %2488 = vst.msk [vmem:[%s4568_s6 + $0x70] sm:$0xff] %vm915_vm2, %v2456_v61  ;;  %v2457_v37 = vmax.f32 %v2425_v41, 0.0  ;;  %v3010_v52 = vpop.f32.mrb[65].mxu1  ;;  %v4708_v62 = vrot.slane %v2257_v40, 4  ;;  %v4713_v24 = vrot.slane %v2294_v44, 5  ;;  %v2270_v63 = vshll.u32 %v2793_v31, 16 }
 0x1f2   : > { %2486 = vst.msk [vmem:[%s4568_s6 + $0x60] sm:$0xff] %vm915_vm2, %v2454_v8  ;;  %v2455_v21 = vmax.f32 %v2423_v35, 0.0  ;;  %v3011_v16 = vadd.f32 %v3010_v52, %v3009_v59  ;;  %v3079_v20 = vpop.f32.mrb[64].mxu0  ;;  %v3012_v43 = vpop.f32.mrb[66].mxu1  ;;  %v4718_v18 = vunpack.c.l.bf16 %v2287_v33  ;;  %v4720_v4 = vrot.slane %v2291_v50, 4 }
 0x1f3   : > { %2489 = vst.msk [vmem:[%s4568_s6 + $0x78] sm:$0xff] %vm915_vm2, %v2457_v37  ;;  %v1856_v2 = vadd.f32 %v3079_v20, %v4597_v17  ;;  %v1847_v51 = vpop.f32.mrb[65].mxu0  ;;  %v3013_v55 = vpop.f32.mrb[67].mxu1  ;;  %v2267_v14 = vor.u32 %v2266_v30, %v4684_v3  ;;  %v2323_v17 = vshrl.u32 %v2800_v9, 16  ;;  %v2263_v53 = vsel %vm4235_vm5, %v4708_v62, %v4684_v3 }
 0x1f4   : > { %2487 = vst.msk [vmem:[%s4568_s6 + $0x68] sm:$0xff] %vm915_vm2, %v2455_v21  ;;  %v1848_v23 = vadd.f32 %v1847_v51, %v4548_v7  ;;  %v3014_v57 = vadd.f32 %v3013_v55, %v3012_v43  ;;  %v3080_v58 = vpop.f32.mrb[66].mxu0  ;;  %v4727_v10 = vadd.f32 %v3011_v16, %v4506_v22  ;;  %v2326_v7 = vshll.u32 %v2800_v9, 16 }
 0x1f5   : > { %v2428_v5 = vadd.f32 %v4515_v28, %v1856_v2  ;;  %v1859_v0 = vadd.f32 %v3080_v58, %v4603_v27  ;;  %v1850_v19 = vpop.f32.mrb[67].mxu0  ;;  %v4742_v29 = vrot.slane %v2270_v63, 5  ;;  %v2798_v28 = vld [vmem:[%s4199_s26 + $0xb8] sm:$0xf]  ;;  %v2299_v61 = vshrl.u32 %v2797_v15, 16 }
 0x1f6   : > { %v2426_v40 = vadd.f32 %v4517_v36, %v1848_v23  ;;  %v1851_v22 = vadd.f32 %v1850_v19, %v4557_v26  ;;  %v4740_v47 = vadd.f32 %v3014_v57, %v4512_v39  ;;  %v2302_v41 = vshll.u32 %v2797_v15, 16 }
 0x1f7   : > { %v2460_v27 = vmax.f32 %v2428_v5, 0.0  ;;  %v2429_v44 = vadd.f32 %v4565_v34, %v1859_v0  ;;  %v2297_v39 = vsel %vm4235_vm5, %v4720_v4, %v4713_v24  ;;  %v2332_v36 = vshll.u32 %v2801_v60, 16 }
 0x1f8   : > { %v2458_v50 = vmax.f32 %v2426_v40, 0.0  ;;  %v2427_v31 = vadd.f32 %v4572_v11, %v1851_v22  ;;  %v3015_v30 = vpop.f32.mrb[68].mxu1  ;;  %v2268_v35 = vrot.slane %v2267_v14, 4  ;;  %v2308_v59 = vshll.u32 %v2798_v28, 16 }
 0x1f9   : > { %2492 = vst.msk [vmem:[%s4568_s6 + $0x90] sm:$0xff] %vm915_vm2, %v2460_v27  ;;  %v2461_v26 = vmax.f32 %v2429_v44, 0.0  ;;  %v3016_v8 = vpop.f32.mrb[69].mxu1  ;;  %v2312_v34 = vshrl.u32 %v2798_v28, 16  ;;  %v2325_v52 = vrot.slane %v2323_v17, 4  ;;  %v2336_v9 = vshrl.u32 %v2801_v60, 16 }
 0x1fa   : > { %2490 = vst.msk [vmem:[%s4568_s6 + $0x80] sm:$0xff] %vm915_vm2, %v2458_v50  ;;  %v2459_v49 = vmax.f32 %v2427_v31, 0.0  ;;  %v3017_v11 = vadd.f32 %v3016_v8, %v3015_v30  ;;  %v3083_v33 = vpop.f32.mrb[68].mxu0  ;;  %v3018_v37 = vpop.f32.mrb[70].mxu1  ;;  %v2328_v43 = vrot.slane %v2326_v7, 5  ;;  %v2301_v24 = vrot.slane %v2299_v61, 4 }
 0x1fb   : > { %2493 = vst.msk [vmem:[%s4568_s6 + $0x98] sm:$0xff] %vm915_vm2, %v2461_v26  ;;  %v1872_v21 = vadd.f32 %v3083_v33, %v4680_v38  ;;  %v1863_v16 = vpop.f32.mrb[69].mxu0  ;;  %v3019_v20 = vpop.f32.mrb[71].mxu1  ;;  %v2304_v63 = vrot.slane %v2302_v41, 5  ;;  %v4762_v14 = vrot.slane %v2332_v36, 5  ;;  %v4766_v58 = vrot.slane %v2308_v59, 5 }
 0x1fc   : > { %2491 = vst.msk [vmem:[%s4568_s6 + $0x88] sm:$0xff] %vm915_vm2, %v2459_v49  ;;  %v1864_v2 = vadd.f32 %v1863_v16, %v4646_v46  ;;  %v3020_v51 = vadd.f32 %v3019_v20, %v3018_v37  ;;  %v3084_v55 = vpop.f32.mrb[70].mxu0  ;;  %v1727_v4 = vadd.f32 %v3017_v11, %v4528_v25  ;;  %v2802_v17 = vld [vmem:[%s4199_s26 + $0xc8] sm:$0x1]  ;;  %v2314_v15 = vrot.slane %v2312_v34, 4 }
 0x1fd   : > { %v2432_v23 = vadd.f32 %v4614_v56, %v1872_v21  ;;  %v1875_v38 = vadd.f32 %v3084_v55, %v4688_v42  ;;  %v1866_v57 = vpop.f32.mrb[71].mxu0  ;;  %v2338_v19 = vrot.slane %v2336_v9, 4  ;;  %v2799_v25 = vld [vmem:[%s4199_s26 + $0xbc] sm:$0x1]  ;;  %v2329_v7 = vor.u32 %v2328_v43, %v2325_v52  ;;  %v4942_v55 = vld [vmem:[#allocation6_spill] sm:$0xff]  ;;  %s3265_s26 = scalar_lea.vmem %s3264_s22, 8192 }
 0x1fe   : > { %v2430_v5 = vadd.f32 %v4698_v12, %v1864_v2  ;;  %v1867_v46 = vadd.f32 %v1866_v57, %v4652_v32  ;;  %v1730_v0 = vadd.f32 %v3020_v51, %v4562_v54  ;;  %v2305_v42 = vor.u32 %v2304_v63, %v2301_v24  ;;  %p3267_p2 = scmp.lt.s32.totalorder %s3265_s26, %s3259_s21 }
 0x1ff   : > { %v2464_v60 = vmax.f32 %v2432_v23, 0.0  ;;  %v2433_v56 = vadd.f32 %v4704_v13, %v1875_v38  ;;  %v2273_v12 = vsel %vm4235_vm5, %v2268_v35, %v4742_v29  ;;  %v2342_v32 = vshll.u32 %v2802_v17, 16 }
 0x200   : > { %v2462_v40 = vmax.f32 %v2430_v5, 0.0  ;;  %v2431_v22 = vadd.f32 %v4706_v6, %v1867_v46  ;;  %v3021_v28 = vpop.f32.mrb[72].mxu1  ;;  %v2402_v13 = vunpack.c.l.bf16 %v2263_v53  ;;  %v2315_v44 = vor.u32 %v2314_v15, %v4766_v58  ;;  %v4943_v46 = vld [vmem:[#allocation7_spill] sm:$0xff]  ;;  %p3268_p3 = por %p3267_p2, %p3266_p1 }
 0x201   : > { %2496 = vst.msk [vmem:[%s4568_s6 + $0xb0] sm:$0xff] %vm915_vm2, %v2464_v60  ;;  %v2465_v54 = vmax.f32 %v2433_v56, 0.0  ;;  %v3022_v27 = vpop.f32.mrb[73].mxu1  ;;  %v2318_v6 = vshll.u32 %v2799_v25, 16  ;;  %v2405_v31 = vunpack.c.l.bf16 %v2297_v39  ;;  %v2339_v30 = vor.u32 %v2338_v19, %v4762_v14 }
 0x202   : > { %2494 = vst.msk [vmem:[%s4568_s6 + $0xa0] sm:$0xff] %vm915_vm2, %v2462_v40  ;;  %v2463_v61 = vmax.f32 %v2431_v22, 0.0  ;;  %v3023_v41 = vadd.f32 %v3022_v27, %v3021_v28  ;;  %v3087_v29 = vpop.f32.mrb[72].mxu0  ;;  %v3024_v50 = vpop.f32.mrb[74].mxu1  ;;  %v2403_v3 = vunpack.c.l.bf16 %v2273_v12  ;;  %v2330_v62 = vrot.slane %v2329_v7, 4  ;;  %p3269_p5 = pnand %p3268_p3, %p3262_p0 }
 0x203   : > { %2497 = vst.msk [vmem:[%s4568_s6 + $0xb8] sm:$0xff] %vm915_vm2, %v2465_v54  ;;  %v1888_v36 = vadd.f32 %v3087_v29, %v1727_v4  ;;  %v1879_v26 = vpop.f32.mrb[73].mxu0  ;;  %v3025_v8 = vpop.f32.mrb[75].mxu1  ;;  %v2306_v53 = vrot.slane %v2305_v42, 4  ;;  %v2344_v11 = vrot.slane %v2342_v32, 5  ;;  %v2316_v52 = vrot.slane %v2315_v44, 4 }
 0x204   : > { %2495 = vst.msk [vmem:[%s4568_s6 + $0xa8] sm:$0xff] %vm915_vm2, %v2463_v61  ;;  %v1880_v35 = vadd.f32 %v1879_v26, %v4727_v10  ;;  %v3026_v59 = vadd.f32 %v3025_v8, %v3024_v50  ;;  %v3088_v34 = vpop.f32.mrb[74].mxu0  ;;  %v1735_v49 = vadd.f32 %v3023_v41, %v4611_v45  ;;  %v2320_v9 = vrot.slane %v2318_v6, 5 }
 0x205   : > { %v2436_v39 = vadd.f32 %v4718_v18, %v1888_v36  ;;  %v1891_v33 = vadd.f32 %v3088_v34, %v1730_v0  ;;  %v1882_v37 = vpop.f32.mrb[75].mxu0  ;;  %v2340_v20 = vrot.slane %v2339_v30, 4  ;;  %v2311_v45 = vsel %vm4235_vm5, %v2306_v53, %v4766_v58 }
 0x206   : > { %v2434_v21 = vadd.f32 %v2402_v13, %v1880_v35  ;;  %v1883_v16 = vadd.f32 %v1882_v37, %v4740_v47  ;;  %v1738_v43 = vadd.f32 %v3026_v59, %v4618_v1  ;;  %v2335_v51 = vsel %vm4235_vm5, %v2330_v62, %v4762_v14  ;;  %v3258_v47 = vld [vmem:[%s4888_s2] ss:$0 sm:$0xff] }
 0x207   : > { %v2468_v10 = vmax.f32 %v2436_v39, 0.0  ;;  %v2437_v24 = vadd.f32 %v2405_v31, %v1891_v33  ;;  %v1582_v1 = vadd.f32 %v3258_v47, %v4942_v55  ;;  %v2321_v38 = vsel %vm4235_vm5, %v2316_v52, %v2320_v9 }
 0x208   : > { %v2466_v63 = vmax.f32 %v2434_v21, 0.0  ;;  %v2435_v18 = vadd.f32 %v2403_v3, %v1883_v16  ;;  %v3027_v2 = vpop.f32.mrb[76].mxu1  ;;  %v2406_v15 = vunpack.c.l.bf16 %v2311_v45  ;;  %v2345_v5 = vsel %vm4235_vm5, %v2340_v20, %v2344_v11 }
 0x209   : > { %2500 = vst.msk [vmem:[%s4568_s6 + $0xd0] sm:$0xff] %vm915_vm2, %v2468_v10  ;;  %v2469_v4 = vmax.f32 %v2437_v24, 0.0  ;;  %v3028_v23 = vpop.f32.mrb[77].mxu1  ;;  %v1585_v0 = vadd.f32 %v3258_v47, %v4943_v46  ;;  %v2408_v19 = vunpack.c.l.bf16 %v2335_v51  ;;  %v2407_v22 = vunpack.c.l.bf16 %v2321_v38 }
 0x20a   : > { %2498 = vst.msk [vmem:[%s4568_s6 + $0xc0] sm:$0xff] %vm915_vm2, %v2466_v63  ;;  %v2467_v57 = vmax.f32 %v2435_v18, 0.0  ;;  %v3029_v58 = vadd.f32 %v3028_v23, %v3027_v2  ;;  %v3091_v17 = vpop.f32.mrb[76].mxu0  ;;  %v3030_v14 = vpop.f32.mrb[78].mxu1  ;;  %v2409_v28 = vunpack.c.l.bf16 %v2345_v5 }
 0x20b   : > { %2501 = vst.msk [vmem:[%s4568_s6 + $0xd8] sm:$0xff] %vm915_vm2, %v2469_v4  ;;  %v1895_v25 = vpop.f32.mrb[77].mxu0  ;;  %v3031_v60 = vpop.f32.mrb[79].mxu1 }
 0x20c   : > { %2499 = vst.msk [vmem:[%s4568_s6 + $0xc8] sm:$0xff] %vm915_vm2, %v2467_v57  ;;  %v1743_v56 = vadd.f32 %v3029_v58, %v1582_v1  ;;  %v1896_v7 = vadd.f32 %v1895_v25, %v1735_v49  ;;  %v3032_v42 = vadd.f32 %v3031_v60, %v3030_v14  ;;  %v3092_v40 = vpop.f32.mrb[78].mxu0 }
 0x20d   : > { %v1898_v48 = vpop.f32.mrb[79].mxu0 }
 0x20e   : > { %v1904_v12 = vadd.f32 %v3091_v17, %v1743_v56  ;;  %v2438_v32 = vadd.f32 %v2406_v15, %v1896_v7  ;;  %v1746_v54 = vadd.f32 %v3032_v42, %v1585_v0  ;;  %v1899_v27 = vadd.f32 %v1898_v48, %v1738_v43 }
 0x210   : > { %v2440_v13 = vadd.f32 %v2408_v19, %v1904_v12  ;;  %v2470_v44 = vmax.f32 %v2438_v32, 0.0  ;;  %v1907_v6 = vadd.f32 %v3092_v40, %v1746_v54  ;;  %v2439_v61 = vadd.f32 %v2407_v22, %v1899_v27 }
 0x212   : > { %v2472_v41 = vmax.f32 %v2440_v13, 0.0  ;;  %2502 = vst.msk [vmem:[%s4568_s6 + $0xe0] sm:$0xff] %vm915_vm2, %v2470_v44  ;;  %v2441_v29 = vadd.f32 %v2409_v28, %v1907_v6  ;;  %v2471_v50 = vmax.f32 %v2439_v61, 0.0 }
 0x214   : > { %2504 = vst.msk [vmem:[%s4568_s6 + $0xf0] sm:$0xff] %vm915_vm2, %v2472_v41  ;;  %v2473_v31 = vmax.f32 %v2441_v29, 0.0  ;;  %2503 = vst.msk [vmem:[%s4568_s6 + $0xe8] sm:$0xff] %vm915_vm2, %v2471_v50 }
 0x216   : > { %2505 = vst.msk [vmem:[%s4568_s6 + $0xf8] sm:$0xff] %vm915_vm2, %v2473_v31 }
 0x217   : > { %3272 = shalt.err (!%p3269_p5)
}
 0x218   : > { %s3273_s5 = scalar_lea.hbm %s4828_s14, 4096  ;;  %s3277_s30 = scalar_lea.hbm %s4890_s4, 8192 }
 0x219   : > { %p3274_p6 = scmp.ne.s32.totalorder %s4828_s14, %s3273_s5  ;;  %p3278_p10 = scmp.lt.u32.totalorder %s4828_s14, %s4890_s4 }
 0x21a   : > { %p3279_p11 = scmp.lt.u32.totalorder %s3277_s30, %s3273_s5  ;;  %p3281_p13 = scmp.lt.u32.totalorder %s3273_s5, %s4828_s14 }
 0x21b   : > { %p3275_p7 = pnand %p3274_p6, %p3408_p4 }
 0x21c   : > { %p3280_p12 = por %p3279_p11, %p3278_p10 }
 0x21d   : > { %p3276_p9 = pneg %p3275_p7 }
 0x21e   : > { %p3282_p0 = por %p3281_p13, %p3280_p12 }
 0x220   : > { %p3283_p1 = pnand %p3282_p0, %p3276_p9 }
 0x222   : > { %3286 = shalt.err (!%p3283_p1)
}
 0x223   : > { %s3341_s9 = smov 128   ;;  %s3342_s7 = smov 8  }
 0x224   : > { %3110 = dma.vmem_to_hbm [thread:$0]  (%p3408_p4), %s4830_s11, 4096, %s4828_s14, %s4840_s18, %s3341_s9, %s3341_s9, %s3342_s7  }
 0x225 PF: > { %p3116_p2 = scmp.ge.s32.totalorder %s3337_s20, 2  ;;  %s2536_s12 = sand.u32 1, %s3317_s15  }
 0x226   : > { %s2537_s13 = scalar_lea.sflag [#allocation3], %s2536_s12 }
 0x227   : > { %p3113_p3 = pnand %p3116_p2, %p3415_p8 }
 0x229   : > { %3312 = dma.done.wait (!%p3113_p3), %s2537_s13, 4096  }
 0x22a   : > { %3314 = vsyncadd (!%p3113_p3), %s2537_s13, 4294963200  ;;  %s17_s20 = sadd.s32 1, %s3337_s20   ;;  %s4944_s15 = smov %s3321_s16 }
 0x22b   : > { %p14_p5 = scmp.ge.s32.totalorder %s17_s20, 4   ;;  %s4945_s16 = smov %s3325_s17 }
 0x22c   : > { %s4946_s17 = smov %s3421_s28  ;;  %s4947_s18 = smov %s3333_s19 }
 0x22d   : > { %s4948_s19 = smov %s4950_s23  ;;  %16 = sbr.rel (!%p14_p5) target bundleno = 4 (0x4), region = 81 }
 0x234   :  { %2542 = vsyncpa [#allocation3], 1 }
 0x235   :  { %2544 = vsyncpa [#allocation3 + $0x1], 1 }

// kernel: basic_block_forward.2
= control target key start
LH: loop header
LB: loop body
LE: loop exit
PB: predicated region body
PF: predicated region fallthrough
CT: control target
= control target key end

     0   :  { %s3316_s12 = smov 0   ;;  %s3318_s13 = smov 0   ;;  %s4698_s0 = inlined_call_operand.vmem [shape: bf16[2,18,18,64], index: 0, kind: input, shape index: {}]   ;;  %s4699_s1 = inlined_call_operand.vmem [shape: bf16[576,64], index: 1, kind: input, shape index: {}]   ;;  %s4700_s2 = inlined_call_operand.vmem [shape: f32[1,64], index: 2, kind: input, shape index: {}]   ;;  %s4701_s3 = inlined_call_operand.vmem [shape: bf16[2,18,18,64], index: 3, kind: output, shape index: {}]  }
   0x1   :  { %s3320_s14 = smov 0  }
   0x2 LB: > { %s22_s15 = sadd.s32 1, %s3288_s13  ;;  %p2596_p0 = scmp.ge.s32.totalorder %s3292_s14, 1  ;;  %s3292_s14 = sphi %s3320_s14, %s13_s14   ;;  %s3288_s13 = sphi %s3318_s13, %s4724_s13   ;;  %s3284_s12 = sphi %s3316_s12, %s4723_s12  }
   0x3   : > { %p23_p1 = scmp.ge.s32.totalorder %s22_s15, 2  ;;  %p168_p2 = scmp.lt.s32.totalorder %s3292_s14, 3 }
   0x5   : > { %s4726_s15 = smov (%p23_p1, %s22_s15), 0  ;;  %p169_p3 = pnand %p2596_p0, %p168_p2 }
   0x7   : > { %172 = sbr.rel (%p169_p3) target bundleno = 553 (0x229), region = 32 }
   0xe   : > { %p202_p4 = scmp.lt.s32.totalorder %s3284_s12, 1  ;;  %v3218_v0 = vld [vmem:[%s4699_s1 + $0x40] sm:$0xff]   ;;  %v3221_v2 = vld [vmem:[%s4699_s1 + $0x48] sm:$0xff]   ;;  %v3224_v4 = vld [vmem:[%s4699_s1 + $0x50] sm:$0xff]   ;;  %vm423_vm0 = vsmask.f32 7424 }
   0xf   : > { %3136 = vmatprep.subr.bf16.mxu1 %v3218_v0  ;;  %v3219_v1 = vld [vmem:[%s4699_s1] sm:$0xff]   ;;  %2852 = vmatprep.subr.bf16.mxu0 %v3218_v0  ;;  %v3222_v3 = vld [vmem:[%s4699_s1 + $0x8] sm:$0xff]   ;;  %v3225_v5 = vld [vmem:[%s4699_s1 + $0x10] sm:$0xff]   ;;  %s3294_s7 = smov 64   ;;  %vm696_vm1 = vcmask 1046528   ;;  %vm865_vm2 = vcmask 523264  }
  0x10   : > { %s4728_s12 = smov (!%p202_p4, %s3284_s12), 1  ;;  %3144 = vmatpush3.bf16.msra.mxu1 %v3219_v1  ;;  %2853 = vmatpush3.bf16.msra.mxu0 %v3219_v1  ;;  %v3226_v16 = vld [vmem:[%s4699_s1 + $0x58] sm:$0xff]   ;;  %vm1908_vm3 = vcmask 519168   ;;  %vm1911_vm4 = vcmask 516096   ;;  %vm2369_vm5 = vsmask.f32 7938 }
  0x11   : > { %s3152_s22 = smul.u32 216, %s4728_s12  ;;  %3137 = vmatprep.subr.bf16.mxu1 %v3221_v2  ;;  %2854 = vmatprep.subr.bf16.mxu0 %v3221_v2  ;;  %v3227_v1 = vld [vmem:[%s4699_s1 + $0x18] sm:$0xff]   ;;  %vm2044_vm6 = vsmask.f32 256  ;;  %vm2045_vm7 = vsmask.f32 4368  ;;  %vm4336_vm8 = vmand %vm1908_vm3, %vm2369_vm5 }
  0x12   : > { %vm4345_vm9 = vmor %vm2044_vm6, %vm2045_vm7 }
  0x13   : > { %s3357_s29 = scalar_lea.vmem %s4698_s0, %s3152_s22  ;;  %s4088_s4 = scalar_lea.vmem %s4701_s3, %s3152_s22  ;;  %vm4351_vm10 = vmand %vm1911_vm4, %vm2044_vm6 }
  0x14   : > { %v249_v6 = vld [vmem:[%s3357_s29 + $0x9c] sm:$0xf]  ;;  %v3364_v7 = vld [vmem:[%s3357_s29 + $0xa0] sm:$0xf]  ;;  %v225_v8 = vld [vmem:[%s3357_s29 + $0xc] sm:$0xf]  ;;  %3145 = vmatpush3.bf16.msra.mxu1 %v3222_v3  ;;  %2855 = vmatpush3.bf16.msra.mxu0 %v3222_v3 }
  0x15   : > { %v3368_v9 = vcombine.low %v249_v6, %v3364_v7  ;;  %v3371_v10 = vld [vmem:[%s3357_s29 + $0x10] sm:$0xf]  ;;  %v3375_v12 = vld [vmem:[%s3357_s29 + $0x94] sm:$0xf]  ;;  %3138 = vmatprep.subr.bf16.mxu1 %v3224_v4  ;;  %2856 = vmatprep.subr.bf16.mxu0 %v3224_v4  ;;  %v223_v17 = vld [vmem:[%s3357_s29] sm:$0xf] }
  0x16   : > { %v247_v11 = vld [vmem:[%s3357_s29 + $0x90] sm:$0xf]  ;;  %v3378_v13 = vcombine.low %v225_v8, %v3371_v10  ;;  %v3384_v15 = vld [vmem:[%s3357_s29 + $0x98] ss:$0 sps:$4 sm:$0x11]  }
  0x17   : > { %v3381_v14 = vcombine.low %v247_v11, %v3375_v12  ;;  %774 = vrot.lane.b32.xlu0 %v3368_v9, %s3294_s7  ;;  %v3393_v18 = vld [vmem:[%s3357_s29 + $0x4] sm:$0xf]  ;;  %v576_v21 = vshll.u32 %v3384_v15, 16  ;;  %v3404_v23 = vld [vmem:[%s3357_s29 + $0x8] ss:$0 sps:$4 sm:$0x11]  }
  0x18   : > { %750 = vrot.lane.b32.xlu1 %v3378_v13, %s3294_s7  ;;  %v3401_v22 = vcombine.low %v223_v17, %v3393_v18  ;;  %v251_v24 = vld [vmem:[%s3357_s29 + $0xa8] sm:$0xf]  ;;  %v3408_v25 = vld [vmem:[%s3357_s29 + $0xac] sm:$0xf]  ;;  %3146 = vmatpush3.bf16.msra.mxu1 %v3225_v5  ;;  %v227_v30 = vld [vmem:[%s3357_s29 + $0x18] sm:$0xf] }
  0x19   : > { %v569_v19 = vshrl.u32 %v3381_v14, 16  ;;  %v571_v20 = vshll.u32 %v3381_v14, 16  ;;  %2857 = vmatpush3.bf16.msra.mxu0 %v3225_v5  ;;  %v578_v27 = vrot.slane %v576_v21, 1  ;;  %3139 = vmatprep.subr.bf16.mxu1 %v3226_v16  ;;  %v432_v31 = vshll.u32 %v3404_v23, 16  ;;  %v3420_v37 = vld [vmem:[%s3357_s29 + $0x1c] sm:$0xf] }
  0x1a   : > { %v425_v28 = vshrl.u32 %v3401_v22, 16  ;;  %v427_v29 = vshll.u32 %v3401_v22, 16  ;;  %2858 = vmatprep.subr.bf16.mxu0 %v3226_v16  ;;  %v3415_v32 = vld [vmem:[%s3357_s29 + $0xa4] ss:$0 sps:$4 sm:$0x11]   ;;  %v581_v33 = vshrl.u32 %v3368_v9, 16  ;;  %v3423_v39 = vcombine.low %v251_v24, %v3408_v25 }
  0x1b   : > { %v573_v26 = vrot.slane %v571_v20, 1  ;;  %v583_v34 = vshll.u32 %v3368_v9, 16  ;;  %v434_v38 = vrot.slane %v432_v31, 1  ;;  %v588_v41 = vshll.u32 %v3415_v32, 16  ;;  %v253_v51 = vld [vmem:[%s3357_s29 + $0xb4] sm:$0xf] }
  0x1c   : > { %v429_v36 = vrot.slane %v427_v29, 1  ;;  %v3427_v42 = vld [vmem:[%s3357_s29 + $0x14] ss:$0 sps:$4 sm:$0x11]   ;;  %v437_v45 = vshrl.u32 %v3378_v13, 16  ;;  %v439_v46 = vshll.u32 %v3378_v13, 16  ;;  %v3437_v49 = vcombine.low %v227_v30, %v3420_v37  ;;  %3147 = vmatpush3.bf16.msra.mxu1 %v3227_v1 }
  0x1d   : > { %v574_v35 = vor.u32 %v573_v26, %v569_v19  ;;  %v585_v40 = vrot.slane %v583_v34, 1  ;;  %v590_v48 = vrot.slane %v588_v41, 1  ;;  %v444_v50 = vshll.u32 %v3427_v42, 16  ;;  %v3442_v52 = vld [vmem:[%s3357_s29 + $0xb8] sm:$0xf]  ;;  %2859 = vmatpush3.bf16.msra.mxu0 %v3227_v1 }
  0x1e   : > { %v430_v44 = vor.u32 %v429_v36, %v425_v28  ;;  %v441_v54 = vrot.slane %v439_v46, 1  ;;  %v3446_v55 = vld [vmem:[%s3357_s29 + $0xb0] ss:$0 sps:$4 sm:$0x11]   ;;  %v595_v56 = vshll.u32 %v3423_v39, 16  ;;  %v593_v58 = vshrl.u32 %v3423_v39, 16 }
  0x1f   : > { %v3430_v43 = vsel %vm423_vm0, %v574_v35, %v578_v27  ;;  %v586_v47 = vor.u32 %v585_v40, %v581_v33  ;;  %v446_v57 = vrot.slane %v444_v50, 1  ;;  %v451_v59 = vshll.u32 %v3437_v49, 16  ;;  %v3457_v0 = vld [vmem:[%s3357_s29 + $0x20] ss:$0 sps:$4 sm:$0x11]  }
  0x20   : > { %4707 = vst [vmem:[#allocation2_spill] sm:$0xff] %v3430_v43  ;;  %640 = vrot.lane.b32.xlu0 %v3430_v43, %s3294_s7  ;;  %v435_v53 = vsel %vm423_vm0, %v430_v44, %v434_v38  ;;  %v442_v61 = vor.u32 %v441_v54, %v437_v45  ;;  %v597_v62 = vrot.slane %v595_v56, 1  ;;  %v600_v63 = vshll.u32 %v3446_v55, 16  ;;  %v229_v3 = vld [vmem:[%s3357_s29 + $0x24] sm:$0xf] }
  0x21   : > { %616 = vrot.lane.b32.xlu1 %v435_v53, %s3294_s7  ;;  %v3453_v60 = vsel %vm423_vm0, %v586_v47, %v590_v48  ;;  %v3465_v2 = vcombine.low %v253_v51, %v3442_v52  ;;  %v3471_v5 = vld [vmem:[%s3357_s29 + $0x28] sm:$0xf]  ;;  %v449_v6 = vshrl.u32 %v3437_v49, 16  ;;  %v453_v8 = vrot.slane %v451_v59, 1  ;;  %v231_v24 = vld [vmem:[%s3357_s29 + $0x30] sm:$0xf] }
  0x22   : > { %4708 = vst [vmem:[#allocation3_spill] sm:$0xff] %v3453_v60  ;;  %v602_v4 = vrot.slane %v600_v63, 1  ;;  %v456_v11 = vshll.u32 %v3457_v0, 16  ;;  %v3476_v16 = vsel %vm423_vm0, %v442_v61, %v446_v57  ;;  %v598_v17 = vor.u32 %v597_v62, %v593_v58  ;;  %v3479_v19 = vld [vmem:[%s3357_s29 + $0xbc] ss:$0 sps:$4 sm:$0x11]  }
  0x23   : > { %v607_v20 = vshll.u32 %v3465_v2, 16  ;;  %v3485_v21 = vcombine.low %v229_v3, %v3471_v5  ;;  %v454_v26 = vor.u32 %v453_v8, %v449_v6  ;;  %v605_v28 = vshrl.u32 %v3465_v2, 16  ;;  %v3492_v29 = vld [vmem:[%s3357_s29 + $0x34] sm:$0xf]  ;;  %v255_v36 = vld [vmem:[%s3357_s29 + $0xc0] sm:$0xf] }
  0x24   : > { %776 = vrot.lane.b32.xlu0 %v3423_v39, %s3294_s7  ;;  %v458_v27 = vrot.slane %v456_v11, 1  ;;  %v3495_v30 = vsel %vm423_vm0, %v598_v17, %v602_v4  ;;  %v612_v33 = vshll.u32 %v3479_v19, 16  ;;  %v3499_v34 = vld [vmem:[%s3357_s29 + $0x2c] ss:$0 sps:$4 sm:$0x11]   ;;  %v3514_v41 = vcombine.low %v231_v24, %v3492_v29  ;;  %v3230_v4 = vld [vmem:[%s4699_s1 + $0x20] sm:$0xff]  }
  0x25   : > { %642 = vrot.lane.b32.xlu1 %v3453_v60, %s3294_s7  ;;  %4709 = vst [vmem:[#allocation4_spill] sm:$0xff] %v3495_v30  ;;  %v609_v31 = vrot.slane %v607_v20, 1  ;;  %v463_v35 = vshll.u32 %v3485_v21, 16  ;;  %v3506_v38 = vld [vmem:[%s3357_s29 + $0xc4] sm:$0xf]  ;;  %v461_v44 = vshrl.u32 %v3485_v21, 16 }
  0x26   : > { %v3511_v40 = vsel %vm423_vm0, %v454_v26, %v458_v27  ;;  %v278_v45 = vld [vmem:[%s3357_s29 + $0xc] sm:$0xe]  ;;  %v614_v47 = vrot.slane %v612_v33, 1  ;;  %v468_v50 = vshll.u32 %v3499_v34, 16  ;;  %v3522_v51 = vcombine.low %v255_v36, %v3506_v38  ;;  %v233_v53 = vld [vmem:[%s3357_s29 + $0x3c] sm:$0xf] }
  0x27   : > { %v610_v46 = vor.u32 %v609_v31, %v605_v28  ;;  %v465_v48 = vrot.slane %v463_v35, 1  ;;  %v2632_v54 = vcombine.low %v278_v45, %v3371_v10  ;;  %v3527_v56 = vld [vmem:[%s3357_s29 + $0x40] sm:$0xf]  ;;  %v3530_v57 = vld [vmem:[%s3357_s29 + $0x38] ss:$0 sps:$4 sm:$0x11]  }
  0x28   : > { %752 = vrot.lane.b32.xlu0 %v3437_v49, %s3294_s7  ;;  %v475_v58 = vshll.u32 %v3514_v41, 16  ;;  %v470_v62 = vrot.slane %v468_v50, 1  ;;  %v279_v63 = vld [vmem:[%s3357_s29 + $0x18] sm:$0xe]  ;;  %v3229_v10 = vld [vmem:[%s4699_s1 + $0x60] sm:$0xff]   ;;  %v701_v1 = vrot.slane %v3427_v42, 1  ;;  %v3546_v3 = vcombine.low %v233_v53, %v3527_v56 }
  0x29   : > { %618 = vrot.lane.b32.xlu1 %v3476_v16, %s3294_s7  ;;  %v3536_v59 = vsel %vm423_vm0, %v610_v46, %v614_v47  ;;  %v466_v61 = vor.u32 %v465_v48, %v461_v44  ;;  %v700_v6 = vrot.slane %v2632_v54, 1  ;;  %v473_v8 = vshrl.u32 %v3514_v41, 16  ;;  %3140 = vmatprep.subr.bf16.mxu1 %v3229_v10  ;;  %v235_v20 = vld [vmem:[%s3357_s29 + $0x48] sm:$0xf]  ;;  %v3558_v24 = vld [vmem:[%s3357_s29 + $0x4c] sm:$0xf] }
  0x2a   : > { %4710 = vst [vmem:[#allocation5_spill] sm:$0xff] %v3536_v59  ;;  %v477_v11 = vrot.slane %v475_v58, 1  ;;  %v480_v17 = vshll.u32 %v3530_v57, 16  ;;  %2860 = vmatprep.subr.bf16.mxu0 %v3229_v10  ;;  %v2633_v42 = vcombine.low %v279_v63, %v3420_v37  ;;  %3148 = vmatpush3.bf16.msra.mxu1 %v3230_v4  ;;  %v3564_v27 = vld [vmem:[%s3357_s29 + $0x44] ss:$0 sps:$4 sm:$0x11]   ;;  %v3587_v50 = vcombine.low %v235_v20, %v3558_v24 }
  0x2b   : > { %v3561_v26 = vsel %vm423_vm0, %v466_v61, %v470_v62  ;;  %v487_v28 = vshll.u32 %v3546_v3, 16  ;;  %2861 = vmatpush3.bf16.msra.mxu0 %v3230_v4  ;;  %v3231_v31 = vld [vmem:[%s4699_s1 + $0x68] sm:$0xff]   ;;  %v280_v37 = vld [vmem:[%s3357_s29 + $0x24] sm:$0xe]  ;;  %v3577_v35 = vsel %vm696_vm1, %v700_v6, %v701_v1  ;;  %v704_v45 = vrot.slane %v3457_v0, 1  ;;  %v3234_v63 = vld [vmem:[%s4699_s1 + $0x70] sm:$0xff]  }
  0x2c   : > { %778 = vrot.lane.b32.xlu0 %v3465_v2, %s3294_s7  ;;  %v3232_v33 = vld [vmem:[%s4699_s1 + $0x28] sm:$0xff]   ;;  %v478_v36 = vor.u32 %v477_v11, %v473_v8  ;;  %v482_v44 = vrot.slane %v480_v17, 1  ;;  %v237_v46 = vld [vmem:[%s3357_s29 + $0x54] sm:$0xf]  ;;  %v3582_v47 = vld [vmem:[%s3357_s29 + $0x58] sm:$0xf]  ;;  %3141 = vmatprep.subr.bf16.mxu1 %v3231_v31  ;;  %v2634_v61 = vcombine.low %v280_v37, %v3471_v5 }
  0x2d   : > { %644 = vrot.lane.b32.xlu1 %v3495_v30, %s3294_s7  ;;  %2862 = vmatprep.subr.bf16.mxu0 %v3231_v31  ;;  %v703_v48 = vrot.slane %v2633_v42, 1  ;;  %v3590_v53 = vld [vmem:[%s3357_s29 + $0x50] ss:$0 sps:$4 sm:$0x11]   ;;  %v485_v54 = vshrl.u32 %v3546_v3, 16  ;;  %v489_v58 = vrot.slane %v487_v28, 1  ;;  %v3609_v4 = vcombine.low %v237_v46, %v3582_v47 }
  0x2e   : > { %3149 = vmatpush3.bf16.msra.mxu1 %v3232_v33  ;;  %v492_v0 = vshll.u32 %v3564_v27, 16  ;;  %v281_v62 = vld [vmem:[%s3357_s29 + $0x30] sm:$0xe]  ;;  %v3602_v10 = vsel %vm423_vm0, %v478_v36, %v482_v44  ;;  %v499_v1 = vshll.u32 %v3587_v50, 16  ;;  %v707_v5 = vrot.slane %v3499_v34, 1  ;;  %v3240_v30 = vld [vmem:[%s4699_s1 + $0xc0] sm:$0xff]  }
  0x2f   : > { %2863 = vmatpush3.bf16.msra.mxu0 %v3232_v33  ;;  %3142 = vmatprep.subr.bf16.mxu1 %v3234_v63  ;;  %v504_v6 = vshll.u32 %v3590_v53, 16  ;;  %v2635_v8 = vcombine.low %v281_v62, %v3492_v29  ;;  %v3614_v11 = vld [vmem:[%s3357_s29 + $0x5c] ss:$0 sps:$4 sm:$0x11]   ;;  %v3617_v17 = vsel %vm696_vm1, %v703_v48, %v704_v45  ;;  %v490_v42 = vor.u32 %v489_v58, %v485_v54  ;;  %v239_v31 = vld [vmem:[%s3357_s29 + $0x60] sm:$0xf] }
  0x30   : > { %754 = vrot.lane.b32.xlu0 %v3485_v21, %s3294_s7  ;;  %2864 = vmatprep.subr.bf16.mxu0 %v3234_v63  ;;  %v494_v20 = vrot.slane %v492_v0, 1  ;;  %v706_v28 = vrot.slane %v2634_v61, 1  ;;  %v497_v34 = vshrl.u32 %v3587_v50, 16  ;;  %v3624_v37 = vld [vmem:[%s3357_s29 + $0x64] sm:$0xf]  ;;  %v511_v29 = vshll.u32 %v3609_v4, 16 }
  0x31   : > { %620 = vrot.lane.b32.xlu1 %v3511_v40, %s3294_s7  ;;  %v501_v33 = vrot.slane %v499_v1, 1  ;;  %v710_v36 = vrot.slane %v3530_v57, 1  ;;  %v506_v44 = vrot.slane %v504_v6, 1  ;;  %v709_v45 = vrot.slane %v2635_v8, 1  ;;  %v3235_v54 = vld [vmem:[%s4699_s1 + $0x30] sm:$0xff]  }
  0x32   : > { %v509_v46 = vshrl.u32 %v3609_v4, 16  ;;  %v516_v48 = vshll.u32 %v3614_v11, 16  ;;  %v3636_v58 = vsel %vm423_vm0, %v490_v42, %v494_v20  ;;  %v3639_v0 = vcombine.low %v239_v31, %v3624_v37  ;;  %v3642_v57 = vld [vmem:[%s3357_s29 + $0x68] ss:$0 sps:$4 sm:$0x11]   ;;  %3150 = vmatpush3.bf16.msra.mxu1 %v3235_v54  ;;  %v3236_v42 = vld [vmem:[%s4699_s1 + $0x78] sm:$0xff]  }
  0x33   : > { %v513_v61 = vrot.slane %v511_v29, 1  ;;  %v282_v62 = vld [vmem:[%s3357_s29 + $0x3c] sm:$0xe]  ;;  %v713_v63 = vrot.slane %v3564_v27, 1  ;;  %v3649_v1 = vsel %vm696_vm1, %v706_v28, %v707_v5  ;;  %v502_v6 = vor.u32 %v501_v33, %v497_v34  ;;  %2865 = vmatpush3.bf16.msra.mxu0 %v3235_v54  ;;  %3143 = vmatprep.subr.bf16.mxu1 %v3236_v42  ;;  %v241_v5 = vld [vmem:[%s3357_s29 + $0x6c] sm:$0xf] }
  0x34   : > { %780 = vrot.lane.b32.xlu0 %v3522_v51, %s3294_s7  ;;  %v521_v8 = vshrl.u32 %v3639_v0, 16  ;;  %v518_v20 = vrot.slane %v516_v48, 1  ;;  %v523_v27 = vshll.u32 %v3639_v0, 16  ;;  %2866 = vmatprep.subr.bf16.mxu0 %v3236_v42  ;;  %v3662_v28 = vld [vmem:[%s3357_s29 + $0x70] sm:$0xf]  ;;  %v2636_v31 = vcombine.low %v282_v62, %v3527_v56  ;;  %v3237_v48 = vld [vmem:[%s4699_s1 + $0x38] sm:$0xff]  }
  0x35   : > { %646 = vrot.lane.b32.xlu1 %v3536_v59, %s3294_s7  ;;  %v3665_v34 = vsel %vm423_vm0, %v502_v6, %v506_v44  ;;  %v528_v29 = vshll.u32 %v3642_v57, 16  ;;  %v283_v33 = vld [vmem:[%s3357_s29 + $0x48] sm:$0xe]  ;;  %v289_v54 = vld [vmem:[%s3357_s29 + $0x90] sm:$0xe]  ;;  %v734_v44 = vrot.slane %v3384_v15, 1  ;;  %v3682_v6 = vsel %vm696_vm1, %v709_v45, %v710_v36 }
  0x36   : > { %v3677_v42 = vld [vmem:[%s3357_s29 + $0x74] ss:$0 sps:$4 sm:$0x11]   ;;  %v2643_v59 = vcombine.low %v289_v54, %v3375_v12  ;;  %v514_v56 = vor.u32 %v513_v61, %v509_v46  ;;  %v525_v62 = vrot.slane %v523_v27, 1  ;;  %3151 = vmatpush3.bf16.msra.mxu1 %v3237_v48  ;;  %v277_v60 = vld [vmem:[%s3357_s29] sm:$0xe]  ;;  %v3693_v46 = vcombine.low %v241_v5, %v3662_v28 }
  0x37   : > { %2867 = vmatpush3.bf16.msra.mxu0 %v3237_v48  ;;  %v2631_v15 = vcombine.low %v277_v60, %v3393_v18  ;;  %v698_v36 = vrot.slane %v3404_v23, 1  ;;  %v712_v45 = vrot.slane %v2636_v31, 1  ;;  %v530_v61 = vrot.slane %v528_v29, 1  ;;  %2964 = vmatprep.subr.bf16.mxu1 %v3240_v30  ;;  %v243_v48 = vld [vmem:[%s3357_s29 + $0x78] sm:$0xf]  ;;  %v3709_v60 = vld [vmem:[%s4699_s1 + $0x100] sm:$0xff]  }
  0x38   : > { %756 = vrot.lane.b32.xlu0 %v3514_v41, %s3294_s7  ;;  %v733_v12 = vrot.slane %v2643_v59, 1  ;;  %v2637_v27 = vcombine.low %v283_v33, %v3558_v24  ;;  %v3700_v54 = vld [vmem:[%s3357_s29 + $0x7c] sm:$0xf]  ;;  %v284_v59 = vld [vmem:[%s3357_s29 + $0x54] sm:$0xe]  ;;  %v3712_v30 = vsel %vm423_vm0, %v514_v56, %v518_v20  ;;  %v535_v5 = vshll.u32 %v3693_v46, 16  ;;  %3096 = vmatprep.subr.bf16.mxu0 %v3709_v60 }
  0x39   : > { %622 = vrot.lane.b32.xlu1 %v3561_v26, %s3294_s7  ;;  %v697_v23 = vrot.slane %v2631_v15, 1  ;;  %4711 = vst [vmem:[#allocation6_spill] sm:$0xff] %v3712_v30  ;;  %v540_v24 = vshll.u32 %v3677_v42, 16  ;;  %v526_v31 = vor.u32 %v525_v62, %v521_v8  ;;  %v290_v33 = vld [vmem:[%s3357_s29 + $0x9c] sm:$0xe]  ;;  %v716_v20 = vrot.slane %v3590_v53, 1 }
  0x3a   : > { %v3704_v18 = vsel %vm696_vm1, %v733_v12, %v734_v44  ;;  %v3724_v44 = vsel %vm696_vm1, %v712_v45, %v713_v63  ;;  %v2644_v56 = vcombine.low %v290_v33, %v3364_v7  ;;  %v737_v12 = vrot.slane %v3415_v32, 1  ;;  %v3733_v15 = vld [vmem:[%s3357_s29 + $0x80] ss:$0 sps:$4 sm:$0x11]   ;;  %v245_v45 = vld [vmem:[%s3357_s29 + $0x84] sm:$0xf] }
  0x3b   : > { %v3719_v29 = vsel %vm696_vm1, %v697_v23, %v698_v36  ;;  %v715_v8 = vrot.slane %v2637_v27, 1  ;;  %v533_v62 = vshrl.u32 %v3693_v46, 16  ;;  %v3736_v36 = vcombine.low %v243_v48, %v3700_v54  ;;  %v3741_v7 = vld [vmem:[%s3357_s29 + $0x88] sm:$0xf] }
  0x3c   : > { %803 = vrot.lane.b32.xlu0 %v3577_v35, %s3294_s7  ;;  %v537_v63 = vrot.slane %v535_v5, 1  ;;  %v2638_v53 = vcombine.low %v284_v59, %v3582_v47  ;;  %v736_v23 = vrot.slane %v2644_v56, 1  ;;  %v3746_v32 = vsel %vm423_vm0, %v526_v31, %v530_v61  ;;  %v291_v48 = vld [vmem:[%s3357_s29 + $0xa8] sm:$0xe]  ;;  %v285_v61 = vld [vmem:[%s3357_s29 + $0x60] sm:$0xe] }
  0x3d   : > { %758 = vrot.lane.b32.xlu1 %v3546_v3, %s3294_s7  ;;  %v542_v27 = vrot.slane %v540_v24, 1  ;;  %v719_v33 = vrot.slane %v3614_v11, 1  ;;  %v547_v43 = vshll.u32 %v3736_v36, 16  ;;  %v2645_v59 = vcombine.low %v291_v48, %v3408_v25 }
  0x3e   : > { %v3752_v47 = vsel %vm696_vm1, %v736_v23, %v737_v12  ;;  %v740_v5 = vrot.slane %v3446_v55, 1  ;;  %v3760_v24 = vsel %vm696_vm1, %v715_v8, %v716_v20  ;;  %v538_v11 = vor.u32 %v537_v63, %v533_v62  ;;  %v292_v23 = vld [vmem:[%s3357_s29 + $0xb4] sm:$0xe] }
  0x3f   : > { %v718_v31 = vrot.slane %v2638_v53, 1  ;;  %v739_v56 = vrot.slane %v2645_v59, 1  ;;  %v3765_v12 = vcombine.low %v245_v45, %v3741_v7  ;;  %v545_v25 = vshrl.u32 %v3736_v36, 16 }
  0x40   : > { %624 = vrot.lane.b32.xlu0 %v3602_v10, %s3294_s7  ;;  %v552_v55 = vshll.u32 %v3733_v15, 16  ;;  %v549_v48 = vrot.slane %v547_v43, 1  ;;  %v2646_v8 = vcombine.low %v292_v23, %v3442_v52  ;;  %v743_v62 = vrot.slane %v3479_v19, 1 }
  0x41   : > { %805 = vrot.lane.b32.xlu1 %v3617_v17, %s3294_s7  ;;  %v3772_v20 = vsel %vm696_vm1, %v739_v56, %v740_v5  ;;  %v3779_v63 = vsel %vm423_vm0, %v538_v11, %v542_v27  ;;  %v2639_v53 = vcombine.low %v285_v61, %v3624_v37  ;;  %v559_v43 = vshll.u32 %v3765_v12, 16  ;;  %v286_v27 = vld [vmem:[%s3357_s29 + $0x6c] sm:$0xe] }
  0x42   : > { %v742_v45 = vrot.slane %v2646_v8, 1  ;;  %v554_v59 = vrot.slane %v552_v55, 1  ;;  %v3786_v52 = vsel %vm696_vm1, %v718_v31, %v719_v33  ;;  %v550_v19 = vor.u32 %v549_v48, %v545_v25  ;;  %v287_v33 = vld [vmem:[%s3357_s29 + $0x78] sm:$0xe] }
  0x43   : > { %v722_v37 = vrot.slane %v3642_v57, 1  ;;  %v721_v61 = vrot.slane %v2639_v53, 1  ;;  %v557_v11 = vshrl.u32 %v3765_v12, 16  ;;  %v561_v56 = vrot.slane %v559_v43, 1  ;;  %v288_v57 = vld [vmem:[%s3357_s29 + $0x84] sm:$0xe] }
  0x44   : > { %760 = vrot.lane.b32.xlu0 %v3587_v50, %s3294_s7  ;;  %v3789_v5 = vsel %vm696_vm1, %v742_v45, %v743_v62  ;;  %v3800_v31 = vsel %vm423_vm0, %v550_v19, %v554_v59  ;;  %v2640_v25 = vcombine.low %v286_v27, %v3662_v28  ;;  %v2641_v62 = vcombine.low %v287_v33, %v3700_v54  ;;  %v257_v45 = vld [vmem:[%s3357_s29 + $0xcc] sm:$0xf]  ;;  %v3818_v59 = vld [vmem:[%s3357_s29 + $0xd0] sm:$0xf] }
  0x45   : > { %626 = vrot.lane.b32.xlu1 %v3636_v58, %s3294_s7  ;;  %v3807_v55 = vsel %vm696_vm1, %v721_v61, %v722_v37  ;;  %v562_v48 = vor.u32 %v561_v56, %v557_v11  ;;  %v725_v43 = vrot.slane %v3677_v42, 1  ;;  %v2642_v28 = vcombine.low %v288_v57, %v3741_v7  ;;  %v3260_v11 = vld [vmem:[%s3357_s29 + $0xc8] ss:$0 sps:$4 sm:$0x11]  }
  0x46   : > { %v724_v53 = vrot.slane %v2640_v25, 1  ;;  %v727_v37 = vrot.slane %v2641_v62, 1  ;;  %v728_v54 = vrot.slane %v3733_v15, 1  ;;  %v788_v42 = vshll.u32 %v3522_v51, 16  ;;  %v293_v62 = vld [vmem:[%s3357_s29 + $0xc0] sm:$0xe] }
  0x47   : > { %v730_v27 = vrot.slane %v2642_v28, 1  ;;  %v3832_v56 = vcombine.low %v257_v45, %v3818_v59  ;;  %v3846_v57 = vld [vmem:[%s3357_s29 + $0xd4] ss:$0 sps:$4 sm:$0x11]  }
  0x48   : > { %807 = vrot.lane.b32.xlu0 %v3649_v1, %s3294_s7  ;;  %v3828_v7 = vsel %vm696_vm1, %v724_v53, %v725_v43  ;;  %v3837_v15 = vsel %vm696_vm1, %v727_v37, %v728_v54  ;;  %v790_v33 = vrot.slane %v788_v42, 1  ;;  %v851_v45 = vshll.u32 %v3846_v57, 16 }
  0x49   : > { %762 = vrot.lane.b32.xlu1 %v3609_v4, %s3294_s7  ;;  %v844_v43 = vshrl.u32 %v3832_v56, 16  ;;  %v2649_v37 = vcombine.low %v293_v62, %v3506_v38  ;;  %v3242_v62 = vld [vmem:[%s4699_s1 + $0x80] sm:$0xff]  }
  0x4c   : > { %628 = vrot.lane.b32.xlu0 %v3665_v34, %s3294_s7 }
  0x4d   : > { %809 = vrot.lane.b32.xlu1 %v3682_v6, %s3294_s7 }
  0x50   : > { %764 = vrot.lane.b32.xlu0 %v3639_v0, %s3294_s7 }
  0x51   : > { %630 = vrot.lane.b32.xlu1 %v3712_v30, %s3294_s7  ;;  %v3223_v30 = vld [vmem:[%s3357_s29 + $0x8c] ss:$0 sps:$4 sm:$0x11]  }
  0x52   : > { %v564_v23 = vshll.u32 %v3223_v30, 16  ;;  %v731_v61 = vrot.slane %v3223_v30, 1  ;;  %v793_v30 = vshll.u32 %v3260_v11, 16 }
  0x54   : > { %811 = vrot.lane.b32.xlu0 %v3724_v44, %s3294_s7  ;;  %v566_v8 = vrot.slane %v564_v23, 1  ;;  %v786_v23 = vshrl.u32 %v3522_v51, 16  ;;  %v3843_v25 = vsel %vm696_vm1, %v730_v27, %v731_v61  ;;  %v795_v53 = vrot.slane %v793_v30, 1 }
  0x55   : > { %766 = vrot.lane.b32.xlu1 %v3693_v46, %s3294_s7  ;;  %v853_v27 = vrot.slane %v851_v45, 1  ;;  %v800_v61 = vrot.slane %v2649_v37, 1 }
  0x56   : > { %v3821_v19 = vsel %vm423_vm0, %v562_v48, %v566_v8  ;;  %v846_v48 = vshll.u32 %v3832_v56, 16  ;;  %v791_v8 = vor.u32 %v790_v33, %v786_v23  ;;  %v801_v23 = vrot.slane %v3260_v11, 1 }
  0x58   : > { %632 = vrot.lane.b32.xlu0 %v3746_v32, %s3294_s7  ;;  %v848_v28 = vrot.slane %v846_v48, 1  ;;  %v3862_v54 = vsel %vm423_vm0, %v791_v8, %v795_v53  ;;  %v3872_v38 = vsel %vm696_vm1, %v800_v61, %v801_v23 }
  0x59   : > { %813 = vrot.lane.b32.xlu1 %v3760_v24, %s3294_s7 }
  0x5a   : > { %v849_v42 = vor.u32 %v848_v28, %v844_v43  ;;  %v3243_v43 = vld [vmem:[%s4699_s1 + $0xc8] sm:$0xff]  }
  0x5c   : > { %768 = vrot.lane.b32.xlu0 %v3736_v36, %s3294_s7  ;;  %v854_v33 = vsel %vm423_vm0, %v849_v42, %v853_v27  ;;  %v3245_v42 = vld [vmem:[%s4699_s1 + $0x88] sm:$0xff]  }
  0x5d   : > { %634 = vrot.lane.b32.xlu1 %v3779_v63, %s3294_s7 }
  0x60   : > { %815 = vrot.lane.b32.xlu0 %v3786_v52, %s3294_s7 }
  0x61   : > { %770 = vrot.lane.b32.xlu1 %v3765_v12, %s3294_s7 }
  0x64   : > { %636 = vrot.lane.b32.xlu0 %v3800_v31, %s3294_s7 }
  0x65   : > { %817 = vrot.lane.b32.xlu1 %v3807_v55, %s3294_s7 }
  0x68   : > { %772 = vrot.lane.b32.xlu0 %v3381_v14, %s3294_s7 }
  0x69   : > { %638 = vrot.lane.b32.xlu1 %v3821_v19, %s3294_s7 }
  0x6c   : > { %819 = vrot.lane.b32.xlu0 %v3828_v7, %s3294_s7 }
  0x6d   : > { %821 = vrot.lane.b32.xlu1 %v3837_v15, %s3294_s7 }
  0x70   : > { %823 = vrot.lane.b32.xlu0 %v3843_v25, %s3294_s7 }
  0x71   : > { %825 = vrot.lane.b32.xlu1 %v3704_v18, %s3294_s7 }
  0x74   : > { %827 = vrot.lane.b32.xlu0 %v3752_v47, %s3294_s7 }
  0x75   : > { %829 = vrot.lane.b32.xlu1 %v3772_v20, %s3294_s7 }
  0x78   : > { %855 = vrot.lane.b32.xlu0 %v3862_v54, %s3294_s7 }
  0x79   : > { %831 = vrot.lane.b32.xlu1 %v3789_v5, %s3294_s7 }
  0x7c   : > { %857 = vrot.lane.b32.xlu0 %v854_v33, %s3294_s7  ;;  %v3248_v33 = vld [vmem:[%s4699_s1 + $0x90] sm:$0xff]  }
  0x7d   : > { %833 = vrot.lane.b32.xlu1 %v3872_v38, %s3294_s7 }
  0x89   : > { %v775_v30 = vpop.permute.xlu0 %774 }
  0x8a   : > { %v751_v48 = vpop.permute.xlu1 %750  ;;  %v964_v11 = vsel %vm865_vm2, %v3704_v18, %v775_v30  ;;  %v3266_v30 = vld [vmem:[%s4699_s1 + $0x110] sm:$0xff]  }
  0x8b   : > { %1505 = vmatprep.mubr.bf16.mxu1 %v964_v11  ;;  %v916_v8 = vsel %vm865_vm2, %v3719_v29, %v751_v48  ;;  %v3261_v29 = vld [vmem:[%s4699_s1 + $0x108] sm:$0xff]   ;;  %v3249_v48 = vld [vmem:[%s4699_s1 + $0xd8] sm:$0xff]  }
  0x8c   : > { %1409 = vmatprep.mubr.bf16.mxu0 %v916_v8  ;;  %v3267_v8 = vld [vmem:[%s4699_s1 + $0x118] sm:$0xff]  }
  0x92   : > { %v641_v53 = vpop.permute.xlu0 %640 }
  0x93   : > { %v3889_v28 = vsel %vm865_vm2, %v3381_v14, %v641_v53  ;;  %v617_v45 = vpop.permute.xlu1 %616  ;;  %v3247_v14 = vld [vmem:[%s4699_s1 + $0xd0] sm:$0xff]   ;;  %v3250_v53 = vld [vmem:[%s4699_s1 + $0x98] sm:$0xff]  }
  0x94   : > { %1506 = vmatmul.mubr.bf16.vlgmr.msra.gmra.mrb[0].mxu1 %v3889_v28  ;;  %v867_v37 = vsel %vm865_vm2, %v3401_v22, %v617_v45 }
  0x95   : > { %2965 = vmatpush3.bf16.msra.mxu1 %v3242_v62  ;;  %1410 = vmatmul.mubr.bf16.vlgmr.msra.gmra.mrb[0].mxu0 %v867_v37  ;;  %v3253_v37 = vld [vmem:[%s4699_s1 + $0xa0] sm:$0xff]  }
  0x96   : > { %v777_v27 = vpop.permute.xlu0 %776  ;;  %2966 = vmatprep.subr.bf16.mxu1 %v3243_v43  ;;  %3097 = vmatpush3.bf16.msra.mxu0 %v3709_v60  ;;  %v3252_v43 = vld [vmem:[%s4699_s1 + $0xe0] sm:$0xff]  }
  0x97   : > { %v968_v61 = vsel %vm865_vm2, %v3752_v47, %v777_v27  ;;  %v643_v23 = vpop.permute.xlu1 %642  ;;  %3098 = vmatprep.subr.bf16.mxu0 %v3261_v29  ;;  %v3254_v27 = vld [vmem:[%s4699_s1 + $0xe8] sm:$0xff]  }
  0x98   : > { %1513 = vmatprep.mubr.bf16.mxu1 %v968_v61  ;;  %v3908_v22 = vsel %vm865_vm2, %v3368_v9, %v643_v23  ;;  %v3255_v23 = vld [vmem:[%s4699_s1 + $0xa8] sm:$0xff]  }
  0x99   : > { %2967 = vmatpush3.bf16.msra.mxu1 %v3245_v42 }
  0x9a   : > { %v753_v60 = vpop.permute.xlu0 %752  ;;  %2968 = vmatprep.subr.bf16.mxu1 %v3247_v14  ;;  %3099 = vmatpush3.bf16.msra.mxu0 %v3261_v29 }
  0x9b   : > { %v920_v11 = vsel %vm865_vm2, %v3577_v35, %v753_v60  ;;  %v619_v9 = vpop.permute.xlu1 %618  ;;  %3100 = vmatprep.subr.bf16.mxu0 %v3266_v30 }
  0x9c   : > { %1417 = vmatprep.mubr.bf16.mxu0 %v920_v11  ;;  %1514 = vmatmul.mubr.bf16.gmra.mrb[4].mxu1 %v3908_v22  ;;  %v870_v62 = vsel %vm865_vm2, %v3378_v13, %v619_v9  ;;  %v3258_v11 = vld [vmem:[%s4699_s1 + $0xb0] sm:$0xff]  }
  0x9d   : > { %2969 = vmatpush3.bf16.msra.mxu1 %v3248_v33  ;;  %1418 = vmatmul.mubr.bf16.gmra.mrb[4].mxu0 %v870_v62 }
  0x9e   : > { %v779_v35 = vpop.permute.xlu0 %778  ;;  %2970 = vmatprep.subr.bf16.mxu1 %v3249_v48  ;;  %3101 = vmatpush3.bf16.msra.mxu0 %v3266_v30  ;;  %v3257_v30 = vld [vmem:[%s4699_s1 + $0xf0] sm:$0xff]  }
  0x9f   : > { %v972_v45 = vsel %vm865_vm2, %v3772_v20, %v779_v35  ;;  %v645_v29 = vpop.permute.xlu1 %644  ;;  %3102 = vmatprep.subr.bf16.mxu0 %v3267_v8  ;;  %v3262_v35 = vld [vmem:[%s4699_s1 + $0xb8] sm:$0xff]  }
  0xa0   : > { %1521 = vmatprep.mubr.bf16.mxu1 %v972_v45  ;;  %v3937_v13 = vsel %vm865_vm2, %v3423_v39, %v645_v29 }
  0xa1   : > { %2971 = vmatpush3.bf16.msra.mxu1 %v3250_v53 }
  0xa2   : > { %v755_v42 = vpop.permute.xlu0 %754  ;;  %2972 = vmatprep.subr.bf16.mxu1 %v3252_v43  ;;  %3103 = vmatpush3.bf16.msra.mxu0 %v3267_v8  ;;  %v3259_v8 = vld [vmem:[%s4699_s1 + $0xf8] sm:$0xff]  }
  0xa3   : > { %v924_v14 = vsel %vm865_vm2, %v3617_v17, %v755_v42  ;;  %v621_v61 = vpop.permute.xlu1 %620 }
  0xa4   : > { %1425 = vmatprep.mubr.bf16.mxu0 %v924_v14  ;;  %1522 = vmatmul.mubr.bf16.gmra.mrb[8].mxu1 %v3937_v13  ;;  %v873_v39 = vsel %vm865_vm2, %v3437_v49, %v621_v61 }
  0xa5   : > { %2973 = vmatpush3.bf16.msra.mxu1 %v3253_v37  ;;  %1426 = vmatmul.mubr.bf16.gmra.mrb[8].mxu0 %v873_v39 }
  0xa6   : > { %v781_v33 = vpop.permute.xlu0 %780  ;;  %2974 = vmatprep.subr.bf16.mxu1 %v3254_v27 }
  0xa7   : > { %v976_v60 = vsel %vm865_vm2, %v3789_v5, %v781_v33  ;;  %v647_v48 = vpop.permute.xlu1 %646 }
  0xa8   : > { %1529 = vmatprep.mubr.bf16.mxu1 %v976_v60  ;;  %v3960_v49 = vsel %vm865_vm2, %v3465_v2, %v647_v48 }
  0xa9   : > { %2975 = vmatpush3.bf16.msra.mxu1 %v3255_v23 }
  0xaa   : > { %v757_v9 = vpop.permute.xlu0 %756  ;;  %2976 = vmatprep.subr.bf16.mxu1 %v3257_v30 }
  0xab   : > { %v928_v62 = vsel %vm865_vm2, %v3649_v1, %v757_v9  ;;  %v623_v53 = vpop.permute.xlu1 %622 }
  0xac   : > { %1433 = vmatprep.mubr.bf16.mxu0 %v928_v62  ;;  %1530 = vmatmul.mubr.bf16.gmra.mrb[12].mxu1 %v3960_v49  ;;  %v876_v2 = vsel %vm865_vm2, %v3485_v21, %v623_v53 }
  0xad   : > { %2977 = vmatpush3.bf16.msra.mxu1 %v3258_v11  ;;  %1570 = vmatprep.mubr.bf16.mxu1 %v873_v39 }
  0xae   : > { %1434 = vmatmul.mubr.bf16.gmra.mrb[12].mxu0 %v876_v2  ;;  %2978 = vmatprep.subr.bf16.mxu1 %v3259_v8  ;;  %v804_v43 = vpop.permute.xlu0 %803 }
  0xaf   : > { %v759_v45 = vpop.permute.xlu1 %758  ;;  %v980_v29 = vsel %vm865_vm2, %v3476_v16, %v804_v43 }
  0xb0   : > { %v932_v37 = vsel %vm865_vm2, %v3682_v6, %v759_v45 }
  0xb1   : > { %2979 = vmatpush3.bf16.msra.mxu1 %v3262_v35  ;;  %1441 = vmatprep.mubr.bf16.mxu0 %v932_v37 }
  0xb2   : > { %v625_v42 = vpop.permute.xlu0 %624 }
  0xb3   : > { %v879_v21 = vsel %vm865_vm2, %v3514_v41, %v625_v42  ;;  %v806_v27 = vpop.permute.xlu1 %805 }
  0xb4   : > { %1571 = vmatmul.mubr.bf16.vlgmr.msra.gmra.mrb[16].mxu1 %v980_v29  ;;  %v984_v16 = vsel %vm865_vm2, %v3511_v40, %v806_v27 }
  0xb5   : > { %1578 = vmatprep.mubr.bf16.mxu1 %v876_v2 }
  0xb6   : > { %1442 = vmatmul.mubr.bf16.gmra.mrb[16].mxu0 %v879_v21  ;;  %v761_v14 = vpop.permute.xlu0 %760 }
  0xb7   : > { %v936_v61 = vsel %vm865_vm2, %v3724_v44, %v761_v14  ;;  %v627_v39 = vpop.permute.xlu1 %626 }
  0xb8   : > { %1449 = vmatprep.mubr.bf16.mxu0 %v936_v61  ;;  %v882_v33 = vsel %vm865_vm2, %v3546_v3, %v627_v39  ;;  %v4712_v61 = vld [vmem:[#allocation6_spill] sm:$0xff] }
  0xba   : > { %v808_v23 = vpop.permute.xlu0 %807 }
  0xbb   : > { %v763_v30 = vpop.permute.xlu1 %762  ;;  %v988_v11 = vsel %vm865_vm2, %v3561_v26, %v808_v23 }
  0xbc   : > { %1579 = vmatmul.mubr.bf16.gmra.mrb[20].mxu1 %v984_v16  ;;  %v940_v41 = vsel %vm865_vm2, %v3760_v24, %v763_v30 }
  0xbd   : > { %1586 = vmatprep.mubr.bf16.mxu1 %v879_v21 }
  0xbe   : > { %1450 = vmatmul.mubr.bf16.gmra.mrb[20].mxu0 %v882_v33  ;;  %v629_v60 = vpop.permute.xlu0 %628 }
  0xbf   : > { %1457 = vmatprep.mubr.bf16.mxu0 %v940_v41  ;;  %v810_v48 = vpop.permute.xlu1 %809  ;;  %v885_v40 = vsel %vm865_vm2, %v3587_v50, %v629_v60 }
  0xc0   : > { %v992_v53 = vsel %vm865_vm2, %v3602_v10, %v810_v48 }
  0xc2   : > { %v765_v9 = vpop.permute.xlu0 %764 }
  0xc3   : > { %v944_v3 = vsel %vm865_vm2, %v3786_v52, %v765_v9  ;;  %v631_v8 = vpop.permute.xlu1 %630 }
  0xc4   : > { %1587 = vmatmul.mubr.bf16.gmra.mrb[24].mxu1 %v988_v11  ;;  %v888_v26 = vsel %vm865_vm2, %v3609_v4, %v631_v8  ;;  %v863_v11 = vrot.slane %v3846_v57, 1 }
  0xc5   : > { %1594 = vmatprep.mubr.bf16.mxu1 %v882_v33 }
  0xc6   : > { %1458 = vmatmul.mubr.bf16.gmra.mrb[24].mxu0 %v885_v40  ;;  %v812_v62 = vpop.permute.xlu0 %811 }
  0xc7   : > { %1465 = vmatprep.mubr.bf16.mxu0 %v944_v3  ;;  %v767_v2 = vpop.permute.xlu1 %766  ;;  %v996_v45 = vsel %vm865_vm2, %v3636_v58, %v812_v62 }
  0xc8   : > { %v948_v50 = vsel %vm865_vm2, %v3807_v55, %v767_v2 }
  0xca   : > { %v633_v35 = vpop.permute.xlu0 %632 }
  0xcb   : > { %v814_v43 = vpop.permute.xlu1 %813  ;;  %v891_v10 = vsel %vm865_vm2, %v3639_v0, %v633_v35 }
  0xcc   : > { %1595 = vmatmul.mubr.bf16.gmra.mrb[28].mxu1 %v992_v53  ;;  %v1000_v21 = vsel %vm865_vm2, %v3665_v34, %v814_v43 }
  0xcd   : > { %1602 = vmatprep.mubr.bf16.mxu1 %v885_v40 }
  0xce   : > { %1466 = vmatmul.mubr.bf16.gmra.mrb[28].mxu0 %v888_v26  ;;  %v769_v29 = vpop.permute.xlu0 %768 }
  0xcf   : > { %1473 = vmatprep.mubr.bf16.mxu0 %v948_v50  ;;  %v952_v4 = vsel %vm865_vm2, %v3828_v7, %v769_v29  ;;  %v635_v37 = vpop.permute.xlu1 %634 }
  0xd0   : > { %v894_v58 = vsel %vm865_vm2, %v3693_v46, %v635_v37 }
  0xd2   : > { %v816_v42 = vpop.permute.xlu0 %815 }
  0xd3   : > { %v771_v27 = vpop.permute.xlu1 %770  ;;  %v1004_v39 = vsel %vm865_vm2, %v4712_v61, %v816_v42 }
  0xd4   : > { %1603 = vmatmul.mubr.bf16.gmra.mrb[32].mxu1 %v996_v45  ;;  %v956_v0 = vsel %vm865_vm2, %v3837_v15, %v771_v27 }
  0xd5   : > { %1610 = vmatprep.mubr.bf16.mxu1 %v888_v26 }
  0xd6   : > { %1474 = vmatmul.mubr.bf16.gmra.mrb[32].mxu0 %v891_v10  ;;  %v637_v14 = vpop.permute.xlu0 %636 }
  0xd7   : > { %1481 = vmatprep.mubr.bf16.mxu0 %v952_v4  ;;  %v818_v23 = vpop.permute.xlu1 %817  ;;  %v897_v34 = vsel %vm865_vm2, %v3736_v36, %v637_v14 }
  0xd8   : > { %v1008_v30 = vsel %vm865_vm2, %v3746_v32, %v818_v23 }
  0xda   : > { %v773_v16 = vpop.permute.xlu0 %772 }
  0xdb   : > { %v960_v46 = vsel %vm865_vm2, %v3843_v25, %v773_v16  ;;  %v639_v33 = vpop.permute.xlu1 %638 }
  0xdc   : > { %1611 = vmatmul.mubr.bf16.gmra.mrb[36].mxu1 %v1000_v21  ;;  %v900_v41 = vsel %vm865_vm2, %v3765_v12, %v639_v33  ;;  %v4713_v12 = vld [vmem:[#allocation2_spill] sm:$0xff] }
  0xdd   : > { %1618 = vmatprep.mubr.bf16.mxu1 %v891_v10 }
  0xde   : > { %1482 = vmatmul.mubr.bf16.gmra.mrb[36].mxu0 %v894_v58  ;;  %v820_v60 = vpop.permute.xlu0 %819 }
  0xdf   : > { %1489 = vmatprep.mubr.bf16.mxu0 %v956_v0  ;;  %v1012_v36 = vsel %vm865_vm2, %v3779_v63, %v820_v60  ;;  %v822_v48 = vpop.permute.xlu1 %821  ;;  %v4714_v63 = vld [vmem:[#allocation3_spill] sm:$0xff] }
  0xe0   : > { %v1016_v32 = vsel %vm865_vm2, %v3800_v31, %v822_v48 }
  0xe4   : > { %1619 = vmatmul.mubr.bf16.gmra.mrb[40].mxu1 %v1004_v39 }
  0xe5   : > { %1626 = vmatprep.mubr.bf16.mxu1 %v894_v58 }
  0xe6   : > { %1490 = vmatmul.mubr.bf16.gmra.mrb[40].mxu0 %v897_v34 }
  0xe7   : > { %1497 = vmatprep.mubr.bf16.mxu0 %v960_v46 }
  0xec   : > { %1627 = vmatmul.mubr.bf16.gmra.mrb[44].mxu1 %v1008_v30 }
  0xed   : > { %1634 = vmatprep.mubr.bf16.mxu1 %v897_v34 }
  0xee   : > { %1498 = vmatmul.mubr.bf16.gmra.mrb[44].mxu0 %v900_v41 }
  0xef   : > { %3104 = vmatprep.mubr.msk.bf16.mxu0 %vm865_vm2, %v3617_v17  ;;  %v824_v17 = vpop.permute.xlu0 %823 }
  0xf4   : > { %1635 = vmatmul.mubr.bf16.gmra.mrb[48].mxu1 %v1012_v36 }
  0xf5   : > { %1642 = vmatprep.mubr.bf16.mxu1 %v900_v41 }
  0xf6   : > { %3105 = vmatmul.mubr.msk.bf16.vlgmr.msra.gmra.mrb[48].mxu0 %vm865_vm2, %v3649_v1  ;;  %v1020_v1 = vsel %vm865_vm2, %v3821_v19, %v824_v17  ;;  %v4715_v19 = vld [vmem:[#allocation4_spill] sm:$0xff] }
  0xf7   : > { %3108 = vmatprep.mubr.msk.bf16.mxu0 %vm865_vm2, %v3682_v6  ;;  %v826_v6 = vpop.permute.xlu1 %825 }
  0xfb   : > { %v830_v31 = vpop.permute.xlu1 %829 }
  0xfc   : > { %1643 = vmatmul.mubr.bf16.gmra.mrb[52].mxu1 %v1016_v32 }
  0xfd   : > { %1650 = vmatprep.mubr.bf16.mxu1 %v3889_v28 }
  0xfe   : > { %3109 = vmatmul.mubr.msk.bf16.gmra.mrb[52].mxu0 %vm865_vm2, %v3724_v44  ;;  %v1024_v44 = vsel %vm865_vm2, %v4713_v12, %v826_v6 }
  0xff   : > { %3112 = vmatprep.mubr.msk.bf16.mxu0 %vm865_vm2, %v3760_v24  ;;  %v828_v24 = vpop.permute.xlu0 %827  ;;  %v832_v28 = vpop.permute.xlu1 %831 }
 0x104   : > { %1651 = vmatmul.mubr.bf16.gmra.mrb[56].mxu1 %v1020_v1 }
 0x105   : > { %1658 = vmatprep.mubr.bf16.mxu1 %v3908_v22  ;;  %v294_v22 = vld [vmem:[%s3357_s29 + $0xcc] sm:$0xe] }
 0x106   : > { %3113 = vmatmul.mubr.msk.bf16.gmra.mrb[56].mxu0 %vm865_vm2, %v3786_v52  ;;  %v1028_v52 = vsel %vm865_vm2, %v4714_v63, %v828_v24 }
 0x107   : > { %3116 = vmatprep.mubr.msk.bf16.mxu0 %vm865_vm2, %v3807_v55  ;;  %v856_v55 = vpop.permute.xlu0 %855 }
 0x10c   : > { %1659 = vmatmul.mubr.bf16.gmra.mrb[60].mxu1 %v1024_v44 }
 0x10d   : > { %1666 = vmatprep.mubr.bf16.mxu1 %v3937_v13 }
 0x10e   : > { %3117 = vmatmul.mubr.msk.bf16.gmra.mrb[60].mxu0 %vm865_vm2, %v3828_v7  ;;  %v1032_v7 = vsel %vm865_vm2, %v4715_v19, %v830_v31 }
 0x10f   : > { %3120 = vmatprep.mubr.msk.bf16.mxu0 %vm865_vm2, %v3837_v15  ;;  %v1043_v15 = vsel %vm865_vm2, %v3522_v51, %v856_v55  ;;  %v2652_v51 = vcombine.low %v294_v22, %v3818_v59 }
 0x114   : > { %1667 = vmatmul.mubr.bf16.gmra.mrb[64].mxu1 %v1028_v52 }
 0x115   : > { %1674 = vmatprep.mubr.bf16.mxu1 %v3960_v49 }
 0x116   : > { %3121 = vmatmul.mubr.msk.bf16.gmra.mrb[64].mxu0 %vm865_vm2, %v3843_v25  ;;  %v858_v25 = vpop.permute.xlu0 %857 }
 0x117   : > { %3124 = vmatprep.mubr.msk.bf16.mxu0 %vm865_vm2, %v3704_v18  ;;  %v4716_v18 = vld [vmem:[#allocation5_spill] sm:$0xff]  ;;  %v1046_v49 = vsel %vm865_vm2, %v3832_v56, %v858_v25 }
 0x118   : > { %v1036_v13 = vsel %vm865_vm2, %v4716_v18, %v832_v28 }
 0x11c   : > { %1675 = vmatmul.mubr.bf16.gmra.mrb[68].mxu1 %v1032_v7  ;;  %v4217_v7 = vld [vmem:[%s4700_s2] ss:$0 sm:$0xff] }
 0x11d   : > { %1682 = vmatprep.mubr.bf16.mxu1 %v1043_v15 }
 0x11e   : > { %3125 = vmatmul.mubr.msk.bf16.gmra.mrb[68].mxu0 %vm865_vm2, %v3752_v47  ;;  %v834_v47 = vpop.permute.xlu1 %833 }
 0x11f   : > { %3128 = vmatprep.mubr.msk.bf16.mxu0 %vm865_vm2, %v3772_v20  ;;  %v862_v20 = vrot.slane %v2652_v51, 1  ;;  %v1040_v9 = vsel %vm865_vm2, %v3862_v54, %v834_v47 }
 0x121   : > { %v864_v40 = vsel %vm696_vm1, %v862_v20, %v863_v11 }
 0x124   : > { %1683 = vmatmul.mubr.bf16.gmra.mrb[72].mxu1 %v1036_v13 }
 0x125   : > { %1690 = vmatprep.mubr.bf16.mxu1 %v1046_v49 }
 0x126   : > { %3129 = vmatmul.mubr.msk.bf16.gmra.mrb[72].mxu0 %vm865_vm2, %v3789_v5  ;;  %v3295_v5 = vmov 0  }
 0x127   : > { %3132 = vmatprep.mubr.msk.bf16.mxu0 %vm865_vm2, %v3872_v38  ;;  %1916 = vst.msk [vmem:[%s4088_s4 + $0x18] sm:$0xf] %vm1908_vm3, %v3295_v5  ;;  %1909 = vst.msk [vmem:[%s4088_s4] sm:$0xf] %vm1908_vm3, %v3295_v5 }
 0x128   : > { %1910 = vst.msk [vmem:[%s4088_s4 + $0x4] sm:$0xf] %vm1908_vm3, %v3295_v5  ;;  %1913 = vst.msk [vmem:[%s4088_s4 + $0xc] sm:$0xf] %vm1908_vm3, %v3295_v5 }
 0x129   : > { %1914 = vst.msk [vmem:[%s4088_s4 + $0x10] sm:$0xf] %vm1908_vm3, %v3295_v5  ;;  %1917 = vst.msk [vmem:[%s4088_s4 + $0x1c] sm:$0xf] %vm1908_vm3, %v3295_v5 }
 0x12a   : > { %1919 = vst.msk [vmem:[%s4088_s4 + $0x24] sm:$0xf] %vm1908_vm3, %v3295_v5  ;;  %1920 = vst.msk [vmem:[%s4088_s4 + $0x28] sm:$0xf] %vm1908_vm3, %v3295_v5 }
 0x12b   : > { %1922 = vst.msk [vmem:[%s4088_s4 + $0x30] sm:$0xf] %vm1908_vm3, %v3295_v5  ;;  %1923 = vst.msk [vmem:[%s4088_s4 + $0x34] sm:$0xf] %vm1908_vm3, %v3295_v5 }
 0x12c   : > { %1691 = vmatmul.mubr.bf16.gmra.mrb[76].mxu1 %v1040_v9  ;;  %1925 = vst.msk [vmem:[%s4088_s4 + $0x3c] sm:$0xf] %vm1908_vm3, %v3295_v5  ;;  %1926 = vst.msk [vmem:[%s4088_s4 + $0x40] sm:$0xf] %vm1908_vm3, %v3295_v5 }
 0x12d   : > { %1928 = vst.msk [vmem:[%s4088_s4 + $0x48] sm:$0xf] %vm1908_vm3, %v3295_v5  ;;  %1929 = vst.msk [vmem:[%s4088_s4 + $0x4c] sm:$0xf] %vm1908_vm3, %v3295_v5 }
 0x12e   : > { %3133 = vmatmul.mubr.msk.bf16.gmra.mrb[76].mxu0 %vm865_vm2, %v864_v40  ;;  %1931 = vst.msk [vmem:[%s4088_s4 + $0x54] sm:$0xf] %vm1908_vm3, %v3295_v5  ;;  %1932 = vst.msk [vmem:[%s4088_s4 + $0x58] sm:$0xf] %vm1908_vm3, %v3295_v5 }
 0x12f   : > { %1934 = vst.msk [vmem:[%s4088_s4 + $0x60] sm:$0xf] %vm1908_vm3, %v3295_v5  ;;  %1935 = vst.msk [vmem:[%s4088_s4 + $0x64] sm:$0xf] %vm1908_vm3, %v3295_v5 }
 0x130   : > { %1937 = vst.msk [vmem:[%s4088_s4 + $0x6c] sm:$0xf] %vm1908_vm3, %v3295_v5  ;;  %1938 = vst.msk [vmem:[%s4088_s4 + $0x70] sm:$0xf] %vm1908_vm3, %v3295_v5 }
 0x131   : > { %1940 = vst.msk [vmem:[%s4088_s4 + $0x78] sm:$0xf] %vm1908_vm3, %v3295_v5  ;;  %1941 = vst.msk [vmem:[%s4088_s4 + $0x7c] sm:$0xf] %vm1908_vm3, %v3295_v5 }
 0x132   : > { %1943 = vst.msk [vmem:[%s4088_s4 + $0x84] sm:$0xf] %vm1908_vm3, %v3295_v5  ;;  %1944 = vst.msk [vmem:[%s4088_s4 + $0x88] sm:$0xf] %vm1908_vm3, %v3295_v5 }
 0x133   : > { %1946 = vst.msk [vmem:[%s4088_s4 + $0x90] sm:$0xf] %vm1908_vm3, %v3295_v5  ;;  %1947 = vst.msk [vmem:[%s4088_s4 + $0x94] sm:$0xf] %vm1908_vm3, %v3295_v5 }
 0x134   : > { %1949 = vst.msk [vmem:[%s4088_s4 + $0x9c] sm:$0xf] %vm1908_vm3, %v3295_v5  ;;  %1950 = vst.msk [vmem:[%s4088_s4 + $0xa0] sm:$0xf] %vm1908_vm3, %v3295_v5 }
 0x135   : > { %1952 = vst.msk [vmem:[%s4088_s4 + $0xa8] sm:$0xf] %vm1908_vm3, %v3295_v5  ;;  %1953 = vst.msk [vmem:[%s4088_s4 + $0xac] sm:$0xf] %vm1908_vm3, %v3295_v5 }
 0x136   : > { %1955 = vst.msk [vmem:[%s4088_s4 + $0xb4] sm:$0xf] %vm1908_vm3, %v3295_v5  ;;  %1956 = vst.msk [vmem:[%s4088_s4 + $0xb8] sm:$0xf] %vm1908_vm3, %v3295_v5 }
 0x137   : > { %1958 = vst.msk [vmem:[%s4088_s4 + $0xc0] sm:$0xf] %vm1908_vm3, %v3295_v5  ;;  %1959 = vst.msk [vmem:[%s4088_s4 + $0xc4] sm:$0xf] %vm1908_vm3, %v3295_v5 }
 0x138   : > { %1961 = vst.msk [vmem:[%s4088_s4 + $0xcc] sm:$0xf] %vm1908_vm3, %v3295_v5  ;;  %1962 = vst.msk [vmem:[%s4088_s4 + $0xd0] sm:$0xf] %vm1908_vm3, %v3295_v5 }
 0x139   : > { %1918 = vst.msk [vmem:[%s4088_s4 + $0x20] sm:$0x1] %vm1911_vm4, %v3295_v5  ;;  %1912 = vst.msk [vmem:[%s4088_s4 + $0x8] sm:$0x1] %vm1911_vm4, %v3295_v5 }
 0x13a   : > { %1915 = vst.msk [vmem:[%s4088_s4 + $0x14] sm:$0x1] %vm1911_vm4, %v3295_v5  ;;  %1921 = vst.msk [vmem:[%s4088_s4 + $0x2c] sm:$0x1] %vm1911_vm4, %v3295_v5 }
 0x13b   : > { %1924 = vst.msk [vmem:[%s4088_s4 + $0x38] sm:$0x1] %vm1911_vm4, %v3295_v5  ;;  %1927 = vst.msk [vmem:[%s4088_s4 + $0x44] sm:$0x1] %vm1911_vm4, %v3295_v5 }
 0x13c   : > { %1930 = vst.msk [vmem:[%s4088_s4 + $0x50] sm:$0x1] %vm1911_vm4, %v3295_v5  ;;  %1933 = vst.msk [vmem:[%s4088_s4 + $0x5c] sm:$0x1] %vm1911_vm4, %v3295_v5 }
 0x13d   : > { %1936 = vst.msk [vmem:[%s4088_s4 + $0x68] sm:$0x1] %vm1911_vm4, %v3295_v5  ;;  %1939 = vst.msk [vmem:[%s4088_s4 + $0x74] sm:$0x1] %vm1911_vm4, %v3295_v5 }
 0x13e   : > { %1942 = vst.msk [vmem:[%s4088_s4 + $0x80] sm:$0x1] %vm1911_vm4, %v3295_v5  ;;  %1945 = vst.msk [vmem:[%s4088_s4 + $0x8c] sm:$0x1] %vm1911_vm4, %v3295_v5 }
 0x13f   : > { %1948 = vst.msk [vmem:[%s4088_s4 + $0x98] sm:$0x1] %vm1911_vm4, %v3295_v5  ;;  %1951 = vst.msk [vmem:[%s4088_s4 + $0xa4] sm:$0x1] %vm1911_vm4, %v3295_v5 }
 0x140   : > { %1954 = vst.msk [vmem:[%s4088_s4 + $0xb0] sm:$0x1] %vm1911_vm4, %v3295_v5  ;;  %1957 = vst.msk [vmem:[%s4088_s4 + $0xbc] sm:$0x1] %vm1911_vm4, %v3295_v5 }
 0x141   : > { %1960 = vst.msk [vmem:[%s4088_s4 + $0xc8] sm:$0x1] %vm1911_vm4, %v3295_v5  ;;  %1963 = vst.msk [vmem:[%s4088_s4 + $0xd4] sm:$0x1] %vm1911_vm4, %v3295_v5 }
 0x167   : > { %v2940_v59 = vpop.f32.mrb[0].mxu1 }
 0x168   : > { %v2941_v56 = vpop.f32.mrb[1].mxu1  ;;  %v2868_v57 = vpop.f32.mrb[0].mxu0 }
 0x169   : > { %v4198_v54 = vadd.f32 %v2941_v56, %v2940_v59  ;;  %v2943_v38 = vpop.f32.mrb[2].mxu1  ;;  %v2869_v3 = vpop.f32.mrb[1].mxu0 }
 0x16a   : > { %v2944_v8 = vpop.f32.mrb[3].mxu1  ;;  %v2870_v62 = vadd.f32 %v2869_v3, %v2868_v57  ;;  %v2871_v53 = vpop.f32.mrb[2].mxu0 }
 0x16b   : > { %v4200_v2 = vadd.f32 %v2944_v8, %v2943_v38  ;;  %v2872_v26 = vpop.f32.mrb[3].mxu0 }
 0x16c   : > { %v2873_v50 = vadd.f32 %v2872_v26, %v2871_v53  ;;  %v1412_v28 = vadd.f32 %v2870_v62, %v4217_v7 }
 0x16e   : > { %v1415_v51 = vadd.f32 %v2873_v50, %v4217_v7 }
 0x16f   : > { %v2946_v35 = vpop.f32.mrb[4].mxu1 }
 0x170   : > { %v2947_v43 = vpop.f32.mrb[5].mxu1  ;;  %v2874_v45 = vpop.f32.mrb[4].mxu0 }
 0x171   : > { %v4202_v29 = vadd.f32 %v2947_v43, %v2946_v35  ;;  %v2949_v10 = vpop.f32.mrb[6].mxu1  ;;  %v2875_v4 = vpop.f32.mrb[5].mxu0 }
 0x172   : > { %v2950_v37 = vpop.f32.mrb[7].mxu1  ;;  %v2876_v42 = vadd.f32 %v2875_v4, %v2874_v45  ;;  %v2877_v21 = vpop.f32.mrb[6].mxu0 }
 0x173   : > { %v4204_v27 = vadd.f32 %v2950_v37, %v2949_v10  ;;  %v2878_v58 = vpop.f32.mrb[7].mxu0 }
 0x174   : > { %v2879_v0 = vadd.f32 %v2878_v58, %v2877_v21  ;;  %v1420_v38 = vadd.f32 %v2876_v42, %v4217_v7 }
 0x176   : > { %v1423_v50 = vadd.f32 %v2879_v0, %v4217_v7 }
 0x177   : > { %v2952_v14 = vpop.f32.mrb[8].mxu1 }
 0x178   : > { %v2953_v61 = vpop.f32.mrb[9].mxu1  ;;  %v2880_v39 = vpop.f32.mrb[8].mxu0 }
 0x179   : > { %v4206_v16 = vadd.f32 %v2953_v61, %v2952_v14  ;;  %v2955_v23 = vpop.f32.mrb[10].mxu1  ;;  %v2881_v34 = vpop.f32.mrb[9].mxu0 }
 0x17a   : > { %v2956_v46 = vpop.f32.mrb[11].mxu1  ;;  %v2882_v33 = vadd.f32 %v2881_v34, %v2880_v39  ;;  %v2883_v30 = vpop.f32.mrb[10].mxu0 }
 0x17b   : > { %v4208_v41 = vadd.f32 %v2956_v46, %v2955_v23  ;;  %v2884_v60 = vpop.f32.mrb[11].mxu0 }
 0x17c   : > { %v2885_v36 = vadd.f32 %v2884_v60, %v2883_v30  ;;  %v1428_v42 = vadd.f32 %v2882_v33, %v4217_v7 }
 0x17e   : > { %v1431_v0 = vadd.f32 %v2885_v36, %v4217_v7 }
 0x17f   : > { %v2958_v48 = vpop.f32.mrb[12].mxu1 }
 0x180   : > { %v2959_v32 = vpop.f32.mrb[13].mxu1 }
 0x181   : > { %v2886_v17 = vpop.f32.mrb[12].mxu0  ;;  %v4210_v1 = vadd.f32 %v2959_v32, %v2958_v48  ;;  %v2961_v6 = vpop.f32.mrb[14].mxu1 }
 0x182   : > { %v2887_v12 = vpop.f32.mrb[13].mxu0  ;;  %v2962_v44 = vpop.f32.mrb[15].mxu1 }
 0x183   : > { %v2888_v24 = vadd.f32 %v2887_v12, %v2886_v17  ;;  %v2889_v63 = vpop.f32.mrb[14].mxu0  ;;  %v4212_v52 = vadd.f32 %v2962_v44, %v2961_v6 }
 0x184   : > { %v2890_v31 = vpop.f32.mrb[15].mxu0 }
 0x185   : > { %v2891_v55 = vadd.f32 %v2890_v31, %v2889_v63  ;;  %v1436_v33 = vadd.f32 %v2888_v24, %v4217_v7 }
 0x187   : > { %v2980_v19 = vpop.f32.mrb[16].mxu1  ;;  %v1439_v36 = vadd.f32 %v2891_v55, %v4217_v7 }
 0x188   : > { %v2981_v15 = vpop.f32.mrb[17].mxu1 }
 0x189   : > { %v2892_v25 = vpop.f32.mrb[16].mxu0  ;;  %v2982_v22 = vadd.f32 %v2981_v15, %v2980_v19  ;;  %v2983_v18 = vpop.f32.mrb[18].mxu1 }
 0x18a   : > { %v2893_v13 = vpop.f32.mrb[17].mxu0  ;;  %v2984_v49 = vpop.f32.mrb[19].mxu1 }
 0x18b   : > { %v2894_v47 = vadd.f32 %v2893_v13, %v2892_v25  ;;  %v2895_v20 = vpop.f32.mrb[18].mxu0  ;;  %v2985_v11 = vadd.f32 %v2984_v49, %v2983_v18  ;;  %v4221_v9 = vadd.f32 %v2982_v22, %v1412_v28 }
 0x18c   : > { %v2896_v40 = vpop.f32.mrb[19].mxu0 }
 0x18d   : > { %v2897_v5 = vadd.f32 %v2896_v40, %v2895_v20  ;;  %v4223_v59 = vadd.f32 %v2985_v11, %v1415_v51  ;;  %v1444_v24 = vadd.f32 %v2894_v47, %v4217_v7 }
 0x18f   : > { %v2986_v56 = vpop.f32.mrb[20].mxu1  ;;  %v1447_v55 = vadd.f32 %v2897_v5, %v4217_v7 }
 0x190   : > { %v2987_v57 = vpop.f32.mrb[21].mxu1 }
 0x191   : > { %v2898_v3 = vpop.f32.mrb[20].mxu0  ;;  %v2988_v8 = vadd.f32 %v2987_v57, %v2986_v56  ;;  %v2989_v62 = vpop.f32.mrb[22].mxu1 }
 0x192   : > { %v2899_v53 = vpop.f32.mrb[21].mxu0  ;;  %v2990_v26 = vpop.f32.mrb[23].mxu1 }
 0x193   : > { %v2900_v35 = vadd.f32 %v2899_v53, %v2898_v3  ;;  %v2901_v43 = vpop.f32.mrb[22].mxu0  ;;  %v2991_v45 = vadd.f32 %v2990_v26, %v2989_v62  ;;  %v4227_v10 = vadd.f32 %v2988_v8, %v1420_v38 }
 0x194   : > { %v2902_v4 = vpop.f32.mrb[23].mxu0 }
 0x195   : > { %v2903_v37 = vadd.f32 %v2902_v4, %v2901_v43  ;;  %v4229_v21 = vadd.f32 %v2991_v45, %v1423_v50  ;;  %v1452_v47 = vadd.f32 %v2900_v35, %v4217_v7 }
 0x197   : > { %v2992_v58 = vpop.f32.mrb[24].mxu1  ;;  %v1455_v5 = vadd.f32 %v2903_v37, %v4217_v7 }
 0x198   : > { %v2993_v14 = vpop.f32.mrb[25].mxu1 }
 0x199   : > { %v2904_v61 = vpop.f32.mrb[24].mxu0  ;;  %v2994_v39 = vadd.f32 %v2993_v14, %v2992_v58  ;;  %v2995_v23 = vpop.f32.mrb[26].mxu1 }
 0x19a   : > { %v2905_v34 = vpop.f32.mrb[25].mxu0  ;;  %v2996_v46 = vpop.f32.mrb[27].mxu1 }
 0x19b   : > { %v2906_v30 = vadd.f32 %v2905_v34, %v2904_v61  ;;  %v2907_v60 = vpop.f32.mrb[26].mxu0  ;;  %v2997_v48 = vadd.f32 %v2996_v46, %v2995_v23  ;;  %v4233_v32 = vadd.f32 %v2994_v39, %v1428_v42 }
 0x19c   : > { %v2908_v17 = vpop.f32.mrb[27].mxu0 }
 0x19d   : > { %v2909_v6 = vadd.f32 %v2908_v17, %v2907_v60  ;;  %v4235_v12 = vadd.f32 %v2997_v48, %v1431_v0 }
 0x19f   : > { %v2998_v44 = vpop.f32.mrb[28].mxu1 }
 0x1a0   : > { %v2999_v63 = vpop.f32.mrb[29].mxu1 }
 0x1a1   : > { %v2910_v31 = vpop.f32.mrb[28].mxu0  ;;  %v3000_v19 = vadd.f32 %v2999_v63, %v2998_v44  ;;  %v3001_v15 = vpop.f32.mrb[30].mxu1 }
 0x1a2   : > { %v2911_v28 = vpop.f32.mrb[29].mxu0  ;;  %v3002_v25 = vpop.f32.mrb[31].mxu1 }
 0x1a3   : > { %v2912_v22 = vadd.f32 %v2911_v28, %v2910_v31  ;;  %v2913_v18 = vpop.f32.mrb[30].mxu0  ;;  %v3003_v13 = vadd.f32 %v3002_v25, %v3001_v15  ;;  %v4239_v49 = vadd.f32 %v3000_v19, %v1436_v33  ;;  %v1460_v19 = vadd.f32 %v2906_v30, %v4217_v7 }
 0x1a4   : > { %v2914_v51 = vpop.f32.mrb[31].mxu0 }
 0x1a5   : > { %v2915_v20 = vadd.f32 %v2914_v51, %v2913_v18  ;;  %v4241_v11 = vadd.f32 %v3003_v13, %v1439_v36  ;;  %v1463_v18 = vadd.f32 %v2909_v6, %v4217_v7  ;;  %v1468_v30 = vadd.f32 %v2912_v22, %v4217_v7 }
 0x1a6   : > { %v4277_v22 = vadd.f32 %v4198_v54, %v4217_v7 }
 0x1a7   : > { %v3004_v40 = vpop.f32.mrb[32].mxu1  ;;  %v1471_v6 = vadd.f32 %v2915_v20, %v4217_v7 }
 0x1a8   : > { %v3005_v56 = vpop.f32.mrb[33].mxu1 }
 0x1a9   : > { %v2916_v57 = vpop.f32.mrb[32].mxu0  ;;  %v3006_v38 = vadd.f32 %v3005_v56, %v3004_v40  ;;  %v3007_v3 = vpop.f32.mrb[34].mxu1 }
 0x1aa   : > { %v2917_v8 = vpop.f32.mrb[33].mxu0  ;;  %v3008_v62 = vpop.f32.mrb[35].mxu1 }
 0x1ab   : > { %v2918_v53 = vadd.f32 %v2917_v8, %v2916_v57  ;;  %v2919_v26 = vpop.f32.mrb[34].mxu0  ;;  %v3009_v50 = vadd.f32 %v3008_v62, %v3007_v3  ;;  %v4245_v43 = vadd.f32 %v3006_v38, %v1444_v24 }
 0x1ac   : > { %v2920_v45 = vpop.f32.mrb[35].mxu0 }
 0x1ad   : > { %v4247_v4 = vadd.f32 %v2920_v45, %v2919_v26  ;;  %v4249_v58 = vadd.f32 %v3009_v50, %v1447_v55 }
 0x1af   : > { %v3010_v14 = vpop.f32.mrb[36].mxu1 }
 0x1b0   : > { %v3011_v42 = vpop.f32.mrb[37].mxu1 }
 0x1b1   : > { %v2922_v61 = vpop.f32.mrb[36].mxu0  ;;  %v3012_v39 = vadd.f32 %v3011_v42, %v3010_v14  ;;  %v3013_v23 = vpop.f32.mrb[38].mxu1 }
 0x1b2   : > { %v2923_v34 = vpop.f32.mrb[37].mxu0  ;;  %v3014_v46 = vpop.f32.mrb[39].mxu1 }
 0x1b3   : > { %v4253_v0 = vadd.f32 %v2923_v34, %v2922_v61  ;;  %v2925_v60 = vpop.f32.mrb[38].mxu0  ;;  %v3015_v48 = vadd.f32 %v3014_v46, %v3013_v23  ;;  %v4255_v17 = vadd.f32 %v3012_v39, %v1452_v47 }
 0x1b4   : > { %v2926_v44 = vpop.f32.mrb[39].mxu0 }
 0x1b5   : > { %v4257_v63 = vadd.f32 %v2926_v44, %v2925_v60  ;;  %v4259_v33 = vadd.f32 %v3015_v48, %v1455_v5  ;;  %v1476_v60 = vadd.f32 %v2918_v53, %v4217_v7 }
 0x1b7   : > { %v3016_v31 = vpop.f32.mrb[40].mxu1 }
 0x1b8   : > { %v3017_v35 = vpop.f32.mrb[41].mxu1 }
 0x1b9   : > { %v2928_v15 = vpop.f32.mrb[40].mxu0  ;;  %v3018_v28 = vadd.f32 %v3017_v35, %v3016_v31  ;;  %v3019_v25 = vpop.f32.mrb[42].mxu1  ;;  %v4282_v31 = vadd.f32 %v4200_v2, %v4217_v7  ;;  %v4286_v35 = vadd.f32 %v4202_v29, %v4217_v7  ;;  %v4300_v29 = vadd.f32 %v4206_v16, %v4217_v7 }
 0x1ba   : > { %v2929_v36 = vpop.f32.mrb[41].mxu0  ;;  %v3020_v37 = vpop.f32.mrb[43].mxu1  ;;  %v4316_v16 = vadd.f32 %v4253_v0, %v4217_v7 }
 0x1bb   : > { %v2930_v13 = vadd.f32 %v2929_v36, %v2928_v15  ;;  %v2931_v51 = vpop.f32.mrb[42].mxu0  ;;  %v3021_v40 = vadd.f32 %v3020_v37, %v3019_v25  ;;  %v4263_v56 = vadd.f32 %v3018_v28, %v1460_v19  ;;  %v4290_v19 = vadd.f32 %v4204_v27, %v4217_v7 }
 0x1bc   : > { %v2932_v24 = vpop.f32.mrb[43].mxu0  ;;  %v1479_v28 = vadd.f32 %v4247_v4, %v4217_v7  ;;  %v4304_v27 = vadd.f32 %v4208_v41, %v4217_v7  ;;  %v4309_v4 = vadd.f32 %v4210_v1, %v4217_v7  ;;  %v4320_v41 = vadd.f32 %v4257_v63, %v4217_v7 }
 0x1bd   : > { %v4265_v57 = vadd.f32 %v2932_v24, %v2931_v51  ;;  %v4267_v38 = vadd.f32 %v3021_v40, %v1463_v18 }
 0x1bf   : > { %v3022_v3 = vpop.f32.mrb[44].mxu1 }
 0x1c0   : > { %v3023_v8 = vpop.f32.mrb[45].mxu1 }
 0x1c1   : > { %v2934_v62 = vpop.f32.mrb[44].mxu0  ;;  %v3024_v55 = vadd.f32 %v3023_v8, %v3022_v3  ;;  %v3025_v26 = vpop.f32.mrb[46].mxu1  ;;  %v4323_v8 = vadd.f32 %v2930_v13, %v4217_v7 }
 0x1c2   : > { %v2935_v50 = vpop.f32.mrb[45].mxu0  ;;  %v3026_v45 = vpop.f32.mrb[47].mxu1 }
 0x1c3   : > { %v2936_v14 = vadd.f32 %v2935_v50, %v2934_v62  ;;  %v2937_v42 = vpop.f32.mrb[46].mxu0  ;;  %v3027_v47 = vadd.f32 %v3026_v45, %v3025_v26  ;;  %v4271_v61 = vadd.f32 %v3024_v55, %v1468_v30 }
 0x1c4   : > { %v2938_v39 = vpop.f32.mrb[47].mxu0 }
 0x1c5   : > { %v2939_v23 = vadd.f32 %v2938_v39, %v2937_v42  ;;  %v4273_v34 = vadd.f32 %v3027_v47, %v1471_v6  ;;  %v4326_v1 = vadd.f32 %v2936_v14, %v4217_v7 }
 0x1c7   : > { %v3028_v46 = vpop.f32.mrb[48].mxu1  ;;  %v4329_v55 = vadd.f32 %v2939_v23, %v4217_v7 }
 0x1c8   : > { %v3029_v5 = vpop.f32.mrb[49].mxu1 }
 0x1c9   : > { %v3030_v48 = vadd.f32 %v3029_v5, %v3028_v46  ;;  %v3106_v20 = vpop.f32.mrb[48].mxu0  ;;  %v3031_v44 = vpop.f32.mrb[50].mxu1 }
 0x1ca   : > { %v1742_v54 = vadd.f32 %v3106_v20, %v4227_v10  ;;  %v1733_v53 = vpop.f32.mrb[49].mxu0  ;;  %v3032_v15 = vpop.f32.mrb[51].mxu1 }
 0x1cb   : > { %v1734_v25 = vadd.f32 %v1733_v53, %v4221_v9  ;;  %v3033_v36 = vadd.f32 %v3032_v15, %v3031_v44  ;;  %v3107_v2 = vpop.f32.mrb[50].mxu0  ;;  %v4296_v37 = vadd.f32 %v3030_v48, %v1476_v60  ;;  %v2743_v44 = vld [vmem:[%s4088_s4 + $0x18] sm:$0xf] }
 0x1cc   : > { %v1862_v10 = vmax.f32 %v1742_v54, 0.0  ;;  %v1745_v18 = vadd.f32 %v3107_v2, %v4229_v21  ;;  %v1736_v51 = vpop.f32.mrb[51].mxu0 }
 0x1cd   : > { %v1860_v9 = vmax.f32 %v1734_v25, 0.0  ;;  %v1737_v40 = vadd.f32 %v1736_v51, %v4223_v59  ;;  %v4312_v24 = vadd.f32 %v3033_v36, %v1479_v28 }
 0x1ce   : > { %v2822_v3 = vpack.c.bf16 %v1862_v10, %v1862_v10  ;;  %v1863_v21 = vmax.f32 %v1745_v18, 0.0 }
 0x1cf   : > { %v2820_v30 = vpack.c.bf16 %v1860_v9, %v1860_v9  ;;  %v1861_v59 = vmax.f32 %v1737_v40, 0.0  ;;  %v3034_v62 = vpop.f32.mrb[52].mxu1 }
 0x1d0   : > { %v2065_v0 = vshrl.u32 %v2822_v3, 16  ;;  %v2068_v26 = vshll.u32 %v2822_v3, 16  ;;  %v2823_v50 = vpack.c.bf16 %v1863_v21, %v1863_v21  ;;  %v3035_v63 = vpop.f32.mrb[53].mxu1  ;;  %v2746_v21 = vld [vmem:[%s4088_s4 + $0x20] sm:$0x1] }
 0x1d1   : > { %v2048_v45 = vshrl.u32 %v2820_v30, 16  ;;  %v2051_v6 = vshll.u32 %v2820_v30, 16  ;;  %v2821_v42 = vpack.c.bf16 %v1861_v59, %v1861_v59  ;;  %v4331_v47 = vadd.f32 %v3035_v63, %v3034_v62  ;;  %v3110_v13 = vpop.f32.mrb[52].mxu0  ;;  %v3037_v39 = vpop.f32.mrb[54].mxu1 }
 0x1d2   : > { %v2067_v14 = vrot.slane %v2065_v0, 7  ;;  %v2073_v46 = vshrl.u32 %v2823_v50, 16  ;;  %v2076_v5 = vshll.u32 %v2823_v50, 16  ;;  %v1758_v60 = vadd.f32 %v3110_v13, %v4239_v49  ;;  %v1749_v23 = vpop.f32.mrb[53].mxu0  ;;  %v3038_v48 = vpop.f32.mrb[55].mxu1 }
 0x1d3   : > { %v2050_v54 = vrot.slane %v2048_v45, 7  ;;  %v2056_v53 = vshrl.u32 %v2821_v42, 16  ;;  %v2059_v15 = vshll.u32 %v2821_v42, 16  ;;  %v1750_v28 = vadd.f32 %v1749_v23, %v4233_v32  ;;  %v3111_v25 = vpop.f32.mrb[54].mxu0  ;;  %v2738_v49 = vld [vmem:[%s4088_s4 + $0xc] sm:$0xf] }
 0x1d4   : > { %v2070_v36 = vor.u32 %v2068_v26, %v2067_v14  ;;  %v2071_v2 = vrot.slane %v2067_v14, 4  ;;  %v2075_v18 = vrot.slane %v2073_v46, 7  ;;  %v1866_v51 = vmax.f32 %v1758_v60, 0.0  ;;  %v1752_v9 = vpop.f32.mrb[55].mxu0  ;;  %v2741_v50 = vld [vmem:[%s4088_s4 + $0x14] sm:$0x1] }
 0x1d5   : > { %v2053_v40 = vor.u32 %v2051_v6, %v2050_v54  ;;  %v2054_v3 = vrot.slane %v2050_v54, 4  ;;  %v2058_v30 = vrot.slane %v2056_v53, 7  ;;  %v1864_v59 = vmax.f32 %v1750_v28, 0.0 }
 0x1d6   : > { %v2381_v62 = vsel %vm4336_vm8, %v2070_v36, %v2743_v44  ;;  %v2078_v0 = vor.u32 %v2076_v5, %v2075_v18  ;;  %v2080_v26 = vrot.slane %v2075_v18, 4  ;;  %v2826_v63 = vpack.c.bf16 %v1866_v51, %v1866_v51 }
 0x1d7   : > { %2744 = vst [vmem:[%s4088_s4 + $0x18] sm:$0xf] %v2381_v62  ;;  %v2372_v45 = vsel %vm4336_vm8, %v2053_v40, %v2738_v49  ;;  %v2061_v6 = vor.u32 %v2059_v15, %v2058_v30  ;;  %v2063_v42 = vrot.slane %v2058_v30, 4  ;;  %v2824_v13 = vpack.c.bf16 %v1864_v59, %v1864_v59  ;;  %v3040_v14 = vpop.f32.mrb[56].mxu1  ;;  %v2753_v30 = vld [vmem:[%s4088_s4 + $0x30] sm:$0xf] }
 0x1d8   : > { %2739 = vst [vmem:[%s4088_s4 + $0xc] sm:$0xf] %v2372_v45  ;;  %v2079_v46 = vsel %vm4345_vm9, %v2071_v2, %v2078_v0  ;;  %v2385_v5 = vsel %vm4351_vm10, %v2080_v26, %v2746_v21  ;;  %v2099_v60 = vshrl.u32 %v2826_v63, 16  ;;  %v2102_v23 = vshll.u32 %v2826_v63, 16  ;;  %v3041_v44 = vpop.f32.mrb[57].mxu1 }
 0x1d9   : > { %2745 = vst.msk [vmem:[%s4088_s4 + $0x1c] sm:$0xf] %vm1908_vm3, %v2079_v46  ;;  %2747 = vst [vmem:[%s4088_s4 + $0x20] sm:$0x1] %v2385_v5  ;;  %v2062_v54 = vsel %vm4345_vm9, %v2054_v3, %v2061_v6  ;;  %v2378_v53 = vsel %vm4351_vm10, %v2063_v42, %v2741_v50  ;;  %v2082_v15 = vshrl.u32 %v2824_v13, 16  ;;  %v2085_v28 = vshll.u32 %v2824_v13, 16 }
 0x1da   : > { %v3114_v36 = vpop.f32.mrb[56].mxu0  ;;  %v3043_v2 = vpop.f32.mrb[58].mxu1  ;;  %2740 = vst.msk [vmem:[%s4088_s4 + $0x10] sm:$0xf] %vm1908_vm3, %v2062_v54  ;;  %2742 = vst [vmem:[%s4088_s4 + $0x14] sm:$0x1] %v2378_v53  ;;  %v4379_v18 = vadd.f32 %v3038_v48, %v3037_v39  ;;  %v1761_v51 = vadd.f32 %v3111_v25, %v4241_v11  ;;  %v1753_v40 = vadd.f32 %v1752_v9, %v4235_v12 }
 0x1db   : > { %v4377_v49 = vrot.slane %v2099_v60, 7  ;;  %v1765_v3 = vpop.f32.mrb[57].mxu0  ;;  %v3044_v21 = vpop.f32.mrb[59].mxu1  ;;  %v4384_v59 = vrot.slane %v2082_v15, 7  ;;  %v4386_v62 = vadd.f32 %v3041_v44, %v3040_v14  ;;  %v1774_v0 = vadd.f32 %v3114_v36, %v4255_v17  ;;  %v2748_v11 = vld [vmem:[%s4088_s4 + $0x24] sm:$0xf] }
 0x1dc   : > { %v1766_v26 = vadd.f32 %v1765_v3, %v4245_v43  ;;  %v3115_v50 = vpop.f32.mrb[58].mxu0  ;;  %v1867_v25 = vmax.f32 %v1761_v51, 0.0  ;;  %v1865_v12 = vmax.f32 %v1753_v40, 0.0  ;;  %v4397_v14 = vadd.f32 %v3044_v21, %v3043_v2  ;;  %v2751_v51 = vld [vmem:[%s4088_s4 + $0x2c] sm:$0x1] }
 0x1dd   : > { %v2104_v39 = vor.u32 %v2102_v23, %v4377_v49  ;;  %v2105_v48 = vrot.slane %v4377_v49, 4  ;;  %v1768_v9 = vpop.f32.mrb[59].mxu0  ;;  %v2087_v63 = vor.u32 %v2085_v28, %v4384_v59  ;;  %v2088_v45 = vrot.slane %v4384_v59, 4  ;;  %v2756_v49 = vld [vmem:[%s4088_s4 + $0x38] sm:$0x1] }
 0x1de   : > { %v1870_v6 = vmax.f32 %v1774_v0, 0.0  ;;  %v1868_v42 = vmax.f32 %v1766_v26, 0.0  ;;  %v2827_v17 = vpack.c.bf16 %v1867_v25, %v1867_v25  ;;  %v2825_v13 = vpack.c.bf16 %v1865_v12, %v1865_v12  ;;  %v2763_v12 = vld [vmem:[%s4088_s4 + $0x48] sm:$0xf] }
 0x1df   : > { %v2395_v43 = vsel %vm4336_vm8, %v2104_v39, %v2753_v30  ;;  %v2388_v46 = vsel %vm4336_vm8, %v2087_v63, %v2748_v11  ;;  %v1777_v23 = vadd.f32 %v3115_v50, %v4259_v33  ;;  %v3046_v44 = vpop.f32.mrb[60].mxu1  ;;  %v1769_v50 = vadd.f32 %v1768_v9, %v4249_v58  ;;  %v2758_v9 = vld [vmem:[%s4088_s4 + $0x3c] sm:$0xf] }
 0x1e0   : > { %2754 = vst [vmem:[%s4088_s4 + $0x30] sm:$0xf] %v2395_v43  ;;  %v2830_v5 = vpack.c.bf16 %v1870_v6, %v1870_v6  ;;  %v2828_v60 = vpack.c.bf16 %v1868_v42, %v1868_v42  ;;  %2749 = vst [vmem:[%s4088_s4 + $0x24] sm:$0xf] %v2388_v46  ;;  %v2107_v54 = vshrl.u32 %v2827_v17, 16  ;;  %v2110_v53 = vshll.u32 %v2827_v17, 16 }
 0x1e1   : > { %v2090_v15 = vshrl.u32 %v2825_v13, 16  ;;  %v2093_v28 = vshll.u32 %v2825_v13, 16  ;;  %v3047_v36 = vpop.f32.mrb[61].mxu1  ;;  %v3118_v30 = vpop.f32.mrb[60].mxu0  ;;  %v1871_v33 = vmax.f32 %v1777_v23, 0.0 }
 0x1e2   : > { %v2133_v2 = vshrl.u32 %v2830_v5, 16  ;;  %v2136_v40 = vshll.u32 %v2830_v5, 16  ;;  %v2116_v3 = vshrl.u32 %v2828_v60, 16  ;;  %v2119_v21 = vshll.u32 %v2828_v60, 16  ;;  %v3049_v59 = vpop.f32.mrb[62].mxu1  ;;  %v1781_v39 = vpop.f32.mrb[61].mxu0 }
 0x1e3   : > { %v2109_v0 = vrot.slane %v2107_v54, 7  ;;  %v2092_v26 = vrot.slane %v2090_v15, 7  ;;  %v3050_v11 = vpop.f32.mrb[63].mxu1  ;;  %v4412_v6 = vadd.f32 %v3047_v36, %v3046_v44  ;;  %v1790_v42 = vadd.f32 %v3118_v30, %v4271_v61  ;;  %v3119_v43 = vpop.f32.mrb[62].mxu0 }
 0x1e4   : > { %v4407_v25 = vrot.slane %v2133_v2, 7  ;;  %v4410_v63 = vrot.slane %v2116_v3, 7  ;;  %v1784_v5 = vpop.f32.mrb[63].mxu0  ;;  %v2831_v2 = vpack.c.bf16 %v1871_v33, %v1871_v33  ;;  %v4441_v3 = vadd.f32 %v3050_v11, %v3049_v59 }
 0x1e5   : > { %v2112_v17 = vor.u32 %v2110_v53, %v2109_v0  ;;  %v2114_v13 = vrot.slane %v2109_v0, 4  ;;  %v2095_v46 = vor.u32 %v2093_v28, %v2092_v26  ;;  %v2097_v58 = vrot.slane %v2092_v26, 4 }
 0x1e6   : > { %v2138_v60 = vor.u32 %v2136_v40, %v4407_v25  ;;  %v2139_v23 = vrot.slane %v4407_v25, 4  ;;  %v2121_v44 = vor.u32 %v2119_v21, %v4410_v63  ;;  %v2122_v61 = vrot.slane %v4410_v63, 4 }
 0x1e7   : > { %v2113_v54 = vsel %vm4345_vm9, %v2105_v48, %v2112_v17  ;;  %v2399_v53 = vsel %vm4351_vm10, %v2114_v13, %v2756_v49  ;;  %v2096_v15 = vsel %vm4345_vm9, %v2088_v45, %v2095_v46  ;;  %v2392_v28 = vsel %vm4351_vm10, %v2097_v58, %v2751_v51  ;;  %v3052_v40 = vpop.f32.mrb[64].mxu1 }
 0x1e8   : > { %2755 = vst.msk [vmem:[%s4088_s4 + $0x34] sm:$0xf] %vm1908_vm3, %v2113_v54  ;;  %2757 = vst [vmem:[%s4088_s4 + $0x38] sm:$0x1] %v2399_v53  ;;  %v2409_v36 = vsel %vm4336_vm8, %v2138_v60, %v2763_v12  ;;  %v2402_v48 = vsel %vm4336_vm8, %v2121_v44, %v2758_v9  ;;  %v1869_v49 = vmax.f32 %v1769_v50, 0.0  ;;  %v1874_v45 = vmax.f32 %v1790_v42, 0.0 }
 0x1e9   : > { %2750 = vst.msk [vmem:[%s4088_s4 + $0x28] sm:$0xf] %vm1908_vm3, %v2096_v15  ;;  %2752 = vst [vmem:[%s4088_s4 + $0x2c] sm:$0x1] %v2392_v28  ;;  %v1782_v51 = vadd.f32 %v1781_v39, %v4263_v56  ;;  %v1793_v21 = vadd.f32 %v3119_v43, %v4273_v34  ;;  %v3053_v30 = vpop.f32.mrb[65].mxu1  ;;  %v2141_v0 = vshrl.u32 %v2831_v2, 16  ;;  %v1785_v12 = vadd.f32 %v1784_v5, %v4267_v38 }
 0x1ea   : > { %2764 = vst [vmem:[%s4088_s4 + $0x48] sm:$0xf] %v2409_v36  ;;  %2759 = vst [vmem:[%s4088_s4 + $0x3c] sm:$0xf] %v2402_v48  ;;  %v2144_v26 = vshll.u32 %v2831_v2, 16  ;;  %v2829_v25 = vpack.c.bf16 %v1869_v49, %v1869_v49  ;;  %v4445_v17 = vpop.f32.mrb[64].mxu0  ;;  %v2834_v50 = vpack.c.bf16 %v1874_v45, %v1874_v45  ;;  %v4449_v46 = vadd.f32 %v3053_v30, %v3052_v40 }
 0x1eb   : > { %v4447_v33 = vpop.f32.mrb[66].mxu1  ;;  %v1872_v13 = vmax.f32 %v1782_v51, 0.0  ;;  %v1875_v42 = vmax.f32 %v1793_v21, 0.0  ;;  %v1797_v56 = vpop.f32.mrb[65].mxu0  ;;  %v2143_v34 = vrot.slane %v2141_v0, 7  ;;  %v1873_v43 = vmax.f32 %v1785_v12, 0.0 }
 0x1ec   : > { %v3056_v59 = vpop.f32.mrb[67].mxu1  ;;  %v2124_v39 = vshrl.u32 %v2829_v25, 16  ;;  %v2127_v11 = vshll.u32 %v2829_v25, 16  ;;  %v4451_v58 = vpop.f32.mrb[66].mxu0  ;;  %v2766_v9 = vld [vmem:[%s4088_s4 + $0x50] sm:$0x1] }
 0x1ed   : > { %v2167_v38 = vshrl.u32 %v2834_v50, 16  ;;  %v2170_v5 = vshll.u32 %v2834_v50, 16  ;;  %v2832_v60 = vpack.c.bf16 %v1872_v13, %v1872_v13  ;;  %v2835_v44 = vpack.c.bf16 %v1875_v42, %v1875_v42  ;;  %v1800_v54 = vpop.f32.mrb[67].mxu0  ;;  %v2761_v48 = vld [vmem:[%s4088_s4 + $0x44] sm:$0x1] }
 0x1ee   : > { %v2146_v53 = vor.u32 %v2144_v26, %v2143_v34  ;;  %v2148_v15 = vrot.slane %v2143_v34, 4  ;;  %v2126_v28 = vrot.slane %v2124_v39, 7  ;;  %v2833_v36 = vpack.c.bf16 %v1873_v43, %v1873_v43  ;;  %v2773_v26 = vld [vmem:[%s4088_s4 + $0x60] sm:$0xf]  ;;  %v2768_v42 = vld [vmem:[%s4088_s4 + $0x54] sm:$0xf] }
 0x1ef   : > { %v2169_v2 = vrot.slane %v2167_v38, 7  ;;  %v2150_v49 = vshrl.u32 %v2832_v60, 16  ;;  %v2153_v40 = vshll.u32 %v2832_v60, 16  ;;  %v2175_v45 = vshrl.u32 %v2835_v44, 16  ;;  %v3058_v25 = vpop.f32.mrb[68].mxu1 }
 0x1f0   : > { %v2147_v51 = vsel %vm4345_vm9, %v2139_v23, %v2146_v53  ;;  %v2413_v21 = vsel %vm4351_vm10, %v2148_v15, %v2766_v9  ;;  %v2129_v30 = vor.u32 %v2127_v11, %v2126_v28  ;;  %v2131_v0 = vrot.slane %v2126_v28, 4  ;;  %v3059_v39 = vpop.f32.mrb[69].mxu1  ;;  %v2776_v9 = vld [vmem:[%s4088_s4 + $0x68] sm:$0x1] }
 0x1f1   : > { %2765 = vst.msk [vmem:[%s4088_s4 + $0x4c] sm:$0xf] %vm1908_vm3, %v2147_v51  ;;  %2767 = vst [vmem:[%s4088_s4 + $0x50] sm:$0x1] %v2413_v21  ;;  %v2172_v12 = vor.u32 %v2170_v5, %v2169_v2  ;;  %v2173_v50 = vrot.slane %v2169_v2, 4  ;;  %v2152_v13 = vrot.slane %v2150_v49, 7 }
 0x1f2   : > { %v2177_v34 = vrot.slane %v2175_v45, 7  ;;  %v2130_v23 = vsel %vm4345_vm9, %v2122_v61, %v2129_v30  ;;  %v2406_v11 = vsel %vm4351_vm10, %v2131_v0, %v2761_v48  ;;  %v2178_v43 = vshll.u32 %v2835_v44, 16  ;;  %v3126_v60 = vpop.f32.mrb[68].mxu0  ;;  %v3061_v53 = vpop.f32.mrb[70].mxu1  ;;  %v2771_v30 = vld [vmem:[%s4088_s4 + $0x5c] sm:$0x1] }
 0x1f3   : > { %v2158_v38 = vshrl.u32 %v2833_v36, 16  ;;  %2760 = vst.msk [vmem:[%s4088_s4 + $0x40] sm:$0xf] %vm1908_vm3, %v2130_v23  ;;  %2762 = vst [vmem:[%s4088_s4 + $0x44] sm:$0x1] %v2406_v11  ;;  %v2423_v5 = vsel %vm4336_vm8, %v2172_v12, %v2773_v26  ;;  %v2155_v63 = vor.u32 %v2153_v40, %v2152_v13  ;;  %v2156_v15 = vrot.slane %v2152_v13, 4 }
 0x1f4   : > { %v2182_v28 = vrot.slane %v2177_v34, 4  ;;  %v1813_v61 = vpop.f32.mrb[69].mxu0  ;;  %v3062_v2 = vpop.f32.mrb[71].mxu1  ;;  %2774 = vst [vmem:[%s4088_s4 + $0x60] sm:$0xf] %v2423_v5  ;;  %v2180_v44 = vor.u32 %v2178_v43, %v2177_v34  ;;  %v2161_v49 = vshll.u32 %v2833_v36, 16  ;;  %v1645_v45 = vadd.f32 %v4331_v47, %v4316_v16 }
 0x1f5   : > { %v2160_v48 = vrot.slane %v2158_v38, 7  ;;  %v3127_v51 = vpop.f32.mrb[70].mxu0  ;;  %v2416_v21 = vsel %vm4336_vm8, %v2155_v63, %v2768_v42  ;;  %v1798_v0 = vadd.f32 %v1797_v56, %v4296_v37  ;;  %v4486_v26 = vadd.f32 %v3056_v59, %v4447_v33 }
 0x1f6   : > { %v2427_v40 = vsel %vm4351_vm10, %v2182_v28, %v2776_v9  ;;  %v4488_v12 = vpop.f32.mrb[71].mxu0  ;;  %2769 = vst [vmem:[%s4088_s4 + $0x54] sm:$0xf] %v2416_v21  ;;  %v2181_v16 = vsel %vm4345_vm9, %v2173_v50, %v2180_v44  ;;  %v1806_v13 = vadd.f32 %v4445_v17, %v1645_v45  ;;  %v1648_v37 = vadd.f32 %v4379_v18, %v4320_v41 }
 0x1f7   : > { %2777 = vst [vmem:[%s4088_s4 + $0x68] sm:$0x1] %v2427_v40  ;;  %v2163_v47 = vor.u32 %v2161_v49, %v2160_v48  ;;  %v2165_v36 = vrot.slane %v2160_v48, 4  ;;  %2775 = vst.msk [vmem:[%s4088_s4 + $0x64] sm:$0xf] %vm1908_vm3, %v2181_v16  ;;  %v1876_v42 = vmax.f32 %v1798_v0, 0.0  ;;  %v1801_v33 = vadd.f32 %v1800_v54, %v4312_v24 }
 0x1f8   : > { %v4500_v56 = vadd.f32 %v3059_v39, %v3058_v25  ;;  %v1878_v34 = vmax.f32 %v1806_v13, 0.0  ;;  %v1661_v17 = vadd.f32 %v4412_v6, %v4326_v1  ;;  %v4508_v23 = vpop.f32.mrb[72].mxu1  ;;  %v1809_v24 = vadd.f32 %v4451_v58, %v1648_v37  ;;  %v2778_v49 = vld [vmem:[%s4088_s4 + $0x6c] sm:$0xf] }
 0x1f9   : > { %v2164_v59 = vsel %vm4345_vm9, %v2156_v15, %v2163_v47  ;;  %v2420_v50 = vsel %vm4351_vm10, %v2165_v36, %v2771_v30  ;;  %v2836_v41 = vpack.c.bf16 %v1876_v42, %v1876_v42  ;;  %v1877_v18 = vmax.f32 %v1801_v33, 0.0  ;;  %v4516_v25 = vpop.f32.mrb[73].mxu1  ;;  %v4522_v6 = vpop.f32.mrb[72].mxu0  ;;  %v2783_v30 = vld [vmem:[%s4088_s4 + $0x78] sm:$0xf] }
 0x1fa   : > { %2770 = vst.msk [vmem:[%s4088_s4 + $0x58] sm:$0xf] %vm1908_vm3, %v2164_v59  ;;  %2772 = vst [vmem:[%s4088_s4 + $0x5c] sm:$0x1] %v2420_v50  ;;  %v1653_v54 = vadd.f32 %v4386_v62, %v4323_v8  ;;  %v2838_v39 = vpack.c.bf16 %v1878_v34, %v1878_v34  ;;  %v1822_v11 = vadd.f32 %v3126_v60, %v1661_v17  ;;  %v4524_v9 = vpop.f32.mrb[74].mxu1  ;;  %v1879_v8 = vmax.f32 %v1809_v24, 0.0 }
 0x1fb   : > { %v4518_v43 = vadd.f32 %v3062_v2, %v3061_v53  ;;  %v1664_v1 = vadd.f32 %v4441_v3, %v4329_v55  ;;  %v4528_v58 = vadd.f32 %v4265_v57, %v4217_v7  ;;  %v2184_v38 = vshrl.u32 %v2836_v41, 16  ;;  %v4530_v5 = vpop.f32.mrb[73].mxu0  ;;  %v4532_v60 = vpop.f32.mrb[75].mxu1  ;;  %v2786_v42 = vld [vmem:[%s4088_s4 + $0x80] sm:$0x1] }
 0x1fc   : > { %v2837_v62 = vpack.c.bf16 %v1877_v18, %v1877_v18  ;;  %v2201_v53 = vshrl.u32 %v2838_v39, 16  ;;  %v2187_v63 = vshll.u32 %v2836_v41, 16  ;;  %v1882_v55 = vmax.f32 %v1822_v11, 0.0  ;;  %v4534_v15 = vpop.f32.mrb[74].mxu0  ;;  %v2781_v17 = vld [vmem:[%s4088_s4 + $0x74] sm:$0x1] }
 0x1fd   : > { %v1814_v3 = vadd.f32 %v1813_v61, %v1653_v54  ;;  %v2204_v28 = vshll.u32 %v2838_v39, 16  ;;  %v2186_v2 = vrot.slane %v2184_v38, 7  ;;  %v2839_v7 = vpack.c.bf16 %v1879_v8, %v1879_v8  ;;  %v4536_v44 = vpop.f32.mrb[75].mxu0 }
 0x1fe   : > { %v2192_v57 = vshrl.u32 %v2837_v62, 16  ;;  %v2203_v48 = vrot.slane %v2201_v53, 7  ;;  %v2842_v45 = vpack.c.bf16 %v1882_v55, %v1882_v55  ;;  %v1825_v40 = vadd.f32 %v3127_v51, %v1664_v1  ;;  %v2793_v1 = vld [vmem:[%s4088_s4 + $0x90] sm:$0xf] }
 0x1ff   : > { %v1880_v21 = vmax.f32 %v1814_v3, 0.0  ;;  %v2189_v0 = vor.u32 %v2187_v63, %v2186_v2  ;;  %v2190_v16 = vrot.slane %v2186_v2, 4  ;;  %v2209_v61 = vshrl.u32 %v2839_v7, 16  ;;  %v3070_v59 = vpop.f32.mrb[76].mxu1 }
 0x200   : > { %v2195_v47 = vshll.u32 %v2837_v62, 16  ;;  %v2206_v36 = vor.u32 %v2204_v28, %v2203_v48  ;;  %v2212_v13 = vshll.u32 %v2839_v7, 16  ;;  %v2194_v37 = vrot.slane %v2192_v57, 7  ;;  %v3071_v24 = vpop.f32.mrb[77].mxu1 }
 0x201   : > { %v2235_v33 = vshrl.u32 %v2842_v45, 16  ;;  %v2430_v50 = vsel %vm4336_vm8, %v2189_v0, %v2778_v49  ;;  %v2211_v34 = vrot.slane %v2209_v61, 7  ;;  %v2238_v51 = vshll.u32 %v2842_v45, 16  ;;  %v4550_v38 = vpop.f32.mrb[76].mxu0  ;;  %v4552_v8 = vpop.f32.mrb[78].mxu1 }
 0x202   : > { %v2840_v41 = vpack.c.bf16 %v1880_v21, %v1880_v21  ;;  %v2437_v18 = vsel %vm4336_vm8, %v2206_v36, %v2783_v30  ;;  %2779 = vst [vmem:[%s4088_s4 + $0x6c] sm:$0xf] %v2430_v50  ;;  %v2197_v54 = vor.u32 %v2195_v47, %v2194_v37  ;;  %v2199_v39 = vrot.slane %v2194_v37, 4  ;;  %v4555_v3 = vpop.f32.mrb[77].mxu0  ;;  %v4557_v28 = vpop.f32.mrb[79].mxu1 }
 0x203   : > { %v4547_v11 = vrot.slane %v2235_v33, 7  ;;  %v2207_v62 = vrot.slane %v2203_v48, 4  ;;  %2784 = vst [vmem:[%s4088_s4 + $0x78] sm:$0xf] %v2437_v18  ;;  %v2214_v53 = vor.u32 %v2212_v13, %v2211_v34  ;;  %v2216_v63 = vrot.slane %v2211_v34, 4  ;;  %v4564_v49 = vpop.f32.mrb[78].mxu0 }
 0x204   : > { %v2218_v55 = vshrl.u32 %v2840_v41, 16  ;;  %v2198_v2 = vsel %vm4345_vm9, %v2190_v16, %v2197_v54  ;;  %v2434_v7 = vsel %vm4351_vm10, %v2199_v39, %v2781_v17  ;;  %v2221_v48 = vshll.u32 %v2840_v41, 16  ;;  %v4575_v16 = vpop.f32.mrb[79].mxu0  ;;  %v2788_v47 = vld [vmem:[%s4088_s4 + $0x84] sm:$0xf] }
 0x205   : > { %v2240_v57 = vor.u32 %v2238_v51, %v4547_v11  ;;  %v2215_v45 = vsel %vm4345_vm9, %v2207_v62, %v2214_v53  ;;  %v2441_v21 = vsel %vm4351_vm10, %v2216_v63, %v2786_v42  ;;  %2780 = vst.msk [vmem:[%s4088_s4 + $0x70] sm:$0xf] %vm1908_vm3, %v2198_v2  ;;  %2782 = vst [vmem:[%s4088_s4 + $0x74] sm:$0x1] %v2434_v7  ;;  %v1883_v0 = vmax.f32 %v1825_v40, 0.0 }
 0x206   : > { %v4573_v30 = vrot.slane %v2218_v55, 7  ;;  %2785 = vst.msk [vmem:[%s4088_s4 + $0x7c] sm:$0xf] %vm1908_vm3, %v2215_v45  ;;  %2787 = vst [vmem:[%s4088_s4 + $0x80] sm:$0x1] %v2441_v21  ;;  %v1656_v36 = vadd.f32 %v4397_v14, %v4528_v58  ;;  %v3066_v13 = vadd.f32 %v4516_v25, %v4508_v23  ;;  %v1677_v42 = vadd.f32 %v4500_v56, %v4286_v35 }
 0x207   : > { %v2451_v61 = vsel %vm4336_vm8, %v2240_v57, %v2793_v1  ;;  %v2241_v40 = vrot.slane %v4547_v11, 4  ;;  %v2843_v33 = vpack.c.bf16 %v1883_v0, %v1883_v0  ;;  %v1669_v50 = vadd.f32 %v4449_v46, %v4277_v22  ;;  %v2791_v7 = vld [vmem:[%s4088_s4 + $0x8c] sm:$0x1]  ;;  %v2803_v57 = vld [vmem:[%s4088_s4 + $0xa8] sm:$0xf] }
 0x208   : > { %2794 = vst [vmem:[%s4088_s4 + $0x90] sm:$0xf] %v2451_v61  ;;  %v2223_v37 = vor.u32 %v2221_v48, %v4573_v30  ;;  %v1817_v34 = vadd.f32 %v4488_v12, %v1656_v36  ;;  %v1838_v14 = vadd.f32 %v4522_v6, %v1677_v42  ;;  %v4598_v23 = vadd.f32 %v4532_v60, %v4524_v9  ;;  %v2798_v42 = vld [vmem:[%s4088_s4 + $0x9c] sm:$0xf] }
 0x209   : > { %v1680_v35 = vadd.f32 %v4518_v43, %v4290_v19  ;;  %v2243_v25 = vshrl.u32 %v2843_v33, 16  ;;  %v2246_v58 = vshll.u32 %v2843_v33, 16  ;;  %v1830_v17 = vadd.f32 %v4530_v5, %v1669_v50  ;;  %v2796_v43 = vld [vmem:[%s4088_s4 + $0x98] sm:$0x1] }
 0x20a   : > { %v2444_v56 = vsel %vm4336_vm8, %v2223_v37, %v2788_v47  ;;  %v1881_v22 = vmax.f32 %v1817_v34, 0.0  ;;  %v1886_v46 = vmax.f32 %v1838_v14, 0.0  ;;  %v1672_v6 = vadd.f32 %v4486_v26, %v4282_v31 }
 0x20b   : > { %2789 = vst [vmem:[%s4088_s4 + $0x84] sm:$0xf] %v2444_v56  ;;  %v1841_v12 = vadd.f32 %v4534_v15, %v1680_v35  ;;  %v2245_v9 = vrot.slane %v2243_v25, 7  ;;  %v1884_v60 = vmax.f32 %v1830_v17, 0.0  ;;  %v3072_v51 = vadd.f32 %v3071_v24, %v3070_v59  ;;  %v2806_v25 = vld [vmem:[%s4088_s4 + $0xb0] sm:$0x1] }
 0x20c   : > { %v1685_v19 = vadd.f32 %v3066_v13, %v4300_v29  ;;  %v2841_v41 = vpack.c.bf16 %v1881_v22, %v1881_v22  ;;  %v2846_v18 = vpack.c.bf16 %v1886_v46, %v1886_v46  ;;  %v1833_v5 = vadd.f32 %v4536_v44, %v1672_v6 }
 0x20d   : > { %v1887_v54 = vmax.f32 %v1841_v12, 0.0  ;;  %v2248_v39 = vor.u32 %v2246_v58, %v2245_v9  ;;  %v2250_v11 = vrot.slane %v2245_v9, 4  ;;  %v2844_v1 = vpack.c.bf16 %v1884_v60, %v1884_v60 }
 0x20e   : > { %v1693_v15 = vadd.f32 %v3072_v51, %v4309_v4  ;;  %v2226_v31 = vshrl.u32 %v2841_v41, 16  ;;  %v2229_v26 = vshll.u32 %v2841_v41, 16  ;;  %v2269_v59 = vshrl.u32 %v2846_v18, 16 }
 0x20f   : > { %v2272_v24 = vshll.u32 %v2846_v18, 16  ;;  %v2249_v29 = vsel %vm4345_vm9, %v2241_v40, %v2248_v39  ;;  %v2455_v62 = vsel %vm4351_vm10, %v2250_v11, %v2796_v43  ;;  %v2252_v53 = vshrl.u32 %v2844_v1, 16  ;;  %v3269_v40 = vld [vmem:[%s4700_s2] ss:$0 sm:$0xff] }
 0x210   : > { %v2255_v63 = vshll.u32 %v2844_v1, 16  ;;  %2795 = vst.msk [vmem:[%s4088_s4 + $0x94] sm:$0xf] %vm1908_vm3, %v2249_v29  ;;  %2797 = vst [vmem:[%s4088_s4 + $0x98] sm:$0x1] %v2455_v62  ;;  %v2228_v44 = vrot.slane %v2226_v31, 7  ;;  %v2847_v4 = vpack.c.bf16 %v1887_v54, %v1887_v54  ;;  %v1854_v45 = vadd.f32 %v4550_v38, %v1693_v15 }
 0x211   : > { %v2271_v55 = vrot.slane %v2269_v59, 7  ;;  %v1885_v2 = vmax.f32 %v1833_v5, 0.0  ;;  %v2254_v48 = vrot.slane %v2252_v53, 7  ;;  %v1846_v21 = vadd.f32 %v4555_v3, %v1685_v19  ;;  %v2801_v54 = vld [vmem:[%s4088_s4 + $0xa4] sm:$0x1] }
 0x212   : > { %v3075_v0 = vadd.f32 %v4557_v28, %v4552_v8  ;;  %v2224_v61 = vrot.slane %v4573_v30, 4  ;;  %v2231_v47 = vor.u32 %v2229_v26, %v2228_v44  ;;  %v2233_v36 = vrot.slane %v2228_v44, 4  ;;  %v2813_v59 = vld [vmem:[%s4088_s4 + $0xc0] sm:$0xf]  ;;  %v2808_v53 = vld [vmem:[%s4088_s4 + $0xb4] sm:$0xf] }
 0x213   : > { %v2274_v13 = vor.u32 %v2272_v24, %v2271_v55  ;;  %v1535_v38 = vadd.f32 %v3269_v40, %v4212_v52  ;;  %v2257_v3 = vor.u32 %v2255_v63, %v2254_v48  ;;  %v2277_v37 = vshrl.u32 %v2847_v4, 16 }
 0x214   : > { %v2280_v33 = vshll.u32 %v2847_v4, 16  ;;  %v2232_v8 = vsel %vm4345_vm9, %v2224_v61, %v2231_v47  ;;  %v2448_v28 = vsel %vm4351_vm10, %v2233_v36, %v2791_v7  ;;  %v2845_v50 = vpack.c.bf16 %v1885_v2, %v1885_v2  ;;  %v2816_v36 = vld [vmem:[%s4088_s4 + $0xc8] sm:$0x1] }
 0x215   : > { %v2465_v30 = vsel %vm4336_vm8, %v2274_v13, %v2803_v57  ;;  %2790 = vst.msk [vmem:[%s4088_s4 + $0x88] sm:$0xf] %vm1908_vm3, %v2232_v8  ;;  %2792 = vst [vmem:[%s4088_s4 + $0x8c] sm:$0x1] %v2448_v28  ;;  %v2458_v52 = vsel %vm4336_vm8, %v2257_v3, %v2798_v42  ;;  %v2279_v34 = vrot.slane %v2277_v37, 7  ;;  %v1890_v14 = vmax.f32 %v1854_v45, 0.0 }
 0x216   : > { %2804 = vst [vmem:[%s4088_s4 + $0xa8] sm:$0xf] %v2465_v30  ;;  %v1888_v35 = vmax.f32 %v1846_v21, 0.0  ;;  %v2275_v56 = vrot.slane %v2271_v55, 4  ;;  %2799 = vst [vmem:[%s4088_s4 + $0x9c] sm:$0xf] %v2458_v52  ;;  %v1696_v17 = vadd.f32 %v3075_v0, %v1535_v38  ;;  %v1688_v22 = vadd.f32 %v4598_v23, %v4304_v27 }
 0x217   : > { %v2260_v58 = vshrl.u32 %v2845_v50, 16  ;;  %v2282_v46 = vor.u32 %v2280_v33, %v2279_v34  ;;  %v2284_v12 = vrot.slane %v2279_v34, 4  ;;  %v2850_v6 = vpack.c.bf16 %v1890_v14, %v1890_v14  ;;  %v2811_v13 = vld [vmem:[%s4088_s4 + $0xbc] sm:$0x1] }
 0x218   : > { %v2848_v9 = vpack.c.bf16 %v1888_v35, %v1888_v35  ;;  %v2263_v51 = vshll.u32 %v2845_v50, 16  ;;  %v1857_v19 = vadd.f32 %v4564_v49, %v1696_v17  ;;  %v1849_v43 = vadd.f32 %v4575_v16, %v1688_v22 }
 0x219   : > { %v2262_v60 = vrot.slane %v2260_v58, 7  ;;  %v2283_v41 = vsel %vm4345_vm9, %v2275_v56, %v2282_v46  ;;  %v2469_v18 = vsel %vm4351_vm10, %v2284_v12, %v2806_v25  ;;  %v2303_v5 = vshrl.u32 %v2850_v6, 16 }
 0x21a   : > { %v2258_v27 = vrot.slane %v2254_v48, 4  ;;  %2805 = vst.msk [vmem:[%s4088_s4 + $0xac] sm:$0xf] %vm1908_vm3, %v2283_v41  ;;  %2807 = vst [vmem:[%s4088_s4 + $0xb0] sm:$0x1] %v2469_v18  ;;  %v2286_v39 = vshrl.u32 %v2848_v9, 16 }
 0x21b   : > { %v2265_v23 = vor.u32 %v2263_v51, %v2262_v60  ;;  %v2267_v49 = vrot.slane %v2262_v60, 4  ;;  %v2305_v16 = vrot.slane %v2303_v5, 7  ;;  %v2306_v11 = vshll.u32 %v2850_v6, 16 }
 0x21c   : > { %v1891_v1 = vmax.f32 %v1857_v19, 0.0  ;;  %v1889_v15 = vmax.f32 %v1849_v43, 0.0  ;;  %v2288_v24 = vrot.slane %v2286_v39, 7  ;;  %v2289_v29 = vshll.u32 %v2848_v9, 16 }
 0x21d   : > { %v2266_v31 = vsel %vm4345_vm9, %v2258_v27, %v2265_v23  ;;  %v2462_v26 = vsel %vm4351_vm10, %v2267_v49, %v2801_v54  ;;  %v2308_v62 = vor.u32 %v2306_v11, %v2305_v16  ;;  %v2309_v61 = vrot.slane %v2305_v16, 4 }
 0x21e   : > { %2800 = vst.msk [vmem:[%s4088_s4 + $0xa0] sm:$0xf] %vm1908_vm3, %v2266_v31  ;;  %2802 = vst [vmem:[%s4088_s4 + $0xa4] sm:$0x1] %v2462_v26  ;;  %v2851_v63 = vpack.c.bf16 %v1891_v1, %v1891_v1  ;;  %v2849_v44 = vpack.c.bf16 %v1889_v15, %v1889_v15  ;;  %v2291_v55 = vor.u32 %v2289_v29, %v2288_v24  ;;  %v2292_v47 = vrot.slane %v2288_v24, 4 }
 0x21f   : > { %v2479_v4 = vsel %vm4336_vm8, %v2308_v62, %v2813_v59 }
 0x220   : > { %v2311_v2 = vshrl.u32 %v2851_v63, 16  ;;  %v2294_v7 = vshrl.u32 %v2849_v44, 16  ;;  %2814 = vst [vmem:[%s4088_s4 + $0xc0] sm:$0xf] %v2479_v4  ;;  %v2472_v57 = vsel %vm4336_vm8, %v2291_v55, %v2808_v53  ;;  %v2314_v45 = vshll.u32 %v2851_v63, 16 }
 0x221   : > { %2809 = vst [vmem:[%s4088_s4 + $0xb4] sm:$0xf] %v2472_v57  ;;  %v2297_v0 = vshll.u32 %v2849_v44, 16 }
 0x222   : > { %v2313_v48 = vrot.slane %v2311_v2, 7  ;;  %v2296_v21 = vrot.slane %v2294_v7, 7 }
 0x224   : > { %v2316_v42 = vor.u32 %v2314_v45, %v2313_v48  ;;  %v2318_v40 = vrot.slane %v2313_v48, 4  ;;  %v2299_v38 = vor.u32 %v2297_v0, %v2296_v21  ;;  %v2301_v3 = vrot.slane %v2296_v21, 4 }
 0x226   : > { %v2317_v20 = vsel %vm4345_vm9, %v2309_v61, %v2316_v42  ;;  %v2483_v37 = vsel %vm4351_vm10, %v2318_v40, %v2816_v36  ;;  %v2300_v33 = vsel %vm4345_vm9, %v2292_v47, %v2299_v38  ;;  %v2476_v8 = vsel %vm4351_vm10, %v2301_v3, %v2811_v13 }
 0x227   : > { %2815 = vst.msk [vmem:[%s4088_s4 + $0xc4] sm:$0xf] %vm1908_vm3, %v2317_v20  ;;  %2817 = vst [vmem:[%s4088_s4 + $0xc8] sm:$0x1] %v2483_v37 }
 0x228   : > { %2810 = vst.msk [vmem:[%s4088_s4 + $0xb8] sm:$0xf] %vm1908_vm3, %v2300_v33  ;;  %2812 = vst [vmem:[%s4088_s4 + $0xbc] sm:$0x1] %v2476_v8 }
 0x229 PF: > { %s13_s14 = sadd.s32 1, %s3292_s14   ;;  %s4723_s12 = smov %s3288_s13 }
 0x22a   : > { %p10_p5 = scmp.ge.s32.totalorder %s13_s14, 4   ;;  %s4724_s13 = smov %s4726_s15 }
 0x22c   :  { %12 = sbr.rel (!%p10_p5) target bundleno = 2 (0x2), region = 69 }

</bundles_post_ra>
